<compile_context>
chip_gen: v7x
topology: tpu7x:2x2x1
jax: 0.10.0
libtpu: 0.0.40
codegen_flags: <defaults>
</compile_context>

<pallas_src>
import functools
import math

import jax
import jax.numpy as jnp
from jax.experimental import pallas as pl
from jax.experimental.pallas import tpu as pltpu

# ----------------------- config (small but ViT-shaped) -----------------------
BATCH = 2
IN_CH = 3
IMG = 32
PATCH = 16
HIDDEN = 64          # vit_b_16 uses 768
NUM_HEADS = 4        # vit_b_16 uses 12
MLP_DIM = 128        # vit_b_16 uses 3072
NUM_LAYERS = 2       # vit_b_16 uses 12
NUM_INDUSTRIES = 5
NUM_AUDIENCES = 3
NUM_OUT = NUM_INDUSTRIES + NUM_AUDIENCES + 1
HEAD_PAD = 128       # lane-dense padded classifier width
LN_EPS = 1e-6        # torchvision ViT uses LayerNorm(eps=1e-6)

N_PATCH = (IMG // PATCH) ** 2
SEQ = N_PATCH + 1                      # 5 (CLS + 4 patches)
SEQ_PAD = ((SEQ + 7) // 8) * 8         # 8 (sublane-aligned)


# ------------------------------ fused Pallas kernel --------------------------

def _vit_image_kernel(
    patches_ref, conv_w_ref, embed_add_ref,
    ln1_g_ref, ln1_b_ref,
    w_q_ref, b_q_ref, w_k_ref, b_k_ref, w_v_ref, b_v_ref,
    w_o_ref, b_o_ref,
    ln2_g_ref, ln2_b_ref, w_fc1_ref, b_fc1_ref, w_fc2_ref, b_fc2_ref,
    lnf_g_ref, lnf_b_ref, w_head_ref, b_head_ref,
    out_ref,
    *, num_layers, num_heads, n_tokens, s_pad, eps):
  """One grid step == full ViT forward for one image (S_pad x D activations)."""
  f32 = jnp.float32
  bf16 = jnp.bfloat16

  def ln(x, g, b):
    mu = jnp.mean(x, axis=-1, keepdims=True)
    xc = x - mu
    var = jnp.mean(xc * xc, axis=-1, keepdims=True)
    return xc * jax.lax.rsqrt(var + eps) * g + b

  def softmax_rows(s):
    s = s - jnp.max(s, axis=-1, keepdims=True)
    e = jnp.exp(s)
    return e * pl.reciprocal(jnp.sum(e, axis=-1, keepdims=True), approx=True)

  # Real tokens occupy key columns [0, n_tokens); padded rows are masked as keys
  # only (their own query rows are never read downstream).
  key_mask = jax.lax.broadcasted_iota(jnp.int32, (s_pad, s_pad), 1) < n_tokens

  # Patch embedding (Conv2d(3, D, 16, 16) as matmul).  patches row 0 and padded
  # tail rows are zero; embed_add supplies cls+pos[0] (row 0), conv_b+pos[1:]
  # (token rows) and zeros (padded rows), so `h` is the full embedded sequence.
  tok = jnp.dot(patches_ref[0].astype(bf16), conv_w_ref[...],
                preferred_element_type=f32)
  h = tok + embed_add_ref[...]                         # (s_pad, D) f32

  for l in range(num_layers):
    # --- self-attention sub-block (pre-LN) ---
    y = ln(h, ln1_g_ref[l], ln1_b_ref[l])
    y_b = y.astype(bf16)
    acc = None
    for hh in range(num_heads):                        # static head unroll
      # Per-head weight slabs packed host-side -> no lane-extracts of activations.
      # 1/sqrt(dh) already folded into w_q / b_q.
      q = jnp.dot(y_b, w_q_ref[l, hh], preferred_element_type=f32) + b_q_ref[l, hh]
      k = jnp.dot(y_b, w_k_ref[l, hh], preferred_element_type=f32) + b_k_ref[l, hh]
      v = jnp.dot(y_b, w_v_ref[l, hh], preferred_element_type=f32) + b_v_ref[l, hh]
      # contract last axes of both -> no explicit k.T / XLU transpose
      s = jax.lax.dot_general(q.astype(bf16), k.astype(bf16),
                              (((1,), (1,)), ((), ())),
                              preferred_element_type=f32)       # (s_pad, s_pad)
      s = jnp.where(key_mask, s, -1e30)
      p = softmax_rows(s)                                        # f32
      ah = jnp.dot(p.astype(bf16), v.astype(bf16),
                   preferred_element_type=f32)                   # (s_pad, dh)
      # out-projection folded per head: concat(heads) @ W_out == sum_h ah @ W_out[h]
      contrib = jnp.dot(ah.astype(bf16), w_o_ref[l, hh],
                        preferred_element_type=f32)              # (s_pad, D)
      acc = contrib if acc is None else acc + contrib
    h = h + acc + b_o_ref[l]                           # dropout == identity

    # --- MLP sub-block (pre-LN) ---
    z = ln(h, ln2_g_ref[l], ln2_b_ref[l])
    z = jnp.dot(z.astype(bf16), w_fc1_ref[l],
                preferred_element_type=f32) + b_fc1_ref[l]
    z = 0.5 * z * (1.0 + jax.lax.erf(z * 0.7071067811865476))   # exact GELU
    z = jnp.dot(z.astype(bf16), w_fc2_ref[l],
                preferred_element_type=f32) + b_fc2_ref[l]
    h = h + z

  # --- final LN + fused classifier heads, written as one lane-dense (8,128) slab
  hf = ln(h, lnf_g_ref[...], lnf_b_ref[...])
  out_ref[0] = (jnp.dot(hf.astype(bf16), w_head_ref[...],
                        preferred_element_type=f32)
                + b_head_ref[...]).astype(out_ref.dtype)


# ------------------------------- model (glue) --------------------------------

_PACK_ORDER = (
    "conv_w", "embed_add",
    "ln1_g", "ln1_b",
    "w_q", "b_q", "w_k", "b_k", "w_v", "b_v", "w_o", "b_o",
    "ln2_g", "ln2_b", "w_fc1", "b_fc1", "w_fc2", "b_fc2",
    "lnf_g", "lnf_b", "w_head", "b_head",
)


def _const_spec(arr):
  nd = arr.ndim
  return pl.BlockSpec(arr.shape, lambda b, _n=nd: (0,) * _n)


def multilabel_vit_forward(packed, x):
  """x: (B, 3, H, W) NCHW float32 (PyTorch conv layout)."""
  B, C, H, W = x.shape
  P = PATCH
  hp, wp = H // P, W // P
  n_patch = hp * wp
  S = n_patch + 1
  s_pad = ((S + 7) // 8) * 8
  pdim = C * P * P

  # Conv2d(C, D, P, stride=P) == per-patch matmul; flatten order (c, kh, kw).
  patches = (x.reshape(B, C, hp, P, wp, P)
               .transpose(0, 2, 4, 1, 3, 5)
               .reshape(B, n_patch, pdim))
  # Sublane-aligned layout: row 0 = CLS slot (zeros), rows 1..S-1 = patches,
  # rows S..s_pad-1 = padding (zeros, masked out of attention as keys).
  patches_pad = jnp.zeros((B, s_pad, pdim), jnp.float32)
  patches_pad = patches_pad.at[:, 1:1 + n_patch, :].set(patches)

  kernel = functools.partial(
      _vit_image_kernel, num_layers=NUM_LAYERS, num_heads=NUM_HEADS,
      n_tokens=S, s_pad=s_pad, eps=LN_EPS)

  weights = [packed[k] for k in _PACK_ORDER]

  out = pl.pallas_call(
      kernel,
      out_shape=jax.ShapeDtypeStruct((B, s_pad, HEAD_PAD), jnp.float32),
      grid=(B,),
      in_specs=([pl.BlockSpec((1, s_pad, pdim), lambda b: (b, 0, 0))]
                + [_const_spec(w) for w in weights]),
      out_specs=pl.BlockSpec((1, s_pad, HEAD_PAD), lambda b: (b, 0, 0)),
      compiler_params=pltpu.CompilerParams(dimension_semantics=("parallel",)),
  )(patches_pad, *weights)

  logits = out[:, 0, :NUM_OUT]                       # CLS-token logits (B, 9)
  out_industry = logits[:, :NUM_INDUSTRIES]
  out_audience = logits[:, NUM_INDUSTRIES:NUM_INDUSTRIES + NUM_AUDIENCES]
  out_family = logits[:, NUM_INDUSTRIES + NUM_AUDIENCES]   # (B,) == .squeeze(1)
  return out_industry, out_audience, out_family


# ------------------------- deterministic synthetic init ----------------------
# TODO(synk): pretrained ViT_B_16 weights are not loadable here; parameters are
# synthetic, scaled-down, deterministically initialized.

def _w(key, shape, scale=0.02):
  return scale * jax.random.normal(key, shape, jnp.float32)


def init_params(key):
  D, Mm = HIDDEN, MLP_DIM
  keys = iter(jax.random.split(key, 16 + 8 * NUM_LAYERS))
  params = {
      "conv_w": _w(next(keys), (IN_CH * PATCH * PATCH, D)),
      "conv_b": jnp.zeros((D,), jnp.float32),
      "cls_token": _w(next(keys), (1, 1, D)),
      "pos_embedding": _w(next(keys), (1, SEQ, D)),
      "ln_g": jnp.ones((D,), jnp.float32),
      "ln_b": jnp.zeros((D,), jnp.float32),
      "w_ind": _w(next(keys), (D, NUM_INDUSTRIES)),
      "b_ind": jnp.zeros((NUM_INDUSTRIES,), jnp.float32),
      "w_aud": _w(next(keys), (D, NUM_AUDIENCES)),
      "b_aud": jnp.zeros((NUM_AUDIENCES,), jnp.float32),
      "w_fam": _w(next(keys), (D, 1)),
      "b_fam": jnp.zeros((1,), jnp.float32),
      "layers": [],
  }
  for _ in range(NUM_LAYERS):
    params["layers"].append({
        "ln1_g": jnp.ones((D,), jnp.float32),
        "ln1_b": jnp.zeros((D,), jnp.float32),
        "w_qkv": _w(next(keys), (D, 3 * D)),   # [Wq|Wk|Wv] transposed
        "b_qkv": jnp.zeros((3 * D,), jnp.float32),
        "w_out": _w(next(keys), (D, D)),
        "b_out": jnp.zeros((D,), jnp.float32),
        "ln2_g": jnp.ones((D,), jnp.float32),
        "ln2_b": jnp.zeros((D,), jnp.float32),
        "w_fc1": _w(next(keys), (D, Mm)),
        "b_fc1": jnp.zeros((Mm,), jnp.float32),
        "w_fc2": _w(next(keys), (Mm, D)),
        "b_fc2": jnp.zeros((D,), jnp.float32),
    })
  return params


def pack_params(p):
  """One-time host-side repack: per-head Q/K/V/out slabs, attention scale folded
  into Q, [CLS]/pos/conv-bias additive table, bf16 matmul weights, lane-padded
  fused classifier head."""
  D, Mm = HIDDEN, MLP_DIM
  nh, dh = NUM_HEADS, HIDDEN // NUM_HEADS
  scale = 1.0 / math.sqrt(dh)
  bf16 = jnp.bfloat16
  layers = p["layers"]

  def per_head_in(w, b, s=1.0):
    # w: (D, nh*dh) -> (nh, D, dh);  b: (nh*dh,) -> (nh, 1, dh)
    wh = jnp.stack([w[:, h * dh:(h + 1) * dh] * s for h in range(nh)])
    bh = jnp.stack([b[h * dh:(h + 1) * dh].reshape(1, dh) * s for h in range(nh)])
    return wh, bh

  w_q, b_q, w_k, b_k, w_v, b_v, w_o = [], [], [], [], [], [], []
  for lp in layers:
    wq, bq = per_head_in(lp["w_qkv"][:, :D], lp["b_qkv"][:D], scale)
    wk, bk = per_head_in(lp["w_qkv"][:, D:2 * D], lp["b_qkv"][D:2 * D])
    wv, bv = per_head_in(lp["w_qkv"][:, 2 * D:], lp["b_qkv"][2 * D:])
    wo = jnp.stack([lp["w_out"][h * dh:(h + 1) * dh, :] for h in range(nh)])
    w_q.append(wq); b_q.append(bq); w_k.append(wk); b_k.append(bk)
    w_v.append(wv); b_v.append(bv); w_o.append(wo)

  def stack_vec(name, n):
    return jnp.stack([lp[name].reshape(1, n) for lp in layers])

  pos = p["pos_embedding"].reshape(SEQ, D)
  cls = p["cls_token"].reshape(1, D)
  conv_b = p["conv_b"].reshape(1, D)
  embed_add = jnp.concatenate(
      [cls + pos[0:1], conv_b + pos[1:SEQ],
       jnp.zeros((SEQ_PAD - SEQ, D), jnp.float32)], axis=0)      # (8, D)

  w_head = jnp.concatenate([p["w_ind"], p["w_aud"], p["w_fam"]], axis=1)  # (D, 9)
  w_head = jnp.pad(w_head, ((0, 0), (0, HEAD_PAD - NUM_OUT)))
  b_head = jnp.concatenate([p["b_ind"], p["b_aud"], p["b_fam"]])
  b_head = jnp.pad(b_head, (0, HEAD_PAD - NUM_OUT)).reshape(1, HEAD_PAD)

  return {
      "conv_w": p["conv_w"].astype(bf16),
      "embed_add": embed_add,
      "ln1_g": stack_vec("ln1_g", D), "ln1_b": stack_vec("ln1_b", D),
      "w_q": jnp.stack(w_q).astype(bf16), "b_q": jnp.stack(b_q),
      "w_k": jnp.stack(w_k).astype(bf16), "b_k": jnp.stack(b_k),
      "w_v": jnp.stack(w_v).astype(bf16), "b_v": jnp.stack(b_v),
      "w_o": jnp.stack(w_o).astype(bf16), "b_o": stack_vec("b_out", D),
      "ln2_g": stack_vec("ln2_g", D), "ln2_b": stack_vec("ln2_b", D),
      "w_fc1": jnp.stack([lp["w_fc1"] for lp in layers]).astype(bf16),
      "b_fc1": stack_vec("b_fc1", Mm),
      "w_fc2": jnp.stack([lp["w_fc2"] for lp in layers]).astype(bf16),
      "b_fc2": stack_vec("b_fc2", D),
      "lnf_g": p["ln_g"].reshape(1, D), "lnf_b": p["ln_b"].reshape(1, D),
      "w_head": w_head.astype(bf16), "b_head": b_head,
  }


# ------------------------------------ main -----------------------------------

if __name__ == "__main__":
  root = jax.random.PRNGKey(0)
  pkey, xkey = jax.random.split(root)
  params = init_params(pkey)
  packed = pack_params(params)
  x = jax.random.normal(xkey, (BATCH, IN_CH, IMG, IMG), jnp.float32)

  fwd = jax.jit(multilabel_vit_forward)
  out_ind, out_aud, out_fam = fwd(packed, x)
  jax.block_until_ready((out_ind, out_aud, out_fam))

  assert out_ind.shape == (BATCH, NUM_INDUSTRIES)
  assert out_aud.shape == (BATCH, NUM_AUDIENCES)
  assert out_fam.shape == (BATCH,)
  assert all(bool(jnp.all(jnp.isfinite(o))) for o in (out_ind, out_aud, out_fam))
  print("KERNEL_OK")
</pallas_src>

<mosaic_0001>
module attributes {stable_mosaic.version = 11 : i64} {
  func.func @_vit_image_kernel(%arg0: i32, %arg1: memref<1x8x768xf32, #tpu.memory_space<vmem>>, %arg2: memref<768x64xbf16, #tpu.memory_space<vmem>>, %arg3: memref<8x64xf32, #tpu.memory_space<vmem>>, %arg4: memref<2x1x64xf32, #tpu.memory_space<vmem>>, %arg5: memref<2x1x64xf32, #tpu.memory_space<vmem>>, %arg6: memref<2x4x64x16xbf16, #tpu.memory_space<vmem>>, %arg7: memref<2x4x1x16xf32, #tpu.memory_space<vmem>>, %arg8: memref<2x4x64x16xbf16, #tpu.memory_space<vmem>>, %arg9: memref<2x4x1x16xf32, #tpu.memory_space<vmem>>, %arg10: memref<2x4x64x16xbf16, #tpu.memory_space<vmem>>, %arg11: memref<2x4x1x16xf32, #tpu.memory_space<vmem>>, %arg12: memref<2x4x16x64xbf16, #tpu.memory_space<vmem>>, %arg13: memref<2x1x64xf32, #tpu.memory_space<vmem>>, %arg14: memref<2x1x64xf32, #tpu.memory_space<vmem>>, %arg15: memref<2x1x64xf32, #tpu.memory_space<vmem>>, %arg16: memref<2x64x128xbf16, #tpu.memory_space<vmem>>, %arg17: memref<2x1x128xf32, #tpu.memory_space<vmem>>, %arg18: memref<2x128x64xbf16, #tpu.memory_space<vmem>>, %arg19: memref<2x1x64xf32, #tpu.memory_space<vmem>>, %arg20: memref<1x64xf32, #tpu.memory_space<vmem>>, %arg21: memref<1x64xf32, #tpu.memory_space<vmem>>, %arg22: memref<64x128xbf16, #tpu.memory_space<vmem>>, %arg23: memref<1x128xf32, #tpu.memory_space<vmem>>, %arg24: memref<1x8x128xf32, #tpu.memory_space<vmem>>) attributes {dimension_semantics = [#tpu.dimension_semantics<parallel>], iteration_bounds = array<i64: 2>, scalar_prefetch = 0 : i64, scratch_operands = 0 : i64, tpu.core_type = #tpu.core_type<tc>, window_params = [{transform_indices = @transform_0, window_bounds = array<i64: 1, 8, 768>}, {pipeline_mode = #tpu.pipeline_mode<synchronous>, transform_indices = @transform_1, window_bounds = array<i64: 768, 64>}, {pipeline_mode = #tpu.pipeline_mode<synchronous>, transform_indices = @transform_2, window_bounds = array<i64: 8, 64>}, {pipeline_mode = #tpu.pipeline_mode<synchronous>, transform_indices = @transform_3, window_bounds = array<i64: 2, 1, 64>}, {pipeline_mode = #tpu.pipeline_mode<synchronous>, transform_indices = @transform_4, window_bounds = array<i64: 2, 1, 64>}, {pipeline_mode = #tpu.pipeline_mode<synchronous>, transform_indices = @transform_5, window_bounds = array<i64: 2, 4, 64, 16>}, {pipeline_mode = #tpu.pipeline_mode<synchronous>, transform_indices = @transform_6, window_bounds = array<i64: 2, 4, 1, 16>}, {pipeline_mode = #tpu.pipeline_mode<synchronous>, transform_indices = @transform_7, window_bounds = array<i64: 2, 4, 64, 16>}, {pipeline_mode = #tpu.pipeline_mode<synchronous>, transform_indices = @transform_8, window_bounds = array<i64: 2, 4, 1, 16>}, {pipeline_mode = #tpu.pipeline_mode<synchronous>, transform_indices = @transform_9, window_bounds = array<i64: 2, 4, 64, 16>}, {pipeline_mode = #tpu.pipeline_mode<synchronous>, transform_indices = @transform_10, window_bounds = array<i64: 2, 4, 1, 16>}, {pipeline_mode = #tpu.pipeline_mode<synchronous>, transform_indices = @transform_11, window_bounds = array<i64: 2, 4, 16, 64>}, {pipeline_mode = #tpu.pipeline_mode<synchronous>, transform_indices = @transform_12, window_bounds = array<i64: 2, 1, 64>}, {pipeline_mode = #tpu.pipeline_mode<synchronous>, transform_indices = @transform_13, window_bounds = array<i64: 2, 1, 64>}, {pipeline_mode = #tpu.pipeline_mode<synchronous>, transform_indices = @transform_14, window_bounds = array<i64: 2, 1, 64>}, {pipeline_mode = #tpu.pipeline_mode<synchronous>, transform_indices = @transform_15, window_bounds = array<i64: 2, 64, 128>}, {pipeline_mode = #tpu.pipeline_mode<synchronous>, transform_indices = @transform_16, window_bounds = array<i64: 2, 1, 128>}, {pipeline_mode = #tpu.pipeline_mode<synchronous>, transform_indices = @transform_17, window_bounds = array<i64: 2, 128, 64>}, {pipeline_mode = #tpu.pipeline_mode<synchronous>, transform_indices = @transform_18, window_bounds = array<i64: 2, 1, 64>}, {pipeline_mode = #tpu.pipeline_mode<synchronous>, transform_indices = @transform_19, window_bounds = array<i64: 1, 64>}, {pipeline_mode = #tpu.pipeline_mode<synchronous>, transform_indices = @transform_20, window_bounds = array<i64: 1, 64>}, {pipeline_mode = #tpu.pipeline_mode<synchronous>, transform_indices = @transform_21, window_bounds = array<i64: 64, 128>}, {pipeline_mode = #tpu.pipeline_mode<synchronous>, transform_indices = @transform_22, window_bounds = array<i64: 1, 128>}, {transform_indices = @transform_23, window_bounds = array<i64: 1, 8, 128>}]} {
    %0 = tpu.iota {dimensions = array<i32: 1>} : vector<8x8xi32>
    %c5_i32 = arith.constant 5 : i32
    %1 = vector.broadcast %c5_i32 : i32 to vector<8x8xi32>
    %2 = arith.cmpi slt, %0, %1 : vector<8x8xi32>
    %c0 = arith.constant 0 : index
    %c0_0 = arith.constant 0 : index
    %c0_1 = arith.constant 0 : index
    %3 = vector.load %arg1[%c0, %c0_0, %c0_1] : memref<1x8x768xf32, #tpu.memory_space<vmem>>, vector<1x8x768xf32>
    %4 = vector.shape_cast %3 : vector<1x8x768xf32> to vector<8x768xf32>
    %5 = arith.truncf %4 : vector<8x768xf32> to vector<8x768xbf16>
    %c0_2 = arith.constant 0 : index
    %c0_3 = arith.constant 0 : index
    %6 = vector.load %arg2[%c0_2, %c0_3] : memref<768x64xbf16, #tpu.memory_space<vmem>>, vector<768x64xbf16>
    %cst = arith.constant dense<0.000000e+00> : vector<8x64xf32>
    %7 = tpu.matmul %5, %6, %cst {dimension_numbers = #tpu.dot_dimension_numbers<[1], [0], [0], [1], [0, 0, 1, 1], [], []>} : vector<8x768xbf16>, vector<768x64xbf16>, vector<8x64xf32> -> vector<8x64xf32>
    %c0_4 = arith.constant 0 : index
    %c0_5 = arith.constant 0 : index
    %8 = vector.load %arg3[%c0_4, %c0_5] : memref<8x64xf32, #tpu.memory_space<vmem>>, vector<8x64xf32>
    %9 = arith.addf %7, %8 : vector<8x64xf32>
    %c0_6 = arith.constant 0 : index
    %c0_7 = arith.constant 0 : index
    %c0_8 = arith.constant 0 : index
    %10 = vector.load %arg4[%c0_6, %c0_7, %c0_8] : memref<2x1x64xf32, #tpu.memory_space<vmem>>, vector<1x1x64xf32>
    %11 = vector.shape_cast %10 : vector<1x1x64xf32> to vector<1x64xf32>
    %c0_9 = arith.constant 0 : index
    %c0_10 = arith.constant 0 : index
    %c0_11 = arith.constant 0 : index
    %12 = vector.load %arg5[%c0_9, %c0_10, %c0_11] : memref<2x1x64xf32, #tpu.memory_space<vmem>>, vector<1x1x64xf32>
    %13 = vector.shape_cast %12 : vector<1x1x64xf32> to vector<1x64xf32>
    %cst_12 = arith.constant dense<0.000000e+00> : vector<8xf32>
    %14 = vector.multi_reduction <add>, %9, %cst_12 [1] : vector<8x64xf32> to vector<8xf32>
    %15 = vector.shape_cast %14 : vector<8xf32> to vector<8x1xf32>
    %cst_13 = arith.constant 6.400000e+01 : f32
    %16 = vector.broadcast %cst_13 : f32 to vector<8x1xf32>
    %17 = arith.divf %15, %16 : vector<8x1xf32>
    %18 = vector.broadcast %17 : vector<8x1xf32> to vector<8x64xf32>
    %19 = arith.subf %9, %18 : vector<8x64xf32>
    %20 = arith.mulf %19, %19 : vector<8x64xf32>
    %cst_14 = arith.constant dense<0.000000e+00> : vector<8xf32>
    %21 = vector.multi_reduction <add>, %20, %cst_14 [1] : vector<8x64xf32> to vector<8xf32>
    %22 = vector.shape_cast %21 : vector<8xf32> to vector<8x1xf32>
    %cst_15 = arith.constant 6.400000e+01 : f32
    %23 = vector.broadcast %cst_15 : f32 to vector<8x1xf32>
    %24 = arith.divf %22, %23 : vector<8x1xf32>
    %cst_16 = arith.constant 9.99999997E-7 : f32
    %25 = vector.broadcast %cst_16 : f32 to vector<8x1xf32>
    %26 = arith.addf %24, %25 : vector<8x1xf32>
    %27 = math.rsqrt %26 : vector<8x1xf32>
    %28 = vector.broadcast %27 : vector<8x1xf32> to vector<8x64xf32>
    %29 = arith.mulf %19, %28 : vector<8x64xf32>
    %30 = vector.broadcast %11 : vector<1x64xf32> to vector<8x64xf32>
    %31 = arith.mulf %29, %30 : vector<8x64xf32>
    %32 = vector.broadcast %13 : vector<1x64xf32> to vector<8x64xf32>
    %33 = arith.addf %31, %32 : vector<8x64xf32>
    %34 = arith.truncf %33 : vector<8x64xf32> to vector<8x64xbf16>
    %c0_17 = arith.constant 0 : index
    %c0_18 = arith.constant 0 : index
    %c0_19 = arith.constant 0 : index
    %c0_20 = arith.constant 0 : index
    %35 = vector.load %arg6[%c0_17, %c0_18, %c0_19, %c0_20] : memref<2x4x64x16xbf16, #tpu.memory_space<vmem>>, vector<1x1x64x16xbf16>
    %36 = vector.shape_cast %35 : vector<1x1x64x16xbf16> to vector<64x16xbf16>
    %cst_21 = arith.constant dense<0.000000e+00> : vector<8x16xf32>
    %37 = tpu.matmul %34, %36, %cst_21 {dimension_numbers = #tpu.dot_dimension_numbers<[1], [0], [0], [1], [0, 0, 1, 1], [], []>} : vector<8x64xbf16>, vector<64x16xbf16>, vector<8x16xf32> -> vector<8x16xf32>
    %c0_22 = arith.constant 0 : index
    %c0_23 = arith.constant 0 : index
    %c0_24 = arith.constant 0 : index
    %c0_25 = arith.constant 0 : index
    %38 = vector.load %arg7[%c0_22, %c0_23, %c0_24, %c0_25] : memref<2x4x1x16xf32, #tpu.memory_space<vmem>>, vector<1x1x1x16xf32>
    %39 = vector.shape_cast %38 : vector<1x1x1x16xf32> to vector<1x16xf32>
    %40 = vector.broadcast %39 : vector<1x16xf32> to vector<8x16xf32>
    %41 = arith.addf %37, %40 : vector<8x16xf32>
    %c0_26 = arith.constant 0 : index
    %c0_27 = arith.constant 0 : index
    %c0_28 = arith.constant 0 : index
    %c0_29 = arith.constant 0 : index
    %42 = vector.load %arg8[%c0_26, %c0_27, %c0_28, %c0_29] : memref<2x4x64x16xbf16, #tpu.memory_space<vmem>>, vector<1x1x64x16xbf16>
    %43 = vector.shape_cast %42 : vector<1x1x64x16xbf16> to vector<64x16xbf16>
    %cst_30 = arith.constant dense<0.000000e+00> : vector<8x16xf32>
    %44 = tpu.matmul %34, %43, %cst_30 {dimension_numbers = #tpu.dot_dimension_numbers<[1], [0], [0], [1], [0, 0, 1, 1], [], []>} : vector<8x64xbf16>, vector<64x16xbf16>, vector<8x16xf32> -> vector<8x16xf32>
    %c0_31 = arith.constant 0 : index
    %c0_32 = arith.constant 0 : index
    %c0_33 = arith.constant 0 : index
    %c0_34 = arith.constant 0 : index
    %45 = vector.load %arg9[%c0_31, %c0_32, %c0_33, %c0_34] : memref<2x4x1x16xf32, #tpu.memory_space<vmem>>, vector<1x1x1x16xf32>
    %46 = vector.shape_cast %45 : vector<1x1x1x16xf32> to vector<1x16xf32>
    %47 = vector.broadcast %46 : vector<1x16xf32> to vector<8x16xf32>
    %48 = arith.addf %44, %47 : vector<8x16xf32>
    %c0_35 = arith.constant 0 : index
    %c0_36 = arith.constant 0 : index
    %c0_37 = arith.constant 0 : index
    %c0_38 = arith.constant 0 : index
    %49 = vector.load %arg10[%c0_35, %c0_36, %c0_37, %c0_38] : memref<2x4x64x16xbf16, #tpu.memory_space<vmem>>, vector<1x1x64x16xbf16>
    %50 = vector.shape_cast %49 : vector<1x1x64x16xbf16> to vector<64x16xbf16>
    %cst_39 = arith.constant dense<0.000000e+00> : vector<8x16xf32>
    %51 = tpu.matmul %34, %50, %cst_39 {dimension_numbers = #tpu.dot_dimension_numbers<[1], [0], [0], [1], [0, 0, 1, 1], [], []>} : vector<8x64xbf16>, vector<64x16xbf16>, vector<8x16xf32> -> vector<8x16xf32>
    %c0_40 = arith.constant 0 : index
    %c0_41 = arith.constant 0 : index
    %c0_42 = arith.constant 0 : index
    %c0_43 = arith.constant 0 : index
    %52 = vector.load %arg11[%c0_40, %c0_41, %c0_42, %c0_43] : memref<2x4x1x16xf32, #tpu.memory_space<vmem>>, vector<1x1x1x16xf32>
    %53 = vector.shape_cast %52 : vector<1x1x1x16xf32> to vector<1x16xf32>
    %54 = vector.broadcast %53 : vector<1x16xf32> to vector<8x16xf32>
    %55 = arith.addf %51, %54 : vector<8x16xf32>
    %56 = arith.truncf %41 : vector<8x16xf32> to vector<8x16xbf16>
    %57 = arith.truncf %48 : vector<8x16xf32> to vector<8x16xbf16>
    %cst_44 = arith.constant dense<0.000000e+00> : vector<8x8xf32>
    %58 = tpu.matmul %56, %57, %cst_44 {dimension_numbers = #tpu.dot_dimension_numbers<[1], [1], [0], [0], [0, 0, 1, 0], [], []>} : vector<8x16xbf16>, vector<8x16xbf16>, vector<8x8xf32> -> vector<8x8xf32>
    %cst_45 = arith.constant -1.000000e+30 : f32
    %59 = vector.broadcast %cst_45 : f32 to vector<8x8xf32>
    %60 = arith.select %2, %58, %59 : vector<8x8xi1>, vector<8x8xf32>
    %cst_46 = arith.constant dense<0xFF800000> : vector<8xf32>
    %61 = vector.multi_reduction <maximumf>, %60, %cst_46 [1] : vector<8x8xf32> to vector<8xf32>
    %62 = vector.shape_cast %61 : vector<8xf32> to vector<8x1xf32>
    %63 = vector.broadcast %62 : vector<8x1xf32> to vector<8x8xf32>
    %64 = arith.subf %60, %63 : vector<8x8xf32>
    %65 = math.exp %64 : vector<8x8xf32>
    %cst_47 = arith.constant dense<0.000000e+00> : vector<8xf32>
    %66 = vector.multi_reduction <add>, %65, %cst_47 [1] : vector<8x8xf32> to vector<8xf32>
    %67 = vector.shape_cast %66 : vector<8xf32> to vector<8x1xf32>
    %68 = tpu.reciprocal %67 {approx = true} : vector<8x1xf32> -> vector<8x1xf32>
    %69 = vector.broadcast %68 : vector<8x1xf32> to vector<8x8xf32>
    %70 = arith.mulf %65, %69 : vector<8x8xf32>
    %71 = arith.truncf %70 : vector<8x8xf32> to vector<8x8xbf16>
    %72 = arith.truncf %55 : vector<8x16xf32> to vector<8x16xbf16>
    %cst_48 = arith.constant dense<0.000000e+00> : vector<8x16xf32>
    %73 = tpu.matmul %71, %72, %cst_48 {dimension_numbers = #tpu.dot_dimension_numbers<[1], [0], [0], [1], [0, 0, 1, 1], [], []>} : vector<8x8xbf16>, vector<8x16xbf16>, vector<8x16xf32> -> vector<8x16xf32>
    %74 = arith.truncf %73 : vector<8x16xf32> to vector<8x16xbf16>
    %c0_49 = arith.constant 0 : index
    %c0_50 = arith.constant 0 : index
    %c0_51 = arith.constant 0 : index
    %c0_52 = arith.constant 0 : index
    %75 = vector.load %arg12[%c0_49, %c0_50, %c0_51, %c0_52] : memref<2x4x16x64xbf16, #tpu.memory_space<vmem>>, vector<1x1x16x64xbf16>
    %76 = vector.shape_cast %75 : vector<1x1x16x64xbf16> to vector<16x64xbf16>
    %cst_53 = arith.constant dense<0.000000e+00> : vector<8x64xf32>
    %77 = tpu.matmul %74, %76, %cst_53 {dimension_numbers = #tpu.dot_dimension_numbers<[1], [0], [0], [1], [0, 0, 1, 1], [], []>} : vector<8x16xbf16>, vector<16x64xbf16>, vector<8x64xf32> -> vector<8x64xf32>
    %c0_54 = arith.constant 0 : index
    %c1 = arith.constant 1 : index
    %c0_55 = arith.constant 0 : index
    %c0_56 = arith.constant 0 : index
    %78 = vector.load %arg6[%c0_54, %c1, %c0_55, %c0_56] : memref<2x4x64x16xbf16, #tpu.memory_space<vmem>>, vector<1x1x64x16xbf16>
    %79 = vector.shape_cast %78 : vector<1x1x64x16xbf16> to vector<64x16xbf16>
    %cst_57 = arith.constant dense<0.000000e+00> : vector<8x16xf32>
    %80 = tpu.matmul %34, %79, %cst_57 {dimension_numbers = #tpu.dot_dimension_numbers<[1], [0], [0], [1], [0, 0, 1, 1], [], []>} : vector<8x64xbf16>, vector<64x16xbf16>, vector<8x16xf32> -> vector<8x16xf32>
    %c0_58 = arith.constant 0 : index
    %c1_59 = arith.constant 1 : index
    %c0_60 = arith.constant 0 : index
    %c0_61 = arith.constant 0 : index
    %81 = vector.load %arg7[%c0_58, %c1_59, %c0_60, %c0_61] : memref<2x4x1x16xf32, #tpu.memory_space<vmem>>, vector<1x1x1x16xf32>
    %82 = vector.shape_cast %81 : vector<1x1x1x16xf32> to vector<1x16xf32>
    %83 = vector.broadcast %82 : vector<1x16xf32> to vector<8x16xf32>
    %84 = arith.addf %80, %83 : vector<8x16xf32>
    %c0_62 = arith.constant 0 : index
    %c1_63 = arith.constant 1 : index
    %c0_64 = arith.constant 0 : index
    %c0_65 = arith.constant 0 : index
    %85 = vector.load %arg8[%c0_62, %c1_63, %c0_64, %c0_65] : memref<2x4x64x16xbf16, #tpu.memory_space<vmem>>, vector<1x1x64x16xbf16>
    %86 = vector.shape_cast %85 : vector<1x1x64x16xbf16> to vector<64x16xbf16>
    %cst_66 = arith.constant dense<0.000000e+00> : vector<8x16xf32>
    %87 = tpu.matmul %34, %86, %cst_66 {dimension_numbers = #tpu.dot_dimension_numbers<[1], [0], [0], [1], [0, 0, 1, 1], [], []>} : vector<8x64xbf16>, vector<64x16xbf16>, vector<8x16xf32> -> vector<8x16xf32>
    %c0_67 = arith.constant 0 : index
    %c1_68 = arith.constant 1 : index
    %c0_69 = arith.constant 0 : index
    %c0_70 = arith.constant 0 : index
    %88 = vector.load %arg9[%c0_67, %c1_68, %c0_69, %c0_70] : memref<2x4x1x16xf32, #tpu.memory_space<vmem>>, vector<1x1x1x16xf32>
    %89 = vector.shape_cast %88 : vector<1x1x1x16xf32> to vector<1x16xf32>
    %90 = vector.broadcast %89 : vector<1x16xf32> to vector<8x16xf32>
    %91 = arith.addf %87, %90 : vector<8x16xf32>
    %c0_71 = arith.constant 0 : index
    %c1_72 = arith.constant 1 : index
    %c0_73 = arith.constant 0 : index
    %c0_74 = arith.constant 0 : index
    %92 = vector.load %arg10[%c0_71, %c1_72, %c0_73, %c0_74] : memref<2x4x64x16xbf16, #tpu.memory_space<vmem>>, vector<1x1x64x16xbf16>
    %93 = vector.shape_cast %92 : vector<1x1x64x16xbf16> to vector<64x16xbf16>
    %cst_75 = arith.constant dense<0.000000e+00> : vector<8x16xf32>
    %94 = tpu.matmul %34, %93, %cst_75 {dimension_numbers = #tpu.dot_dimension_numbers<[1], [0], [0], [1], [0, 0, 1, 1], [], []>} : vector<8x64xbf16>, vector<64x16xbf16>, vector<8x16xf32> -> vector<8x16xf32>
    %c0_76 = arith.constant 0 : index
    %c1_77 = arith.constant 1 : index
    %c0_78 = arith.constant 0 : index
    %c0_79 = arith.constant 0 : index
    %95 = vector.load %arg11[%c0_76, %c1_77, %c0_78, %c0_79] : memref<2x4x1x16xf32, #tpu.memory_space<vmem>>, vector<1x1x1x16xf32>
    %96 = vector.shape_cast %95 : vector<1x1x1x16xf32> to vector<1x16xf32>
    %97 = vector.broadcast %96 : vector<1x16xf32> to vector<8x16xf32>
    %98 = arith.addf %94, %97 : vector<8x16xf32>
    %99 = arith.truncf %84 : vector<8x16xf32> to vector<8x16xbf16>
    %100 = arith.truncf %91 : vector<8x16xf32> to vector<8x16xbf16>
    %cst_80 = arith.constant dense<0.000000e+00> : vector<8x8xf32>
    %101 = tpu.matmul %99, %100, %cst_80 {dimension_numbers = #tpu.dot_dimension_numbers<[1], [1], [0], [0], [0, 0, 1, 0], [], []>} : vector<8x16xbf16>, vector<8x16xbf16>, vector<8x8xf32> -> vector<8x8xf32>
    %cst_81 = arith.constant -1.000000e+30 : f32
    %102 = vector.broadcast %cst_81 : f32 to vector<8x8xf32>
    %103 = arith.select %2, %101, %102 : vector<8x8xi1>, vector<8x8xf32>
    %cst_82 = arith.constant dense<0xFF800000> : vector<8xf32>
    %104 = vector.multi_reduction <maximumf>, %103, %cst_82 [1] : vector<8x8xf32> to vector<8xf32>
    %105 = vector.shape_cast %104 : vector<8xf32> to vector<8x1xf32>
    %106 = vector.broadcast %105 : vector<8x1xf32> to vector<8x8xf32>
    %107 = arith.subf %103, %106 : vector<8x8xf32>
    %108 = math.exp %107 : vector<8x8xf32>
    %cst_83 = arith.constant dense<0.000000e+00> : vector<8xf32>
    %109 = vector.multi_reduction <add>, %108, %cst_83 [1] : vector<8x8xf32> to vector<8xf32>
    %110 = vector.shape_cast %109 : vector<8xf32> to vector<8x1xf32>
    %111 = tpu.reciprocal %110 {approx = true} : vector<8x1xf32> -> vector<8x1xf32>
    %112 = vector.broadcast %111 : vector<8x1xf32> to vector<8x8xf32>
    %113 = arith.mulf %108, %112 : vector<8x8xf32>
    %114 = arith.truncf %113 : vector<8x8xf32> to vector<8x8xbf16>
    %115 = arith.truncf %98 : vector<8x16xf32> to vector<8x16xbf16>
    %cst_84 = arith.constant dense<0.000000e+00> : vector<8x16xf32>
    %116 = tpu.matmul %114, %115, %cst_84 {dimension_numbers = #tpu.dot_dimension_numbers<[1], [0], [0], [1], [0, 0, 1, 1], [], []>} : vector<8x8xbf16>, vector<8x16xbf16>, vector<8x16xf32> -> vector<8x16xf32>
    %117 = arith.truncf %116 : vector<8x16xf32> to vector<8x16xbf16>
    %c0_85 = arith.constant 0 : index
    %c1_86 = arith.constant 1 : index
    %c0_87 = arith.constant 0 : index
    %c0_88 = arith.constant 0 : index
    %118 = vector.load %arg12[%c0_85, %c1_86, %c0_87, %c0_88] : memref<2x4x16x64xbf16, #tpu.memory_space<vmem>>, vector<1x1x16x64xbf16>
    %119 = vector.shape_cast %118 : vector<1x1x16x64xbf16> to vector<16x64xbf16>
    %cst_89 = arith.constant dense<0.000000e+00> : vector<8x64xf32>
    %120 = tpu.matmul %117, %119, %cst_89 {dimension_numbers = #tpu.dot_dimension_numbers<[1], [0], [0], [1], [0, 0, 1, 1], [], []>} : vector<8x16xbf16>, vector<16x64xbf16>, vector<8x64xf32> -> vector<8x64xf32>
    %121 = arith.addf %77, %120 : vector<8x64xf32>
    %c0_90 = arith.constant 0 : index
    %c2 = arith.constant 2 : index
    %c0_91 = arith.constant 0 : index
    %c0_92 = arith.constant 0 : index
    %122 = vector.load %arg6[%c0_90, %c2, %c0_91, %c0_92] : memref<2x4x64x16xbf16, #tpu.memory_space<vmem>>, vector<1x1x64x16xbf16>
    %123 = vector.shape_cast %122 : vector<1x1x64x16xbf16> to vector<64x16xbf16>
    %cst_93 = arith.constant dense<0.000000e+00> : vector<8x16xf32>
    %124 = tpu.matmul %34, %123, %cst_93 {dimension_numbers = #tpu.dot_dimension_numbers<[1], [0], [0], [1], [0, 0, 1, 1], [], []>} : vector<8x64xbf16>, vector<64x16xbf16>, vector<8x16xf32> -> vector<8x16xf32>
    %c0_94 = arith.constant 0 : index
    %c2_95 = arith.constant 2 : index
    %c0_96 = arith.constant 0 : index
    %c0_97 = arith.constant 0 : index
    %125 = vector.load %arg7[%c0_94, %c2_95, %c0_96, %c0_97] : memref<2x4x1x16xf32, #tpu.memory_space<vmem>>, vector<1x1x1x16xf32>
    %126 = vector.shape_cast %125 : vector<1x1x1x16xf32> to vector<1x16xf32>
    %127 = vector.broadcast %126 : vector<1x16xf32> to vector<8x16xf32>
    %128 = arith.addf %124, %127 : vector<8x16xf32>
    %c0_98 = arith.constant 0 : index
    %c2_99 = arith.constant 2 : index
    %c0_100 = arith.constant 0 : index
    %c0_101 = arith.constant 0 : index
    %129 = vector.load %arg8[%c0_98, %c2_99, %c0_100, %c0_101] : memref<2x4x64x16xbf16, #tpu.memory_space<vmem>>, vector<1x1x64x16xbf16>
    %130 = vector.shape_cast %129 : vector<1x1x64x16xbf16> to vector<64x16xbf16>
    %cst_102 = arith.constant dense<0.000000e+00> : vector<8x16xf32>
    %131 = tpu.matmul %34, %130, %cst_102 {dimension_numbers = #tpu.dot_dimension_numbers<[1], [0], [0], [1], [0, 0, 1, 1], [], []>} : vector<8x64xbf16>, vector<64x16xbf16>, vector<8x16xf32> -> vector<8x16xf32>
    %c0_103 = arith.constant 0 : index
    %c2_104 = arith.constant 2 : index
    %c0_105 = arith.constant 0 : index
    %c0_106 = arith.constant 0 : index
    %132 = vector.load %arg9[%c0_103, %c2_104, %c0_105, %c0_106] : memref<2x4x1x16xf32, #tpu.memory_space<vmem>>, vector<1x1x1x16xf32>
    %133 = vector.shape_cast %132 : vector<1x1x1x16xf32> to vector<1x16xf32>
    %134 = vector.broadcast %133 : vector<1x16xf32> to vector<8x16xf32>
    %135 = arith.addf %131, %134 : vector<8x16xf32>
    %c0_107 = arith.constant 0 : index
    %c2_108 = arith.constant 2 : index
    %c0_109 = arith.constant 0 : index
    %c0_110 = arith.constant 0 : index
    %136 = vector.load %arg10[%c0_107, %c2_108, %c0_109, %c0_110] : memref<2x4x64x16xbf16, #tpu.memory_space<vmem>>, vector<1x1x64x16xbf16>
    %137 = vector.shape_cast %136 : vector<1x1x64x16xbf16> to vector<64x16xbf16>
    %cst_111 = arith.constant dense<0.000000e+00> : vector<8x16xf32>
    %138 = tpu.matmul %34, %137, %cst_111 {dimension_numbers = #tpu.dot_dimension_numbers<[1], [0], [0], [1], [0, 0, 1, 1], [], []>} : vector<8x64xbf16>, vector<64x16xbf16>, vector<8x16xf32> -> vector<8x16xf32>
    %c0_112 = arith.constant 0 : index
    %c2_113 = arith.constant 2 : index
    %c0_114 = arith.constant 0 : index
    %c0_115 = arith.constant 0 : index
    %139 = vector.load %arg11[%c0_112, %c2_113, %c0_114, %c0_115] : memref<2x4x1x16xf32, #tpu.memory_space<vmem>>, vector<1x1x1x16xf32>
    %140 = vector.shape_cast %139 : vector<1x1x1x16xf32> to vector<1x16xf32>
    %141 = vector.broadcast %140 : vector<1x16xf32> to vector<8x16xf32>
    %142 = arith.addf %138, %141 : vector<8x16xf32>
    %143 = arith.truncf %128 : vector<8x16xf32> to vector<8x16xbf16>
    %144 = arith.truncf %135 : vector<8x16xf32> to vector<8x16xbf16>
    %cst_116 = arith.constant dense<0.000000e+00> : vector<8x8xf32>
    %145 = tpu.matmul %143, %144, %cst_116 {dimension_numbers = #tpu.dot_dimension_numbers<[1], [1], [0], [0], [0, 0, 1, 0], [], []>} : vector<8x16xbf16>, vector<8x16xbf16>, vector<8x8xf32> -> vector<8x8xf32>
    %cst_117 = arith.constant -1.000000e+30 : f32
    %146 = vector.broadcast %cst_117 : f32 to vector<8x8xf32>
    %147 = arith.select %2, %145, %146 : vector<8x8xi1>, vector<8x8xf32>
    %cst_118 = arith.constant dense<0xFF800000> : vector<8xf32>
    %148 = vector.multi_reduction <maximumf>, %147, %cst_118 [1] : vector<8x8xf32> to vector<8xf32>
    %149 = vector.shape_cast %148 : vector<8xf32> to vector<8x1xf32>
    %150 = vector.broadcast %149 : vector<8x1xf32> to vector<8x8xf32>
    %151 = arith.subf %147, %150 : vector<8x8xf32>
    %152 = math.exp %151 : vector<8x8xf32>
    %cst_119 = arith.constant dense<0.000000e+00> : vector<8xf32>
    %153 = vector.multi_reduction <add>, %152, %cst_119 [1] : vector<8x8xf32> to vector<8xf32>
    %154 = vector.shape_cast %153 : vector<8xf32> to vector<8x1xf32>
    %155 = tpu.reciprocal %154 {approx = true} : vector<8x1xf32> -> vector<8x1xf32>
    %156 = vector.broadcast %155 : vector<8x1xf32> to vector<8x8xf32>
    %157 = arith.mulf %152, %156 : vector<8x8xf32>
    %158 = arith.truncf %157 : vector<8x8xf32> to vector<8x8xbf16>
    %159 = arith.truncf %142 : vector<8x16xf32> to vector<8x16xbf16>
    %cst_120 = arith.constant dense<0.000000e+00> : vector<8x16xf32>
    %160 = tpu.matmul %158, %159, %cst_120 {dimension_numbers = #tpu.dot_dimension_numbers<[1], [0], [0], [1], [0, 0, 1, 1], [], []>} : vector<8x8xbf16>, vector<8x16xbf16>, vector<8x16xf32> -> vector<8x16xf32>
    %161 = arith.truncf %160 : vector<8x16xf32> to vector<8x16xbf16>
    %c0_121 = arith.constant 0 : index
    %c2_122 = arith.constant 2 : index
    %c0_123 = arith.constant 0 : index
    %c0_124 = arith.constant 0 : index
    %162 = vector.load %arg12[%c0_121, %c2_122, %c0_123, %c0_124] : memref<2x4x16x64xbf16, #tpu.memory_space<vmem>>, vector<1x1x16x64xbf16>
    %163 = vector.shape_cast %162 : vector<1x1x16x64xbf16> to vector<16x64xbf16>
    %cst_125 = arith.constant dense<0.000000e+00> : vector<8x64xf32>
    %164 = tpu.matmul %161, %163, %cst_125 {dimension_numbers = #tpu.dot_dimension_numbers<[1], [0], [0], [1], [0, 0, 1, 1], [], []>} : vector<8x16xbf16>, vector<16x64xbf16>, vector<8x64xf32> -> vector<8x64xf32>
    %165 = arith.addf %121, %164 : vector<8x64xf32>
    %c0_126 = arith.constant 0 : index
    %c3 = arith.constant 3 : index
    %c0_127 = arith.constant 0 : index
    %c0_128 = arith.constant 0 : index
    %166 = vector.load %arg6[%c0_126, %c3, %c0_127, %c0_128] : memref<2x4x64x16xbf16, #tpu.memory_space<vmem>>, vector<1x1x64x16xbf16>
    %167 = vector.shape_cast %166 : vector<1x1x64x16xbf16> to vector<64x16xbf16>
    %cst_129 = arith.constant dense<0.000000e+00> : vector<8x16xf32>
    %168 = tpu.matmul %34, %167, %cst_129 {dimension_numbers = #tpu.dot_dimension_numbers<[1], [0], [0], [1], [0, 0, 1, 1], [], []>} : vector<8x64xbf16>, vector<64x16xbf16>, vector<8x16xf32> -> vector<8x16xf32>
    %c0_130 = arith.constant 0 : index
    %c3_131 = arith.constant 3 : index
    %c0_132 = arith.constant 0 : index
    %c0_133 = arith.constant 0 : index
    %169 = vector.load %arg7[%c0_130, %c3_131, %c0_132, %c0_133] : memref<2x4x1x16xf32, #tpu.memory_space<vmem>>, vector<1x1x1x16xf32>
    %170 = vector.shape_cast %169 : vector<1x1x1x16xf32> to vector<1x16xf32>
    %171 = vector.broadcast %170 : vector<1x16xf32> to vector<8x16xf32>
    %172 = arith.addf %168, %171 : vector<8x16xf32>
    %c0_134 = arith.constant 0 : index
    %c3_135 = arith.constant 3 : index
    %c0_136 = arith.constant 0 : index
    %c0_137 = arith.constant 0 : index
    %173 = vector.load %arg8[%c0_134, %c3_135, %c0_136, %c0_137] : memref<2x4x64x16xbf16, #tpu.memory_space<vmem>>, vector<1x1x64x16xbf16>
    %174 = vector.shape_cast %173 : vector<1x1x64x16xbf16> to vector<64x16xbf16>
    %cst_138 = arith.constant dense<0.000000e+00> : vector<8x16xf32>
    %175 = tpu.matmul %34, %174, %cst_138 {dimension_numbers = #tpu.dot_dimension_numbers<[1], [0], [0], [1], [0, 0, 1, 1], [], []>} : vector<8x64xbf16>, vector<64x16xbf16>, vector<8x16xf32> -> vector<8x16xf32>
    %c0_139 = arith.constant 0 : index
    %c3_140 = arith.constant 3 : index
    %c0_141 = arith.constant 0 : index
    %c0_142 = arith.constant 0 : index
    %176 = vector.load %arg9[%c0_139, %c3_140, %c0_141, %c0_142] : memref<2x4x1x16xf32, #tpu.memory_space<vmem>>, vector<1x1x1x16xf32>
    %177 = vector.shape_cast %176 : vector<1x1x1x16xf32> to vector<1x16xf32>
    %178 = vector.broadcast %177 : vector<1x16xf32> to vector<8x16xf32>
    %179 = arith.addf %175, %178 : vector<8x16xf32>
    %c0_143 = arith.constant 0 : index
    %c3_144 = arith.constant 3 : index
    %c0_145 = arith.constant 0 : index
    %c0_146 = arith.constant 0 : index
    %180 = vector.load %arg10[%c0_143, %c3_144, %c0_145, %c0_146] : memref<2x4x64x16xbf16, #tpu.memory_space<vmem>>, vector<1x1x64x16xbf16>
    %181 = vector.shape_cast %180 : vector<1x1x64x16xbf16> to vector<64x16xbf16>
    %cst_147 = arith.constant dense<0.000000e+00> : vector<8x16xf32>
    %182 = tpu.matmul %34, %181, %cst_147 {dimension_numbers = #tpu.dot_dimension_numbers<[1], [0], [0], [1], [0, 0, 1, 1], [], []>} : vector<8x64xbf16>, vector<64x16xbf16>, vector<8x16xf32> -> vector<8x16xf32>
    %c0_148 = arith.constant 0 : index
    %c3_149 = arith.constant 3 : index
    %c0_150 = arith.constant 0 : index
    %c0_151 = arith.constant 0 : index
    %183 = vector.load %arg11[%c0_148, %c3_149, %c0_150, %c0_151] : memref<2x4x1x16xf32, #tpu.memory_space<vmem>>, vector<1x1x1x16xf32>
    %184 = vector.shape_cast %183 : vector<1x1x1x16xf32> to vector<1x16xf32>
    %185 = vector.broadcast %184 : vector<1x16xf32> to vector<8x16xf32>
    %186 = arith.addf %182, %185 : vector<8x16xf32>
    %187 = arith.truncf %172 : vector<8x16xf32> to vector<8x16xbf16>
    %188 = arith.truncf %179 : vector<8x16xf32> to vector<8x16xbf16>
    %cst_152 = arith.constant dense<0.000000e+00> : vector<8x8xf32>
    %189 = tpu.matmul %187, %188, %cst_152 {dimension_numbers = #tpu.dot_dimension_numbers<[1], [1], [0], [0], [0, 0, 1, 0], [], []>} : vector<8x16xbf16>, vector<8x16xbf16>, vector<8x8xf32> -> vector<8x8xf32>
    %cst_153 = arith.constant -1.000000e+30 : f32
    %190 = vector.broadcast %cst_153 : f32 to vector<8x8xf32>
    %191 = arith.select %2, %189, %190 : vector<8x8xi1>, vector<8x8xf32>
    %cst_154 = arith.constant dense<0xFF800000> : vector<8xf32>
    %192 = vector.multi_reduction <maximumf>, %191, %cst_154 [1] : vector<8x8xf32> to vector<8xf32>
    %193 = vector.shape_cast %192 : vector<8xf32> to vector<8x1xf32>
    %194 = vector.broadcast %193 : vector<8x1xf32> to vector<8x8xf32>
    %195 = arith.subf %191, %194 : vector<8x8xf32>
    %196 = math.exp %195 : vector<8x8xf32>
    %cst_155 = arith.constant dense<0.000000e+00> : vector<8xf32>
    %197 = vector.multi_reduction <add>, %196, %cst_155 [1] : vector<8x8xf32> to vector<8xf32>
    %198 = vector.shape_cast %197 : vector<8xf32> to vector<8x1xf32>
    %199 = tpu.reciprocal %198 {approx = true} : vector<8x1xf32> -> vector<8x1xf32>
    %200 = vector.broadcast %199 : vector<8x1xf32> to vector<8x8xf32>
    %201 = arith.mulf %196, %200 : vector<8x8xf32>
    %202 = arith.truncf %201 : vector<8x8xf32> to vector<8x8xbf16>
    %203 = arith.truncf %186 : vector<8x16xf32> to vector<8x16xbf16>
    %cst_156 = arith.constant dense<0.000000e+00> : vector<8x16xf32>
    %204 = tpu.matmul %202, %203, %cst_156 {dimension_numbers = #tpu.dot_dimension_numbers<[1], [0], [0], [1], [0, 0, 1, 1], [], []>} : vector<8x8xbf16>, vector<8x16xbf16>, vector<8x16xf32> -> vector<8x16xf32>
    %205 = arith.truncf %204 : vector<8x16xf32> to vector<8x16xbf16>
    %c0_157 = arith.constant 0 : index
    %c3_158 = arith.constant 3 : index
    %c0_159 = arith.constant 0 : index
    %c0_160 = arith.constant 0 : index
    %206 = vector.load %arg12[%c0_157, %c3_158, %c0_159, %c0_160] : memref<2x4x16x64xbf16, #tpu.memory_space<vmem>>, vector<1x1x16x64xbf16>
    %207 = vector.shape_cast %206 : vector<1x1x16x64xbf16> to vector<16x64xbf16>
    %cst_161 = arith.constant dense<0.000000e+00> : vector<8x64xf32>
    %208 = tpu.matmul %205, %207, %cst_161 {dimension_numbers = #tpu.dot_dimension_numbers<[1], [0], [0], [1], [0, 0, 1, 1], [], []>} : vector<8x16xbf16>, vector<16x64xbf16>, vector<8x64xf32> -> vector<8x64xf32>
    %209 = arith.addf %165, %208 : vector<8x64xf32>
    %210 = arith.addf %9, %209 : vector<8x64xf32>
    %c0_162 = arith.constant 0 : index
    %c0_163 = arith.constant 0 : index
    %c0_164 = arith.constant 0 : index
    %211 = vector.load %arg13[%c0_162, %c0_163, %c0_164] : memref<2x1x64xf32, #tpu.memory_space<vmem>>, vector<1x1x64xf32>
    %212 = vector.shape_cast %211 : vector<1x1x64xf32> to vector<1x64xf32>
    %213 = vector.broadcast %212 : vector<1x64xf32> to vector<8x64xf32>
    %214 = arith.addf %210, %213 : vector<8x64xf32>
    %c0_165 = arith.constant 0 : index
    %c0_166 = arith.constant 0 : index
    %c0_167 = arith.constant 0 : index
    %215 = vector.load %arg14[%c0_165, %c0_166, %c0_167] : memref<2x1x64xf32, #tpu.memory_space<vmem>>, vector<1x1x64xf32>
    %216 = vector.shape_cast %215 : vector<1x1x64xf32> to vector<1x64xf32>
    %c0_168 = arith.constant 0 : index
    %c0_169 = arith.constant 0 : index
    %c0_170 = arith.constant 0 : index
    %217 = vector.load %arg15[%c0_168, %c0_169, %c0_170] : memref<2x1x64xf32, #tpu.memory_space<vmem>>, vector<1x1x64xf32>
    %218 = vector.shape_cast %217 : vector<1x1x64xf32> to vector<1x64xf32>
    %cst_171 = arith.constant dense<0.000000e+00> : vector<8xf32>
    %219 = vector.multi_reduction <add>, %214, %cst_171 [1] : vector<8x64xf32> to vector<8xf32>
    %220 = vector.shape_cast %219 : vector<8xf32> to vector<8x1xf32>
    %cst_172 = arith.constant 6.400000e+01 : f32
    %221 = vector.broadcast %cst_172 : f32 to vector<8x1xf32>
    %222 = arith.divf %220, %221 : vector<8x1xf32>
    %223 = vector.broadcast %222 : vector<8x1xf32> to vector<8x64xf32>
    %224 = arith.subf %214, %223 : vector<8x64xf32>
    %225 = arith.mulf %224, %224 : vector<8x64xf32>
    %cst_173 = arith.constant dense<0.000000e+00> : vector<8xf32>
    %226 = vector.multi_reduction <add>, %225, %cst_173 [1] : vector<8x64xf32> to vector<8xf32>
    %227 = vector.shape_cast %226 : vector<8xf32> to vector<8x1xf32>
    %cst_174 = arith.constant 6.400000e+01 : f32
    %228 = vector.broadcast %cst_174 : f32 to vector<8x1xf32>
    %229 = arith.divf %227, %228 : vector<8x1xf32>
    %cst_175 = arith.constant 9.99999997E-7 : f32
    %230 = vector.broadcast %cst_175 : f32 to vector<8x1xf32>
    %231 = arith.addf %229, %230 : vector<8x1xf32>
    %232 = math.rsqrt %231 : vector<8x1xf32>
    %233 = vector.broadcast %232 : vector<8x1xf32> to vector<8x64xf32>
    %234 = arith.mulf %224, %233 : vector<8x64xf32>
    %235 = vector.broadcast %216 : vector<1x64xf32> to vector<8x64xf32>
    %236 = arith.mulf %234, %235 : vector<8x64xf32>
    %237 = vector.broadcast %218 : vector<1x64xf32> to vector<8x64xf32>
    %238 = arith.addf %236, %237 : vector<8x64xf32>
    %239 = arith.truncf %238 : vector<8x64xf32> to vector<8x64xbf16>
    %c0_176 = arith.constant 0 : index
    %c0_177 = arith.constant 0 : index
    %c0_178 = arith.constant 0 : index
    %240 = vector.load %arg16[%c0_176, %c0_177, %c0_178] : memref<2x64x128xbf16, #tpu.memory_space<vmem>>, vector<1x64x128xbf16>
    %241 = vector.shape_cast %240 : vector<1x64x128xbf16> to vector<64x128xbf16>
    %cst_179 = arith.constant dense<0.000000e+00> : vector<8x128xf32>
    %242 = tpu.matmul %239, %241, %cst_179 {dimension_numbers = #tpu.dot_dimension_numbers<[1], [0], [0], [1], [0, 0, 1, 1], [], []>} : vector<8x64xbf16>, vector<64x128xbf16>, vector<8x128xf32> -> vector<8x128xf32>
    %c0_180 = arith.constant 0 : index
    %c0_181 = arith.constant 0 : index
    %c0_182 = arith.constant 0 : index
    %243 = vector.load %arg17[%c0_180, %c0_181, %c0_182] : memref<2x1x128xf32, #tpu.memory_space<vmem>>, vector<1x1x128xf32>
    %244 = vector.shape_cast %243 : vector<1x1x128xf32> to vector<1x128xf32>
    %245 = vector.broadcast %244 : vector<1x128xf32> to vector<8x128xf32>
    %246 = arith.addf %242, %245 : vector<8x128xf32>
    %cst_183 = arith.constant 5.000000e-01 : f32
    %247 = vector.broadcast %cst_183 : f32 to vector<8x128xf32>
    %248 = arith.mulf %247, %246 : vector<8x128xf32>
    %cst_184 = arith.constant 0.707106769 : f32
    %249 = vector.broadcast %cst_184 : f32 to vector<8x128xf32>
    %250 = arith.mulf %246, %249 : vector<8x128xf32>
    %251 = math.erf %250 : vector<8x128xf32>
    %cst_185 = arith.constant 1.000000e+00 : f32
    %252 = vector.broadcast %cst_185 : f32 to vector<8x128xf32>
    %253 = arith.addf %252, %251 : vector<8x128xf32>
    %254 = arith.mulf %248, %253 : vector<8x128xf32>
    %255 = arith.truncf %254 : vector<8x128xf32> to vector<8x128xbf16>
    %c0_186 = arith.constant 0 : index
    %c0_187 = arith.constant 0 : index
    %c0_188 = arith.constant 0 : index
    %256 = vector.load %arg18[%c0_186, %c0_187, %c0_188] : memref<2x128x64xbf16, #tpu.memory_space<vmem>>, vector<1x128x64xbf16>
    %257 = vector.shape_cast %256 : vector<1x128x64xbf16> to vector<128x64xbf16>
    %cst_189 = arith.constant dense<0.000000e+00> : vector<8x64xf32>
    %258 = tpu.matmul %255, %257, %cst_189 {dimension_numbers = #tpu.dot_dimension_numbers<[1], [0], [0], [1], [0, 0, 1, 1], [], []>} : vector<8x128xbf16>, vector<128x64xbf16>, vector<8x64xf32> -> vector<8x64xf32>
    %c0_190 = arith.constant 0 : index
    %c0_191 = arith.constant 0 : index
    %c0_192 = arith.constant 0 : index
    %259 = vector.load %arg19[%c0_190, %c0_191, %c0_192] : memref<2x1x64xf32, #tpu.memory_space<vmem>>, vector<1x1x64xf32>
    %260 = vector.shape_cast %259 : vector<1x1x64xf32> to vector<1x64xf32>
    %261 = vector.broadcast %260 : vector<1x64xf32> to vector<8x64xf32>
    %262 = arith.addf %258, %261 : vector<8x64xf32>
    %263 = arith.addf %214, %262 : vector<8x64xf32>
    %c1_193 = arith.constant 1 : index
    %c0_194 = arith.constant 0 : index
    %c0_195 = arith.constant 0 : index
    %264 = vector.load %arg4[%c1_193, %c0_194, %c0_195] : memref<2x1x64xf32, #tpu.memory_space<vmem>>, vector<1x1x64xf32>
    %265 = vector.shape_cast %264 : vector<1x1x64xf32> to vector<1x64xf32>
    %c1_196 = arith.constant 1 : index
    %c0_197 = arith.constant 0 : index
    %c0_198 = arith.constant 0 : index
    %266 = vector.load %arg5[%c1_196, %c0_197, %c0_198] : memref<2x1x64xf32, #tpu.memory_space<vmem>>, vector<1x1x64xf32>
    %267 = vector.shape_cast %266 : vector<1x1x64xf32> to vector<1x64xf32>
    %cst_199 = arith.constant dense<0.000000e+00> : vector<8xf32>
    %268 = vector.multi_reduction <add>, %263, %cst_199 [1] : vector<8x64xf32> to vector<8xf32>
    %269 = vector.shape_cast %268 : vector<8xf32> to vector<8x1xf32>
    %cst_200 = arith.constant 6.400000e+01 : f32
    %270 = vector.broadcast %cst_200 : f32 to vector<8x1xf32>
    %271 = arith.divf %269, %270 : vector<8x1xf32>
    %272 = vector.broadcast %271 : vector<8x1xf32> to vector<8x64xf32>
    %273 = arith.subf %263, %272 : vector<8x64xf32>
    %274 = arith.mulf %273, %273 : vector<8x64xf32>
    %cst_201 = arith.constant dense<0.000000e+00> : vector<8xf32>
    %275 = vector.multi_reduction <add>, %274, %cst_201 [1] : vector<8x64xf32> to vector<8xf32>
    %276 = vector.shape_cast %275 : vector<8xf32> to vector<8x1xf32>
    %cst_202 = arith.constant 6.400000e+01 : f32
    %277 = vector.broadcast %cst_202 : f32 to vector<8x1xf32>
    %278 = arith.divf %276, %277 : vector<8x1xf32>
    %cst_203 = arith.constant 9.99999997E-7 : f32
    %279 = vector.broadcast %cst_203 : f32 to vector<8x1xf32>
    %280 = arith.addf %278, %279 : vector<8x1xf32>
    %281 = math.rsqrt %280 : vector<8x1xf32>
    %282 = vector.broadcast %281 : vector<8x1xf32> to vector<8x64xf32>
    %283 = arith.mulf %273, %282 : vector<8x64xf32>
    %284 = vector.broadcast %265 : vector<1x64xf32> to vector<8x64xf32>
    %285 = arith.mulf %283, %284 : vector<8x64xf32>
    %286 = vector.broadcast %267 : vector<1x64xf32> to vector<8x64xf32>
    %287 = arith.addf %285, %286 : vector<8x64xf32>
    %288 = arith.truncf %287 : vector<8x64xf32> to vector<8x64xbf16>
    %c1_204 = arith.constant 1 : index
    %c0_205 = arith.constant 0 : index
    %c0_206 = arith.constant 0 : index
    %c0_207 = arith.constant 0 : index
    %289 = vector.load %arg6[%c1_204, %c0_205, %c0_206, %c0_207] : memref<2x4x64x16xbf16, #tpu.memory_space<vmem>>, vector<1x1x64x16xbf16>
    %290 = vector.shape_cast %289 : vector<1x1x64x16xbf16> to vector<64x16xbf16>
    %cst_208 = arith.constant dense<0.000000e+00> : vector<8x16xf32>
    %291 = tpu.matmul %288, %290, %cst_208 {dimension_numbers = #tpu.dot_dimension_numbers<[1], [0], [0], [1], [0, 0, 1, 1], [], []>} : vector<8x64xbf16>, vector<64x16xbf16>, vector<8x16xf32> -> vector<8x16xf32>
    %c1_209 = arith.constant 1 : index
    %c0_210 = arith.constant 0 : index
    %c0_211 = arith.constant 0 : index
    %c0_212 = arith.constant 0 : index
    %292 = vector.load %arg7[%c1_209, %c0_210, %c0_211, %c0_212] : memref<2x4x1x16xf32, #tpu.memory_space<vmem>>, vector<1x1x1x16xf32>
    %293 = vector.shape_cast %292 : vector<1x1x1x16xf32> to vector<1x16xf32>
    %294 = vector.broadcast %293 : vector<1x16xf32> to vector<8x16xf32>
    %295 = arith.addf %291, %294 : vector<8x16xf32>
    %c1_213 = arith.constant 1 : index
    %c0_214 = arith.constant 0 : index
    %c0_215 = arith.constant 0 : index
    %c0_216 = arith.constant 0 : index
    %296 = vector.load %arg8[%c1_213, %c0_214, %c0_215, %c0_216] : memref<2x4x64x16xbf16, #tpu.memory_space<vmem>>, vector<1x1x64x16xbf16>
    %297 = vector.shape_cast %296 : vector<1x1x64x16xbf16> to vector<64x16xbf16>
    %cst_217 = arith.constant dense<0.000000e+00> : vector<8x16xf32>
    %298 = tpu.matmul %288, %297, %cst_217 {dimension_numbers = #tpu.dot_dimension_numbers<[1], [0], [0], [1], [0, 0, 1, 1], [], []>} : vector<8x64xbf16>, vector<64x16xbf16>, vector<8x16xf32> -> vector<8x16xf32>
    %c1_218 = arith.constant 1 : index
    %c0_219 = arith.constant 0 : index
    %c0_220 = arith.constant 0 : index
    %c0_221 = arith.constant 0 : index
    %299 = vector.load %arg9[%c1_218, %c0_219, %c0_220, %c0_221] : memref<2x4x1x16xf32, #tpu.memory_space<vmem>>, vector<1x1x1x16xf32>
    %300 = vector.shape_cast %299 : vector<1x1x1x16xf32> to vector<1x16xf32>
    %301 = vector.broadcast %300 : vector<1x16xf32> to vector<8x16xf32>
    %302 = arith.addf %298, %301 : vector<8x16xf32>
    %c1_222 = arith.constant 1 : index
    %c0_223 = arith.constant 0 : index
    %c0_224 = arith.constant 0 : index
    %c0_225 = arith.constant 0 : index
    %303 = vector.load %arg10[%c1_222, %c0_223, %c0_224, %c0_225] : memref<2x4x64x16xbf16, #tpu.memory_space<vmem>>, vector<1x1x64x16xbf16>
    %304 = vector.shape_cast %303 : vector<1x1x64x16xbf16> to vector<64x16xbf16>
    %cst_226 = arith.constant dense<0.000000e+00> : vector<8x16xf32>
    %305 = tpu.matmul %288, %304, %cst_226 {dimension_numbers = #tpu.dot_dimension_numbers<[1], [0], [0], [1], [0, 0, 1, 1], [], []>} : vector<8x64xbf16>, vector<64x16xbf16>, vector<8x16xf32> -> vector<8x16xf32>
    %c1_227 = arith.constant 1 : index
    %c0_228 = arith.constant 0 : index
    %c0_229 = arith.constant 0 : index
    %c0_230 = arith.constant 0 : index
    %306 = vector.load %arg11[%c1_227, %c0_228, %c0_229, %c0_230] : memref<2x4x1x16xf32, #tpu.memory_space<vmem>>, vector<1x1x1x16xf32>
    %307 = vector.shape_cast %306 : vector<1x1x1x16xf32> to vector<1x16xf32>
    %308 = vector.broadcast %307 : vector<1x16xf32> to vector<8x16xf32>
    %309 = arith.addf %305, %308 : vector<8x16xf32>
    %310 = arith.truncf %295 : vector<8x16xf32> to vector<8x16xbf16>
    %311 = arith.truncf %302 : vector<8x16xf32> to vector<8x16xbf16>
    %cst_231 = arith.constant dense<0.000000e+00> : vector<8x8xf32>
    %312 = tpu.matmul %310, %311, %cst_231 {dimension_numbers = #tpu.dot_dimension_numbers<[1], [1], [0], [0], [0, 0, 1, 0], [], []>} : vector<8x16xbf16>, vector<8x16xbf16>, vector<8x8xf32> -> vector<8x8xf32>
    %cst_232 = arith.constant -1.000000e+30 : f32
    %313 = vector.broadcast %cst_232 : f32 to vector<8x8xf32>
    %314 = arith.select %2, %312, %313 : vector<8x8xi1>, vector<8x8xf32>
    %cst_233 = arith.constant dense<0xFF800000> : vector<8xf32>
    %315 = vector.multi_reduction <maximumf>, %314, %cst_233 [1] : vector<8x8xf32> to vector<8xf32>
    %316 = vector.shape_cast %315 : vector<8xf32> to vector<8x1xf32>
    %317 = vector.broadcast %316 : vector<8x1xf32> to vector<8x8xf32>
    %318 = arith.subf %314, %317 : vector<8x8xf32>
    %319 = math.exp %318 : vector<8x8xf32>
    %cst_234 = arith.constant dense<0.000000e+00> : vector<8xf32>
    %320 = vector.multi_reduction <add>, %319, %cst_234 [1] : vector<8x8xf32> to vector<8xf32>
    %321 = vector.shape_cast %320 : vector<8xf32> to vector<8x1xf32>
    %322 = tpu.reciprocal %321 {approx = true} : vector<8x1xf32> -> vector<8x1xf32>
    %323 = vector.broadcast %322 : vector<8x1xf32> to vector<8x8xf32>
    %324 = arith.mulf %319, %323 : vector<8x8xf32>
    %325 = arith.truncf %324 : vector<8x8xf32> to vector<8x8xbf16>
    %326 = arith.truncf %309 : vector<8x16xf32> to vector<8x16xbf16>
    %cst_235 = arith.constant dense<0.000000e+00> : vector<8x16xf32>
    %327 = tpu.matmul %325, %326, %cst_235 {dimension_numbers = #tpu.dot_dimension_numbers<[1], [0], [0], [1], [0, 0, 1, 1], [], []>} : vector<8x8xbf16>, vector<8x16xbf16>, vector<8x16xf32> -> vector<8x16xf32>
    %328 = arith.truncf %327 : vector<8x16xf32> to vector<8x16xbf16>
    %c1_236 = arith.constant 1 : index
    %c0_237 = arith.constant 0 : index
    %c0_238 = arith.constant 0 : index
    %c0_239 = arith.constant 0 : index
    %329 = vector.load %arg12[%c1_236, %c0_237, %c0_238, %c0_239] : memref<2x4x16x64xbf16, #tpu.memory_space<vmem>>, vector<1x1x16x64xbf16>
    %330 = vector.shape_cast %329 : vector<1x1x16x64xbf16> to vector<16x64xbf16>
    %cst_240 = arith.constant dense<0.000000e+00> : vector<8x64xf32>
    %331 = tpu.matmul %328, %330, %cst_240 {dimension_numbers = #tpu.dot_dimension_numbers<[1], [0], [0], [1], [0, 0, 1, 1], [], []>} : vector<8x16xbf16>, vector<16x64xbf16>, vector<8x64xf32> -> vector<8x64xf32>
    %c1_241 = arith.constant 1 : index
    %c1_242 = arith.constant 1 : index
    %c0_243 = arith.constant 0 : index
    %c0_244 = arith.constant 0 : index
    %332 = vector.load %arg6[%c1_241, %c1_242, %c0_243, %c0_244] : memref<2x4x64x16xbf16, #tpu.memory_space<vmem>>, vector<1x1x64x16xbf16>
    %333 = vector.shape_cast %332 : vector<1x1x64x16xbf16> to vector<64x16xbf16>
    %cst_245 = arith.constant dense<0.000000e+00> : vector<8x16xf32>
    %334 = tpu.matmul %288, %333, %cst_245 {dimension_numbers = #tpu.dot_dimension_numbers<[1], [0], [0], [1], [0, 0, 1, 1], [], []>} : vector<8x64xbf16>, vector<64x16xbf16>, vector<8x16xf32> -> vector<8x16xf32>
    %c1_246 = arith.constant 1 : index
    %c1_247 = arith.constant 1 : index
    %c0_248 = arith.constant 0 : index
    %c0_249 = arith.constant 0 : index
    %335 = vector.load %arg7[%c1_246, %c1_247, %c0_248, %c0_249] : memref<2x4x1x16xf32, #tpu.memory_space<vmem>>, vector<1x1x1x16xf32>
    %336 = vector.shape_cast %335 : vector<1x1x1x16xf32> to vector<1x16xf32>
    %337 = vector.broadcast %336 : vector<1x16xf32> to vector<8x16xf32>
    %338 = arith.addf %334, %337 : vector<8x16xf32>
    %c1_250 = arith.constant 1 : index
    %c1_251 = arith.constant 1 : index
    %c0_252 = arith.constant 0 : index
    %c0_253 = arith.constant 0 : index
    %339 = vector.load %arg8[%c1_250, %c1_251, %c0_252, %c0_253] : memref<2x4x64x16xbf16, #tpu.memory_space<vmem>>, vector<1x1x64x16xbf16>
    %340 = vector.shape_cast %339 : vector<1x1x64x16xbf16> to vector<64x16xbf16>
    %cst_254 = arith.constant dense<0.000000e+00> : vector<8x16xf32>
    %341 = tpu.matmul %288, %340, %cst_254 {dimension_numbers = #tpu.dot_dimension_numbers<[1], [0], [0], [1], [0, 0, 1, 1], [], []>} : vector<8x64xbf16>, vector<64x16xbf16>, vector<8x16xf32> -> vector<8x16xf32>
    %c1_255 = arith.constant 1 : index
    %c1_256 = arith.constant 1 : index
    %c0_257 = arith.constant 0 : index
    %c0_258 = arith.constant 0 : index
    %342 = vector.load %arg9[%c1_255, %c1_256, %c0_257, %c0_258] : memref<2x4x1x16xf32, #tpu.memory_space<vmem>>, vector<1x1x1x16xf32>
    %343 = vector.shape_cast %342 : vector<1x1x1x16xf32> to vector<1x16xf32>
    %344 = vector.broadcast %343 : vector<1x16xf32> to vector<8x16xf32>
    %345 = arith.addf %341, %344 : vector<8x16xf32>
    %c1_259 = arith.constant 1 : index
    %c1_260 = arith.constant 1 : index
    %c0_261 = arith.constant 0 : index
    %c0_262 = arith.constant 0 : index
    %346 = vector.load %arg10[%c1_259, %c1_260, %c0_261, %c0_262] : memref<2x4x64x16xbf16, #tpu.memory_space<vmem>>, vector<1x1x64x16xbf16>
    %347 = vector.shape_cast %346 : vector<1x1x64x16xbf16> to vector<64x16xbf16>
    %cst_263 = arith.constant dense<0.000000e+00> : vector<8x16xf32>
    %348 = tpu.matmul %288, %347, %cst_263 {dimension_numbers = #tpu.dot_dimension_numbers<[1], [0], [0], [1], [0, 0, 1, 1], [], []>} : vector<8x64xbf16>, vector<64x16xbf16>, vector<8x16xf32> -> vector<8x16xf32>
    %c1_264 = arith.constant 1 : index
    %c1_265 = arith.constant 1 : index
    %c0_266 = arith.constant 0 : index
    %c0_267 = arith.constant 0 : index
    %349 = vector.load %arg11[%c1_264, %c1_265, %c0_266, %c0_267] : memref<2x4x1x16xf32, #tpu.memory_space<vmem>>, vector<1x1x1x16xf32>
    %350 = vector.shape_cast %349 : vector<1x1x1x16xf32> to vector<1x16xf32>
    %351 = vector.broadcast %350 : vector<1x16xf32> to vector<8x16xf32>
    %352 = arith.addf %348, %351 : vector<8x16xf32>
    %353 = arith.truncf %338 : vector<8x16xf32> to vector<8x16xbf16>
    %354 = arith.truncf %345 : vector<8x16xf32> to vector<8x16xbf16>
    %cst_268 = arith.constant dense<0.000000e+00> : vector<8x8xf32>
    %355 = tpu.matmul %353, %354, %cst_268 {dimension_numbers = #tpu.dot_dimension_numbers<[1], [1], [0], [0], [0, 0, 1, 0], [], []>} : vector<8x16xbf16>, vector<8x16xbf16>, vector<8x8xf32> -> vector<8x8xf32>
    %cst_269 = arith.constant -1.000000e+30 : f32
    %356 = vector.broadcast %cst_269 : f32 to vector<8x8xf32>
    %357 = arith.select %2, %355, %356 : vector<8x8xi1>, vector<8x8xf32>
    %cst_270 = arith.constant dense<0xFF800000> : vector<8xf32>
    %358 = vector.multi_reduction <maximumf>, %357, %cst_270 [1] : vector<8x8xf32> to vector<8xf32>
    %359 = vector.shape_cast %358 : vector<8xf32> to vector<8x1xf32>
    %360 = vector.broadcast %359 : vector<8x1xf32> to vector<8x8xf32>
    %361 = arith.subf %357, %360 : vector<8x8xf32>
    %362 = math.exp %361 : vector<8x8xf32>
    %cst_271 = arith.constant dense<0.000000e+00> : vector<8xf32>
    %363 = vector.multi_reduction <add>, %362, %cst_271 [1] : vector<8x8xf32> to vector<8xf32>
    %364 = vector.shape_cast %363 : vector<8xf32> to vector<8x1xf32>
    %365 = tpu.reciprocal %364 {approx = true} : vector<8x1xf32> -> vector<8x1xf32>
    %366 = vector.broadcast %365 : vector<8x1xf32> to vector<8x8xf32>
    %367 = arith.mulf %362, %366 : vector<8x8xf32>
    %368 = arith.truncf %367 : vector<8x8xf32> to vector<8x8xbf16>
    %369 = arith.truncf %352 : vector<8x16xf32> to vector<8x16xbf16>
    %cst_272 = arith.constant dense<0.000000e+00> : vector<8x16xf32>
    %370 = tpu.matmul %368, %369, %cst_272 {dimension_numbers = #tpu.dot_dimension_numbers<[1], [0], [0], [1], [0, 0, 1, 1], [], []>} : vector<8x8xbf16>, vector<8x16xbf16>, vector<8x16xf32> -> vector<8x16xf32>
    %371 = arith.truncf %370 : vector<8x16xf32> to vector<8x16xbf16>
    %c1_273 = arith.constant 1 : index
    %c1_274 = arith.constant 1 : index
    %c0_275 = arith.constant 0 : index
    %c0_276 = arith.constant 0 : index
    %372 = vector.load %arg12[%c1_273, %c1_274, %c0_275, %c0_276] : memref<2x4x16x64xbf16, #tpu.memory_space<vmem>>, vector<1x1x16x64xbf16>
    %373 = vector.shape_cast %372 : vector<1x1x16x64xbf16> to vector<16x64xbf16>
    %cst_277 = arith.constant dense<0.000000e+00> : vector<8x64xf32>
    %374 = tpu.matmul %371, %373, %cst_277 {dimension_numbers = #tpu.dot_dimension_numbers<[1], [0], [0], [1], [0, 0, 1, 1], [], []>} : vector<8x16xbf16>, vector<16x64xbf16>, vector<8x64xf32> -> vector<8x64xf32>
    %375 = arith.addf %331, %374 : vector<8x64xf32>
    %c1_278 = arith.constant 1 : index
    %c2_279 = arith.constant 2 : index
    %c0_280 = arith.constant 0 : index
    %c0_281 = arith.constant 0 : index
    %376 = vector.load %arg6[%c1_278, %c2_279, %c0_280, %c0_281] : memref<2x4x64x16xbf16, #tpu.memory_space<vmem>>, vector<1x1x64x16xbf16>
    %377 = vector.shape_cast %376 : vector<1x1x64x16xbf16> to vector<64x16xbf16>
    %cst_282 = arith.constant dense<0.000000e+00> : vector<8x16xf32>
    %378 = tpu.matmul %288, %377, %cst_282 {dimension_numbers = #tpu.dot_dimension_numbers<[1], [0], [0], [1], [0, 0, 1, 1], [], []>} : vector<8x64xbf16>, vector<64x16xbf16>, vector<8x16xf32> -> vector<8x16xf32>
    %c1_283 = arith.constant 1 : index
    %c2_284 = arith.constant 2 : index
    %c0_285 = arith.constant 0 : index
    %c0_286 = arith.constant 0 : index
    %379 = vector.load %arg7[%c1_283, %c2_284, %c0_285, %c0_286] : memref<2x4x1x16xf32, #tpu.memory_space<vmem>>, vector<1x1x1x16xf32>
    %380 = vector.shape_cast %379 : vector<1x1x1x16xf32> to vector<1x16xf32>
    %381 = vector.broadcast %380 : vector<1x16xf32> to vector<8x16xf32>
    %382 = arith.addf %378, %381 : vector<8x16xf32>
    %c1_287 = arith.constant 1 : index
    %c2_288 = arith.constant 2 : index
    %c0_289 = arith.constant 0 : index
    %c0_290 = arith.constant 0 : index
    %383 = vector.load %arg8[%c1_287, %c2_288, %c0_289, %c0_290] : memref<2x4x64x16xbf16, #tpu.memory_space<vmem>>, vector<1x1x64x16xbf16>
    %384 = vector.shape_cast %383 : vector<1x1x64x16xbf16> to vector<64x16xbf16>
    %cst_291 = arith.constant dense<0.000000e+00> : vector<8x16xf32>
    %385 = tpu.matmul %288, %384, %cst_291 {dimension_numbers = #tpu.dot_dimension_numbers<[1], [0], [0], [1], [0, 0, 1, 1], [], []>} : vector<8x64xbf16>, vector<64x16xbf16>, vector<8x16xf32> -> vector<8x16xf32>
    %c1_292 = arith.constant 1 : index
    %c2_293 = arith.constant 2 : index
    %c0_294 = arith.constant 0 : index
    %c0_295 = arith.constant 0 : index
    %386 = vector.load %arg9[%c1_292, %c2_293, %c0_294, %c0_295] : memref<2x4x1x16xf32, #tpu.memory_space<vmem>>, vector<1x1x1x16xf32>
    %387 = vector.shape_cast %386 : vector<1x1x1x16xf32> to vector<1x16xf32>
    %388 = vector.broadcast %387 : vector<1x16xf32> to vector<8x16xf32>
    %389 = arith.addf %385, %388 : vector<8x16xf32>
    %c1_296 = arith.constant 1 : index
    %c2_297 = arith.constant 2 : index
    %c0_298 = arith.constant 0 : index
    %c0_299 = arith.constant 0 : index
    %390 = vector.load %arg10[%c1_296, %c2_297, %c0_298, %c0_299] : memref<2x4x64x16xbf16, #tpu.memory_space<vmem>>, vector<1x1x64x16xbf16>
    %391 = vector.shape_cast %390 : vector<1x1x64x16xbf16> to vector<64x16xbf16>
    %cst_300 = arith.constant dense<0.000000e+00> : vector<8x16xf32>
    %392 = tpu.matmul %288, %391, %cst_300 {dimension_numbers = #tpu.dot_dimension_numbers<[1], [0], [0], [1], [0, 0, 1, 1], [], []>} : vector<8x64xbf16>, vector<64x16xbf16>, vector<8x16xf32> -> vector<8x16xf32>
    %c1_301 = arith.constant 1 : index
    %c2_302 = arith.constant 2 : index
    %c0_303 = arith.constant 0 : index
    %c0_304 = arith.constant 0 : index
    %393 = vector.load %arg11[%c1_301, %c2_302, %c0_303, %c0_304] : memref<2x4x1x16xf32, #tpu.memory_space<vmem>>, vector<1x1x1x16xf32>
    %394 = vector.shape_cast %393 : vector<1x1x1x16xf32> to vector<1x16xf32>
    %395 = vector.broadcast %394 : vector<1x16xf32> to vector<8x16xf32>
    %396 = arith.addf %392, %395 : vector<8x16xf32>
    %397 = arith.truncf %382 : vector<8x16xf32> to vector<8x16xbf16>
    %398 = arith.truncf %389 : vector<8x16xf32> to vector<8x16xbf16>
    %cst_305 = arith.constant dense<0.000000e+00> : vector<8x8xf32>
    %399 = tpu.matmul %397, %398, %cst_305 {dimension_numbers = #tpu.dot_dimension_numbers<[1], [1], [0], [0], [0, 0, 1, 0], [], []>} : vector<8x16xbf16>, vector<8x16xbf16>, vector<8x8xf32> -> vector<8x8xf32>
    %cst_306 = arith.constant -1.000000e+30 : f32
    %400 = vector.broadcast %cst_306 : f32 to vector<8x8xf32>
    %401 = arith.select %2, %399, %400 : vector<8x8xi1>, vector<8x8xf32>
    %cst_307 = arith.constant dense<0xFF800000> : vector<8xf32>
    %402 = vector.multi_reduction <maximumf>, %401, %cst_307 [1] : vector<8x8xf32> to vector<8xf32>
    %403 = vector.shape_cast %402 : vector<8xf32> to vector<8x1xf32>
    %404 = vector.broadcast %403 : vector<8x1xf32> to vector<8x8xf32>
    %405 = arith.subf %401, %404 : vector<8x8xf32>
    %406 = math.exp %405 : vector<8x8xf32>
    %cst_308 = arith.constant dense<0.000000e+00> : vector<8xf32>
    %407 = vector.multi_reduction <add>, %406, %cst_308 [1] : vector<8x8xf32> to vector<8xf32>
    %408 = vector.shape_cast %407 : vector<8xf32> to vector<8x1xf32>
    %409 = tpu.reciprocal %408 {approx = true} : vector<8x1xf32> -> vector<8x1xf32>
    %410 = vector.broadcast %409 : vector<8x1xf32> to vector<8x8xf32>
    %411 = arith.mulf %406, %410 : vector<8x8xf32>
    %412 = arith.truncf %411 : vector<8x8xf32> to vector<8x8xbf16>
    %413 = arith.truncf %396 : vector<8x16xf32> to vector<8x16xbf16>
    %cst_309 = arith.constant dense<0.000000e+00> : vector<8x16xf32>
    %414 = tpu.matmul %412, %413, %cst_309 {dimension_numbers = #tpu.dot_dimension_numbers<[1], [0], [0], [1], [0, 0, 1, 1], [], []>} : vector<8x8xbf16>, vector<8x16xbf16>, vector<8x16xf32> -> vector<8x16xf32>
    %415 = arith.truncf %414 : vector<8x16xf32> to vector<8x16xbf16>
    %c1_310 = arith.constant 1 : index
    %c2_311 = arith.constant 2 : index
    %c0_312 = arith.constant 0 : index
    %c0_313 = arith.constant 0 : index
    %416 = vector.load %arg12[%c1_310, %c2_311, %c0_312, %c0_313] : memref<2x4x16x64xbf16, #tpu.memory_space<vmem>>, vector<1x1x16x64xbf16>
    %417 = vector.shape_cast %416 : vector<1x1x16x64xbf16> to vector<16x64xbf16>
    %cst_314 = arith.constant dense<0.000000e+00> : vector<8x64xf32>
    %418 = tpu.matmul %415, %417, %cst_314 {dimension_numbers = #tpu.dot_dimension_numbers<[1], [0], [0], [1], [0, 0, 1, 1], [], []>} : vector<8x16xbf16>, vector<16x64xbf16>, vector<8x64xf32> -> vector<8x64xf32>
    %419 = arith.addf %375, %418 : vector<8x64xf32>
    %c1_315 = arith.constant 1 : index
    %c3_316 = arith.constant 3 : index
    %c0_317 = arith.constant 0 : index
    %c0_318 = arith.constant 0 : index
    %420 = vector.load %arg6[%c1_315, %c3_316, %c0_317, %c0_318] : memref<2x4x64x16xbf16, #tpu.memory_space<vmem>>, vector<1x1x64x16xbf16>
    %421 = vector.shape_cast %420 : vector<1x1x64x16xbf16> to vector<64x16xbf16>
    %cst_319 = arith.constant dense<0.000000e+00> : vector<8x16xf32>
    %422 = tpu.matmul %288, %421, %cst_319 {dimension_numbers = #tpu.dot_dimension_numbers<[1], [0], [0], [1], [0, 0, 1, 1], [], []>} : vector<8x64xbf16>, vector<64x16xbf16>, vector<8x16xf32> -> vector<8x16xf32>
    %c1_320 = arith.constant 1 : index
    %c3_321 = arith.constant 3 : index
    %c0_322 = arith.constant 0 : index
    %c0_323 = arith.constant 0 : index
    %423 = vector.load %arg7[%c1_320, %c3_321, %c0_322, %c0_323] : memref<2x4x1x16xf32, #tpu.memory_space<vmem>>, vector<1x1x1x16xf32>
    %424 = vector.shape_cast %423 : vector<1x1x1x16xf32> to vector<1x16xf32>
    %425 = vector.broadcast %424 : vector<1x16xf32> to vector<8x16xf32>
    %426 = arith.addf %422, %425 : vector<8x16xf32>
    %c1_324 = arith.constant 1 : index
    %c3_325 = arith.constant 3 : index
    %c0_326 = arith.constant 0 : index
    %c0_327 = arith.constant 0 : index
    %427 = vector.load %arg8[%c1_324, %c3_325, %c0_326, %c0_327] : memref<2x4x64x16xbf16, #tpu.memory_space<vmem>>, vector<1x1x64x16xbf16>
    %428 = vector.shape_cast %427 : vector<1x1x64x16xbf16> to vector<64x16xbf16>
    %cst_328 = arith.constant dense<0.000000e+00> : vector<8x16xf32>
    %429 = tpu.matmul %288, %428, %cst_328 {dimension_numbers = #tpu.dot_dimension_numbers<[1], [0], [0], [1], [0, 0, 1, 1], [], []>} : vector<8x64xbf16>, vector<64x16xbf16>, vector<8x16xf32> -> vector<8x16xf32>
    %c1_329 = arith.constant 1 : index
    %c3_330 = arith.constant 3 : index
    %c0_331 = arith.constant 0 : index
    %c0_332 = arith.constant 0 : index
    %430 = vector.load %arg9[%c1_329, %c3_330, %c0_331, %c0_332] : memref<2x4x1x16xf32, #tpu.memory_space<vmem>>, vector<1x1x1x16xf32>
    %431 = vector.shape_cast %430 : vector<1x1x1x16xf32> to vector<1x16xf32>
    %432 = vector.broadcast %431 : vector<1x16xf32> to vector<8x16xf32>
    %433 = arith.addf %429, %432 : vector<8x16xf32>
    %c1_333 = arith.constant 1 : index
    %c3_334 = arith.constant 3 : index
    %c0_335 = arith.constant 0 : index
    %c0_336 = arith.constant 0 : index
    %434 = vector.load %arg10[%c1_333, %c3_334, %c0_335, %c0_336] : memref<2x4x64x16xbf16, #tpu.memory_space<vmem>>, vector<1x1x64x16xbf16>
    %435 = vector.shape_cast %434 : vector<1x1x64x16xbf16> to vector<64x16xbf16>
    %cst_337 = arith.constant dense<0.000000e+00> : vector<8x16xf32>
    %436 = tpu.matmul %288, %435, %cst_337 {dimension_numbers = #tpu.dot_dimension_numbers<[1], [0], [0], [1], [0, 0, 1, 1], [], []>} : vector<8x64xbf16>, vector<64x16xbf16>, vector<8x16xf32> -> vector<8x16xf32>
    %c1_338 = arith.constant 1 : index
    %c3_339 = arith.constant 3 : index
    %c0_340 = arith.constant 0 : index
    %c0_341 = arith.constant 0 : index
    %437 = vector.load %arg11[%c1_338, %c3_339, %c0_340, %c0_341] : memref<2x4x1x16xf32, #tpu.memory_space<vmem>>, vector<1x1x1x16xf32>
    %438 = vector.shape_cast %437 : vector<1x1x1x16xf32> to vector<1x16xf32>
    %439 = vector.broadcast %438 : vector<1x16xf32> to vector<8x16xf32>
    %440 = arith.addf %436, %439 : vector<8x16xf32>
    %441 = arith.truncf %426 : vector<8x16xf32> to vector<8x16xbf16>
    %442 = arith.truncf %433 : vector<8x16xf32> to vector<8x16xbf16>
    %cst_342 = arith.constant dense<0.000000e+00> : vector<8x8xf32>
    %443 = tpu.matmul %441, %442, %cst_342 {dimension_numbers = #tpu.dot_dimension_numbers<[1], [1], [0], [0], [0, 0, 1, 0], [], []>} : vector<8x16xbf16>, vector<8x16xbf16>, vector<8x8xf32> -> vector<8x8xf32>
    %cst_343 = arith.constant -1.000000e+30 : f32
    %444 = vector.broadcast %cst_343 : f32 to vector<8x8xf32>
    %445 = arith.select %2, %443, %444 : vector<8x8xi1>, vector<8x8xf32>
    %cst_344 = arith.constant dense<0xFF800000> : vector<8xf32>
    %446 = vector.multi_reduction <maximumf>, %445, %cst_344 [1] : vector<8x8xf32> to vector<8xf32>
    %447 = vector.shape_cast %446 : vector<8xf32> to vector<8x1xf32>
    %448 = vector.broadcast %447 : vector<8x1xf32> to vector<8x8xf32>
    %449 = arith.subf %445, %448 : vector<8x8xf32>
    %450 = math.exp %449 : vector<8x8xf32>
    %cst_345 = arith.constant dense<0.000000e+00> : vector<8xf32>
    %451 = vector.multi_reduction <add>, %450, %cst_345 [1] : vector<8x8xf32> to vector<8xf32>
    %452 = vector.shape_cast %451 : vector<8xf32> to vector<8x1xf32>
    %453 = tpu.reciprocal %452 {approx = true} : vector<8x1xf32> -> vector<8x1xf32>
    %454 = vector.broadcast %453 : vector<8x1xf32> to vector<8x8xf32>
    %455 = arith.mulf %450, %454 : vector<8x8xf32>
    %456 = arith.truncf %455 : vector<8x8xf32> to vector<8x8xbf16>
    %457 = arith.truncf %440 : vector<8x16xf32> to vector<8x16xbf16>
    %cst_346 = arith.constant dense<0.000000e+00> : vector<8x16xf32>
    %458 = tpu.matmul %456, %457, %cst_346 {dimension_numbers = #tpu.dot_dimension_numbers<[1], [0], [0], [1], [0, 0, 1, 1], [], []>} : vector<8x8xbf16>, vector<8x16xbf16>, vector<8x16xf32> -> vector<8x16xf32>
    %459 = arith.truncf %458 : vector<8x16xf32> to vector<8x16xbf16>
    %c1_347 = arith.constant 1 : index
    %c3_348 = arith.constant 3 : index
    %c0_349 = arith.constant 0 : index
    %c0_350 = arith.constant 0 : index
    %460 = vector.load %arg12[%c1_347, %c3_348, %c0_349, %c0_350] : memref<2x4x16x64xbf16, #tpu.memory_space<vmem>>, vector<1x1x16x64xbf16>
    %461 = vector.shape_cast %460 : vector<1x1x16x64xbf16> to vector<16x64xbf16>
    %cst_351 = arith.constant dense<0.000000e+00> : vector<8x64xf32>
    %462 = tpu.matmul %459, %461, %cst_351 {dimension_numbers = #tpu.dot_dimension_numbers<[1], [0], [0], [1], [0, 0, 1, 1], [], []>} : vector<8x16xbf16>, vector<16x64xbf16>, vector<8x64xf32> -> vector<8x64xf32>
    %463 = arith.addf %419, %462 : vector<8x64xf32>
    %464 = arith.addf %263, %463 : vector<8x64xf32>
    %c1_352 = arith.constant 1 : index
    %c0_353 = arith.constant 0 : index
    %c0_354 = arith.constant 0 : index
    %465 = vector.load %arg13[%c1_352, %c0_353, %c0_354] : memref<2x1x64xf32, #tpu.memory_space<vmem>>, vector<1x1x64xf32>
    %466 = vector.shape_cast %465 : vector<1x1x64xf32> to vector<1x64xf32>
    %467 = vector.broadcast %466 : vector<1x64xf32> to vector<8x64xf32>
    %468 = arith.addf %464, %467 : vector<8x64xf32>
    %c1_355 = arith.constant 1 : index
    %c0_356 = arith.constant 0 : index
    %c0_357 = arith.constant 0 : index
    %469 = vector.load %arg14[%c1_355, %c0_356, %c0_357] : memref<2x1x64xf32, #tpu.memory_space<vmem>>, vector<1x1x64xf32>
    %470 = vector.shape_cast %469 : vector<1x1x64xf32> to vector<1x64xf32>
    %c1_358 = arith.constant 1 : index
    %c0_359 = arith.constant 0 : index
    %c0_360 = arith.constant 0 : index
    %471 = vector.load %arg15[%c1_358, %c0_359, %c0_360] : memref<2x1x64xf32, #tpu.memory_space<vmem>>, vector<1x1x64xf32>
    %472 = vector.shape_cast %471 : vector<1x1x64xf32> to vector<1x64xf32>
    %cst_361 = arith.constant dense<0.000000e+00> : vector<8xf32>
    %473 = vector.multi_reduction <add>, %468, %cst_361 [1] : vector<8x64xf32> to vector<8xf32>
    %474 = vector.shape_cast %473 : vector<8xf32> to vector<8x1xf32>
    %cst_362 = arith.constant 6.400000e+01 : f32
    %475 = vector.broadcast %cst_362 : f32 to vector<8x1xf32>
    %476 = arith.divf %474, %475 : vector<8x1xf32>
    %477 = vector.broadcast %476 : vector<8x1xf32> to vector<8x64xf32>
    %478 = arith.subf %468, %477 : vector<8x64xf32>
    %479 = arith.mulf %478, %478 : vector<8x64xf32>
    %cst_363 = arith.constant dense<0.000000e+00> : vector<8xf32>
    %480 = vector.multi_reduction <add>, %479, %cst_363 [1] : vector<8x64xf32> to vector<8xf32>
    %481 = vector.shape_cast %480 : vector<8xf32> to vector<8x1xf32>
    %cst_364 = arith.constant 6.400000e+01 : f32
    %482 = vector.broadcast %cst_364 : f32 to vector<8x1xf32>
    %483 = arith.divf %481, %482 : vector<8x1xf32>
    %cst_365 = arith.constant 9.99999997E-7 : f32
    %484 = vector.broadcast %cst_365 : f32 to vector<8x1xf32>
    %485 = arith.addf %483, %484 : vector<8x1xf32>
    %486 = math.rsqrt %485 : vector<8x1xf32>
    %487 = vector.broadcast %486 : vector<8x1xf32> to vector<8x64xf32>
    %488 = arith.mulf %478, %487 : vector<8x64xf32>
    %489 = vector.broadcast %470 : vector<1x64xf32> to vector<8x64xf32>
    %490 = arith.mulf %488, %489 : vector<8x64xf32>
    %491 = vector.broadcast %472 : vector<1x64xf32> to vector<8x64xf32>
    %492 = arith.addf %490, %491 : vector<8x64xf32>
    %493 = arith.truncf %492 : vector<8x64xf32> to vector<8x64xbf16>
    %c1_366 = arith.constant 1 : index
    %c0_367 = arith.constant 0 : index
    %c0_368 = arith.constant 0 : index
    %494 = vector.load %arg16[%c1_366, %c0_367, %c0_368] : memref<2x64x128xbf16, #tpu.memory_space<vmem>>, vector<1x64x128xbf16>
    %495 = vector.shape_cast %494 : vector<1x64x128xbf16> to vector<64x128xbf16>
    %cst_369 = arith.constant dense<0.000000e+00> : vector<8x128xf32>
    %496 = tpu.matmul %493, %495, %cst_369 {dimension_numbers = #tpu.dot_dimension_numbers<[1], [0], [0], [1], [0, 0, 1, 1], [], []>} : vector<8x64xbf16>, vector<64x128xbf16>, vector<8x128xf32> -> vector<8x128xf32>
    %c1_370 = arith.constant 1 : index
    %c0_371 = arith.constant 0 : index
    %c0_372 = arith.constant 0 : index
    %497 = vector.load %arg17[%c1_370, %c0_371, %c0_372] : memref<2x1x128xf32, #tpu.memory_space<vmem>>, vector<1x1x128xf32>
    %498 = vector.shape_cast %497 : vector<1x1x128xf32> to vector<1x128xf32>
    %499 = vector.broadcast %498 : vector<1x128xf32> to vector<8x128xf32>
    %500 = arith.addf %496, %499 : vector<8x128xf32>
    %cst_373 = arith.constant 5.000000e-01 : f32
    %501 = vector.broadcast %cst_373 : f32 to vector<8x128xf32>
    %502 = arith.mulf %501, %500 : vector<8x128xf32>
    %cst_374 = arith.constant 0.707106769 : f32
    %503 = vector.broadcast %cst_374 : f32 to vector<8x128xf32>
    %504 = arith.mulf %500, %503 : vector<8x128xf32>
    %505 = math.erf %504 : vector<8x128xf32>
    %cst_375 = arith.constant 1.000000e+00 : f32
    %506 = vector.broadcast %cst_375 : f32 to vector<8x128xf32>
    %507 = arith.addf %506, %505 : vector<8x128xf32>
    %508 = arith.mulf %502, %507 : vector<8x128xf32>
    %509 = arith.truncf %508 : vector<8x128xf32> to vector<8x128xbf16>
    %c1_376 = arith.constant 1 : index
    %c0_377 = arith.constant 0 : index
    %c0_378 = arith.constant 0 : index
    %510 = vector.load %arg18[%c1_376, %c0_377, %c0_378] : memref<2x128x64xbf16, #tpu.memory_space<vmem>>, vector<1x128x64xbf16>
    %511 = vector.shape_cast %510 : vector<1x128x64xbf16> to vector<128x64xbf16>
    %cst_379 = arith.constant dense<0.000000e+00> : vector<8x64xf32>
    %512 = tpu.matmul %509, %511, %cst_379 {dimension_numbers = #tpu.dot_dimension_numbers<[1], [0], [0], [1], [0, 0, 1, 1], [], []>} : vector<8x128xbf16>, vector<128x64xbf16>, vector<8x64xf32> -> vector<8x64xf32>
    %c1_380 = arith.constant 1 : index
    %c0_381 = arith.constant 0 : index
    %c0_382 = arith.constant 0 : index
    %513 = vector.load %arg19[%c1_380, %c0_381, %c0_382] : memref<2x1x64xf32, #tpu.memory_space<vmem>>, vector<1x1x64xf32>
    %514 = vector.shape_cast %513 : vector<1x1x64xf32> to vector<1x64xf32>
    %515 = vector.broadcast %514 : vector<1x64xf32> to vector<8x64xf32>
    %516 = arith.addf %512, %515 : vector<8x64xf32>
    %517 = arith.addf %468, %516 : vector<8x64xf32>
    %c0_383 = arith.constant 0 : index
    %c0_384 = arith.constant 0 : index
    %518 = vector.load %arg20[%c0_383, %c0_384] : memref<1x64xf32, #tpu.memory_space<vmem>>, vector<1x64xf32>
    %c0_385 = arith.constant 0 : index
    %c0_386 = arith.constant 0 : index
    %519 = vector.load %arg21[%c0_385, %c0_386] : memref<1x64xf32, #tpu.memory_space<vmem>>, vector<1x64xf32>
    %cst_387 = arith.constant dense<0.000000e+00> : vector<8xf32>
    %520 = vector.multi_reduction <add>, %517, %cst_387 [1] : vector<8x64xf32> to vector<8xf32>
    %521 = vector.shape_cast %520 : vector<8xf32> to vector<8x1xf32>
    %cst_388 = arith.constant 6.400000e+01 : f32
    %522 = vector.broadcast %cst_388 : f32 to vector<8x1xf32>
    %523 = arith.divf %521, %522 : vector<8x1xf32>
    %524 = vector.broadcast %523 : vector<8x1xf32> to vector<8x64xf32>
    %525 = arith.subf %517, %524 : vector<8x64xf32>
    %526 = arith.mulf %525, %525 : vector<8x64xf32>
    %cst_389 = arith.constant dense<0.000000e+00> : vector<8xf32>
    %527 = vector.multi_reduction <add>, %526, %cst_389 [1] : vector<8x64xf32> to vector<8xf32>
    %528 = vector.shape_cast %527 : vector<8xf32> to vector<8x1xf32>
    %cst_390 = arith.constant 6.400000e+01 : f32
    %529 = vector.broadcast %cst_390 : f32 to vector<8x1xf32>
    %530 = arith.divf %528, %529 : vector<8x1xf32>
    %cst_391 = arith.constant 9.99999997E-7 : f32
    %531 = vector.broadcast %cst_391 : f32 to vector<8x1xf32>
    %532 = arith.addf %530, %531 : vector<8x1xf32>
    %533 = math.rsqrt %532 : vector<8x1xf32>
    %534 = vector.broadcast %533 : vector<8x1xf32> to vector<8x64xf32>
    %535 = arith.mulf %525, %534 : vector<8x64xf32>
    %536 = vector.broadcast %518 : vector<1x64xf32> to vector<8x64xf32>
    %537 = arith.mulf %535, %536 : vector<8x64xf32>
    %538 = vector.broadcast %519 : vector<1x64xf32> to vector<8x64xf32>
    %539 = arith.addf %537, %538 : vector<8x64xf32>
    %540 = arith.truncf %539 : vector<8x64xf32> to vector<8x64xbf16>
    %c0_392 = arith.constant 0 : index
    %c0_393 = arith.constant 0 : index
    %541 = vector.load %arg22[%c0_392, %c0_393] : memref<64x128xbf16, #tpu.memory_space<vmem>>, vector<64x128xbf16>
    %cst_394 = arith.constant dense<0.000000e+00> : vector<8x128xf32>
    %542 = tpu.matmul %540, %541, %cst_394 {dimension_numbers = #tpu.dot_dimension_numbers<[1], [0], [0], [1], [0, 0, 1, 1], [], []>} : vector<8x64xbf16>, vector<64x128xbf16>, vector<8x128xf32> -> vector<8x128xf32>
    %c0_395 = arith.constant 0 : index
    %c0_396 = arith.constant 0 : index
    %543 = vector.load %arg23[%c0_395, %c0_396] : memref<1x128xf32, #tpu.memory_space<vmem>>, vector<1x128xf32>
    %544 = vector.broadcast %543 : vector<1x128xf32> to vector<8x128xf32>
    %545 = arith.addf %542, %544 : vector<8x128xf32>
    %c0_397 = arith.constant 0 : index
    %c0_398 = arith.constant 0 : index
    %c0_399 = arith.constant 0 : index
    %546 = vector.load %arg24[%c0_397, %c0_398, %c0_399] : memref<1x8x128xf32, #tpu.memory_space<vmem>>, vector<1x8x128xf32>
    %547 = vector.shape_cast %546 : vector<1x8x128xf32> to vector<8x128xf32>
    %548 = vector.shape_cast %545 : vector<8x128xf32> to vector<1x8x128xf32>
    tpu.vector_store %arg24[%c0_397, %c0_398, %c0_399], %548 {strides = array<i32>} : memref<1x8x128xf32, #tpu.memory_space<vmem>>, vector<1x8x128xf32>,
    return
  }
  func.func @transform_0(%arg0: i32) -> (i32, i32, i32) {
    %c0_i32 = arith.constant 0 : i32
    %c0_i32_0 = arith.constant 0 : i32
    %c0_i32_1 = arith.constant 0 : i32
    return %arg0, %c0_i32, %c0_i32_0 : i32, i32, i32
  }
  func.func @transform_1(%arg0: i32) -> (i32, i32) {
    %c0_i32 = arith.constant 0 : i32
    %c0_i32_0 = arith.constant 0 : i32
    %c0_i32_1 = arith.constant 0 : i32
    return %c0_i32, %c0_i32_0 : i32, i32
  }
  func.func @transform_2(%arg0: i32) -> (i32, i32) {
    %c0_i32 = arith.constant 0 : i32
    %c0_i32_0 = arith.constant 0 : i32
    %c0_i32_1 = arith.constant 0 : i32
    return %c0_i32, %c0_i32_0 : i32, i32
  }
  func.func @transform_3(%arg0: i32) -> (i32, i32, i32) {
    %c0_i32 = arith.constant 0 : i32
    %c0_i32_0 = arith.constant 0 : i32
    %c0_i32_1 = arith.constant 0 : i32
    %c0_i32_2 = arith.constant 0 : i32
    return %c0_i32, %c0_i32_0, %c0_i32_1 : i32, i32, i32
  }
  func.func @transform_4(%arg0: i32) -> (i32, i32, i32) {
    %c0_i32 = arith.constant 0 : i32
    %c0_i32_0 = arith.constant 0 : i32
    %c0_i32_1 = arith.constant 0 : i32
    %c0_i32_2 = arith.constant 0 : i32
    return %c0_i32, %c0_i32_0, %c0_i32_1 : i32, i32, i32
  }
  func.func @transform_5(%arg0: i32) -> (i32, i32, i32, i32) {
    %c0_i32 = arith.constant 0 : i32
    %c0_i32_0 = arith.constant 0 : i32
    %c0_i32_1 = arith.constant 0 : i32
    %c0_i32_2 = arith.constant 0 : i32
    %c0_i32_3 = arith.constant 0 : i32
    return %c0_i32, %c0_i32_0, %c0_i32_1, %c0_i32_2 : i32, i32, i32, i32
  }
  func.func @transform_6(%arg0: i32) -> (i32, i32, i32, i32) {
    %c0_i32 = arith.constant 0 : i32
    %c0_i32_0 = arith.constant 0 : i32
    %c0_i32_1 = arith.constant 0 : i32
    %c0_i32_2 = arith.constant 0 : i32
    %c0_i32_3 = arith.constant 0 : i32
    return %c0_i32, %c0_i32_0, %c0_i32_1, %c0_i32_2 : i32, i32, i32, i32
  }
  func.func @transform_7(%arg0: i32) -> (i32, i32, i32, i32) {
    %c0_i32 = arith.constant 0 : i32
    %c0_i32_0 = arith.constant 0 : i32
    %c0_i32_1 = arith.constant 0 : i32
    %c0_i32_2 = arith.constant 0 : i32
    %c0_i32_3 = arith.constant 0 : i32
    return %c0_i32, %c0_i32_0, %c0_i32_1, %c0_i32_2 : i32, i32, i32, i32
  }
  func.func @transform_8(%arg0: i32) -> (i32, i32, i32, i32) {
    %c0_i32 = arith.constant 0 : i32
    %c0_i32_0 = arith.constant 0 : i32
    %c0_i32_1 = arith.constant 0 : i32
    %c0_i32_2 = arith.constant 0 : i32
    %c0_i32_3 = arith.constant 0 : i32
    return %c0_i32, %c0_i32_0, %c0_i32_1, %c0_i32_2 : i32, i32, i32, i32
  }
  func.func @transform_9(%arg0: i32) -> (i32, i32, i32, i32) {
    %c0_i32 = arith.constant 0 : i32
    %c0_i32_0 = arith.constant 0 : i32
    %c0_i32_1 = arith.constant 0 : i32
    %c0_i32_2 = arith.constant 0 : i32
    %c0_i32_3 = arith.constant 0 : i32
    return %c0_i32, %c0_i32_0, %c0_i32_1, %c0_i32_2 : i32, i32, i32, i32
  }
  func.func @transform_10(%arg0: i32) -> (i32, i32, i32, i32) {
    %c0_i32 = arith.constant 0 : i32
    %c0_i32_0 = arith.constant 0 : i32
    %c0_i32_1 = arith.constant 0 : i32
    %c0_i32_2 = arith.constant 0 : i32
    %c0_i32_3 = arith.constant 0 : i32
    return %c0_i32, %c0_i32_0, %c0_i32_1, %c0_i32_2 : i32, i32, i32, i32
  }
  func.func @transform_11(%arg0: i32) -> (i32, i32, i32, i32) {
    %c0_i32 = arith.constant 0 : i32
    %c0_i32_0 = arith.constant 0 : i32
    %c0_i32_1 = arith.constant 0 : i32
    %c0_i32_2 = arith.constant 0 : i32
    %c0_i32_3 = arith.constant 0 : i32
    return %c0_i32, %c0_i32_0, %c0_i32_1, %c0_i32_2 : i32, i32, i32, i32
  }
  func.func @transform_12(%arg0: i32) -> (i32, i32, i32) {
    %c0_i32 = arith.constant 0 : i32
    %c0_i32_0 = arith.constant 0 : i32
    %c0_i32_1 = arith.constant 0 : i32
    %c0_i32_2 = arith.constant 0 : i32
    return %c0_i32, %c0_i32_0, %c0_i32_1 : i32, i32, i32
  }
  func.func @transform_13(%arg0: i32) -> (i32, i32, i32) {
    %c0_i32 = arith.constant 0 : i32
    %c0_i32_0 = arith.constant 0 : i32
    %c0_i32_1 = arith.constant 0 : i32
    %c0_i32_2 = arith.constant 0 : i32
    return %c0_i32, %c0_i32_0, %c0_i32_1 : i32, i32, i32
  }
  func.func @transform_14(%arg0: i32) -> (i32, i32, i32) {
    %c0_i32 = arith.constant 0 : i32
    %c0_i32_0 = arith.constant 0 : i32
    %c0_i32_1 = arith.constant 0 : i32
    %c0_i32_2 = arith.constant 0 : i32
    return %c0_i32, %c0_i32_0, %c0_i32_1 : i32, i32, i32
  }
  func.func @transform_15(%arg0: i32) -> (i32, i32, i32) {
    %c0_i32 = arith.constant 0 : i32
    %c0_i32_0 = arith.constant 0 : i32
    %c0_i32_1 = arith.constant 0 : i32
    %c0_i32_2 = arith.constant 0 : i32
    return %c0_i32, %c0_i32_0, %c0_i32_1 : i32, i32, i32
  }
  func.func @transform_16(%arg0: i32) -> (i32, i32, i32) {
    %c0_i32 = arith.constant 0 : i32
    %c0_i32_0 = arith.constant 0 : i32
    %c0_i32_1 = arith.constant 0 : i32
    %c0_i32_2 = arith.constant 0 : i32
    return %c0_i32, %c0_i32_0, %c0_i32_1 : i32, i32, i32
  }
  func.func @transform_17(%arg0: i32) -> (i32, i32, i32) {
    %c0_i32 = arith.constant 0 : i32
    %c0_i32_0 = arith.constant 0 : i32
    %c0_i32_1 = arith.constant 0 : i32
    %c0_i32_2 = arith.constant 0 : i32
    return %c0_i32, %c0_i32_0, %c0_i32_1 : i32, i32, i32
  }
  func.func @transform_18(%arg0: i32) -> (i32, i32, i32) {
    %c0_i32 = arith.constant 0 : i32
    %c0_i32_0 = arith.constant 0 : i32
    %c0_i32_1 = arith.constant 0 : i32
    %c0_i32_2 = arith.constant 0 : i32
    return %c0_i32, %c0_i32_0, %c0_i32_1 : i32, i32, i32
  }
  func.func @transform_19(%arg0: i32) -> (i32, i32) {
    %c0_i32 = arith.constant 0 : i32
    %c0_i32_0 = arith.constant 0 : i32
    %c0_i32_1 = arith.constant 0 : i32
    return %c0_i32, %c0_i32_0 : i32, i32
  }
  func.func @transform_20(%arg0: i32) -> (i32, i32) {
    %c0_i32 = arith.constant 0 : i32
    %c0_i32_0 = arith.constant 0 : i32
    %c0_i32_1 = arith.constant 0 : i32
    return %c0_i32, %c0_i32_0 : i32, i32
  }
  func.func @transform_21(%arg0: i32) -> (i32, i32) {
    %c0_i32 = arith.constant 0 : i32
    %c0_i32_0 = arith.constant 0 : i32
    %c0_i32_1 = arith.constant 0 : i32
    return %c0_i32, %c0_i32_0 : i32, i32
  }
  func.func @transform_22(%arg0: i32) -> (i32, i32) {
    %c0_i32 = arith.constant 0 : i32
    %c0_i32_0 = arith.constant 0 : i32
    %c0_i32_1 = arith.constant 0 : i32
    return %c0_i32, %c0_i32_0 : i32, i32
  }
  func.func @transform_23(%arg0: i32) -> (i32, i32, i32) {
    %c0_i32 = arith.constant 0 : i32
    %c0_i32_0 = arith.constant 0 : i32
    %c0_i32_1 = arith.constant 0 : i32
    return %arg0, %c0_i32, %c0_i32_0 : i32, i32, i32
  }
}

</mosaic_0001>

<bundles_post_ra>
// kernel: multilabel_vit_forward.1
= control target key start
LH: loop header
LB: loop body
LE: loop exit
PB: predicated region body
PF: predicated region fallthrough
CT: control target
= control target key end

     0   :  { %s7962_s0 = inlined_call_operand.vmem [shape: f32[2,8,768], index: 0, kind: input, shape index: {}]   ;;  %s7963_s1 = inlined_call_operand.vmem [shape: bf16[768,64], index: 1, kind: input, shape index: {}]   ;;  %s7964_s2 = inlined_call_operand.vmem [shape: f32[8,64], index: 2, kind: input, shape index: {}]   ;;  %s7965_s3 = inlined_call_operand.vmem [shape: f32[2,1,64], index: 3, kind: input, shape index: {}]   ;;  %s7966_s4 = inlined_call_operand.vmem [shape: f32[2,1,64], index: 4, kind: input, shape index: {}]   ;;  %s7967_s5 = inlined_call_operand.vmem [shape: bf16[2,4,64,16], index: 5, kind: input, shape index: {}]   ;;  %s7968_s6 = inlined_call_operand.vmem [shape: f32[2,4,1,16], index: 6, kind: input, shape index: {}]   ;;  %s7969_s7 = inlined_call_operand.vmem [shape: bf16[2,4,64,16], index: 7, kind: input, shape index: {}]   ;;  %s7970_s8 = inlined_call_operand.vmem [shape: f32[2,4,1,16], index: 8, kind: input, shape index: {}]   ;;  %s7971_s9 = inlined_call_operand.vmem [shape: bf16[2,4,64,16], index: 9, kind: input, shape index: {}]   ;;  %s7972_s10 = inlined_call_operand.vmem [shape: f32[2,4,1,16], index: 10, kind: input, shape index: {}]   ;;  %s7973_s11 = inlined_call_operand.vmem [shape: bf16[2,4,16,64], index: 11, kind: input, shape index: {}]   ;;  %s7974_s12 = inlined_call_operand.vmem [shape: f32[2,1,64], index: 12, kind: input, shape index: {}]   ;;  %s7975_s13 = inlined_call_operand.vmem [shape: f32[2,1,64], index: 13, kind: input, shape index: {}]   ;;  %s7976_s14 = inlined_call_operand.vmem [shape: f32[2,1,64], index: 14, kind: input, shape index: {}]   ;;  %s7977_s15 = inlined_call_operand.vmem [shape: bf16[2,64,128], index: 15, kind: input, shape index: {}]   ;;  %s7978_s16 = inlined_call_operand.vmem [shape: f32[2,1,128], index: 16, kind: input, shape index: {}]   ;;  %s7979_s17 = inlined_call_operand.vmem [shape: bf16[2,128,64], index: 17, kind: input, shape index: {}]   ;;  %s7980_s18 = inlined_call_operand.vmem [shape: f32[2,1,64], index: 18, kind: input, shape index: {}]   ;;  %s7981_s19 = inlined_call_operand.vmem [shape: f32[1,64], index: 19, kind: input, shape index: {}]   ;;  %s7982_s20 = inlined_call_operand.vmem [shape: f32[1,64], index: 20, kind: input, shape index: {}]   ;;  %s7983_s21 = inlined_call_operand.vmem [shape: bf16[64,128], index: 21, kind: input, shape index: {}]   ;;  %s7984_s22 = inlined_call_operand.vmem [shape: f32[1,128], index: 22, kind: input, shape index: {}]   ;;  %s7985_s23 = inlined_call_operand.vmem [shape: f32[2,8,128], index: 23, kind: output, shape index: {}]  }
   0x1   :  { %7994 = sst [smem:[#allocation2_spill]] %s7962_s0 }
   0x2   :  { %7995 = sst [smem:[#allocation3_spill]] %s7963_s1 }
   0x3   :  { %7996 = sst [smem:[#allocation4_spill]] %s7964_s2 }
   0x4   :  { %7997 = sst [smem:[#allocation5_spill]] %s7965_s3 }
   0x5   :  { %7998 = sst [smem:[#allocation6_spill]] %s7966_s4  ;;  %s6840_s4 = smov 0  }
   0x6   :  { %7999 = sst [smem:[#allocation7_spill]] %s7967_s5 }
   0x7   :  { %8000 = sst [smem:[#allocation8_spill]] %s7968_s6 }
   0x8   :  { %8001 = sst [smem:[#allocation9_spill]] %s7969_s7 }
   0x9 LB: > { %s5183_s30 = sadd.s32 4294967295, %s6716_s4   ;;  %p5187_p0 = scmp.ge.s32.totalorder %s6716_s4, 1  ;;  %s6716_s4 = sphi %s6840_s4, %s33_s4  }
   0xa   : > { %p637_p1 = scmp.lt.s32.totalorder %s6716_s4, 3 }
   0xc   : > { %p638_p2 = pnand %p5187_p0, %p637_p1 }
   0xd   : > { %s8002_s5 = sld [smem:[#allocation3_spill]] (!%p638_p2)  ;;  %p700_p3 = scmp.lt.s32.totalorder (!%p638_p2), %s5183_s30, 1  ;;  %vm1232_vm0 = vcmask (!%p638_p2), 523264   ;;  %vm6719_vm1 = vmmov (!%p638_p2), 0   ;;  %vm1504_vm2 = vcmask (!%p638_p2), 130048   ;;  %vm1569_vm3 = vcmask (!%p638_p2), 1043456  }
   0xe   : > { %641 = sbr.rel (%p638_p2) target bundleno = 10845 (0x2a5d), region = 112  ;;  %s8003_s25 = sld [smem:[#allocation2_spill]] (!%p638_p2)  ;;  %vm1552_vm5 = vcmask (!%p638_p2), 64512  }
   0xf   : > { %s8004_s3 = sld [smem:[#allocation4_spill]] (!%p638_p2)  ;;  %s8005_s24 = sld [smem:[#allocation7_spill]] (!%p638_p2) }
  0x10   : > { %s8009_s28 = sld [smem:[#allocation8_spill]] (!%p638_p2) }
  0x13   : > { %v6484_v0 = vld [vmem:[%s8002_s5 + $0x40] sm:$0xff] (!%p638_p2)   ;;  %v6488_v4 = vld [vmem:[%s8002_s5 + $0x48] sm:$0xff] (!%p638_p2)   ;;  %v6492_v8 = vld [vmem:[%s8002_s5 + $0x50] sm:$0xff] (!%p638_p2)  }
  0x14   : > { %v6485_v1 = vld [vmem:[%s8002_s5] sm:$0xff] (!%p638_p2)   ;;  %5698 = vmatprep.subr.bf16.mxu0 (!%p638_p2), %v6484_v0  ;;  %v6489_v5 = vld [vmem:[%s8002_s5 + $0x8] sm:$0xff] (!%p638_p2)   ;;  %v6493_v9 = vld [vmem:[%s8002_s5 + $0x10] sm:$0xff] (!%p638_p2)  }
  0x15   : > { %v6486_v2 = vld [vmem:[%s8002_s5 + $0xc0] sm:$0xff]   ;;  %5699 = vmatpush3.bf16.msra.mxu0 %v6485_v1  ;;  %v6490_v6 = vld [vmem:[%s8002_s5 + $0xc8] sm:$0xff]   ;;  %v6494_v10 = vld [vmem:[%s8002_s5 + $0xd0] sm:$0xff]   ;;  %s8011_s30 = smov (!%p700_p3, %s5183_s30), 1 }
  0x16   : > { %v6487_v3 = vld [vmem:[%s8002_s5 + $0x80] sm:$0xff]   ;;  %5720 = vmatprep.subr.bf16.mxu1 %v6486_v2  ;;  %5700 = vmatprep.subr.bf16.mxu0 %v6488_v4  ;;  %v6491_v7 = vld [vmem:[%s8002_s5 + $0x88] sm:$0xff]   ;;  %v6495_v11 = vld [vmem:[%s8002_s5 + $0x90] sm:$0xff]   ;;  %s6473_s1 = smul.u32 48, %s8011_s30  ;;  %s5189_s0 = sshll.u32 %s8011_s30, 3 }
  0x17   : > { %5721 = vmatpush3.bf16.msra.mxu1 %v6487_v3  ;;  %v6496_v12 = vld [vmem:[%s8002_s5 + $0x58] sm:$0xff]   ;;  %v6500_v16 = vld [vmem:[%s8002_s5 + $0x60] sm:$0xff]   ;;  %v6504_v20 = vld [vmem:[%s8002_s5 + $0x68] sm:$0xff]   ;;  %s708_s27 = scalar_lea.vmem %s7985_s23, %s5189_s0 }
  0x18   : > { %5722 = vmatprep.subr.bf16.mxu1 %v6490_v6  ;;  %v6497_v13 = vld [vmem:[%s8002_s5 + $0x18] sm:$0xff]   ;;  %v6501_v17 = vld [vmem:[%s8002_s5 + $0x20] sm:$0xff]   ;;  %v6505_v21 = vld [vmem:[%s8002_s5 + $0x28] sm:$0xff]   ;;  %s6945_s26 = scalar_lea.vmem %s8003_s25, %s6473_s1  ;;  %s8006_s1 = sld [smem:[#allocation5_spill]] }
  0x19   : > { %5701 = vmatpush3.bf16.msra.mxu0 %v6489_v5  ;;  %v6498_v14 = vld [vmem:[%s8002_s5 + $0xd8] sm:$0xff]   ;;  %v6502_v18 = vld [vmem:[%s8002_s5 + $0xe0] sm:$0xff]   ;;  %v6506_v22 = vld [vmem:[%s8002_s5 + $0xe8] sm:$0xff]   ;;  %s8008_s25 = sld [smem:[#allocation9_spill]] }
  0x1a   : > { %5702 = vmatprep.subr.bf16.mxu0 %v6492_v8  ;;  %v6499_v15 = vld [vmem:[%s8002_s5 + $0x98] sm:$0xff]   ;;  %v6503_v19 = vld [vmem:[%s8002_s5 + $0xa0] sm:$0xff]   ;;  %v6507_v23 = vld [vmem:[%s8002_s5 + $0xa8] sm:$0xff]  }
  0x1b   : > { %5723 = vmatpush3.bf16.msra.mxu1 %v6491_v7  ;;  %v6508_v24 = vld [vmem:[%s8002_s5 + $0x70] sm:$0xff]   ;;  %v6512_v28 = vld [vmem:[%s8002_s5 + $0x78] sm:$0xff]   ;;  %v714_v31 = vld [vmem:[%s6945_s26 + $0x8] sm:$0xff] }
  0x1c   : > { %5724 = vmatprep.subr.bf16.mxu1 %v6494_v10  ;;  %v6509_v25 = vld [vmem:[%s8002_s5 + $0x30] sm:$0xff]   ;;  %v6513_v29 = vld [vmem:[%s8002_s5 + $0x38] sm:$0xff]   ;;  %v720_v32 = vpack.c.bf16 %v714_v31, %v714_v31  ;;  %v713_v34 = vld [vmem:[%s6945_s26] sm:$0xff] }
  0x1d   : > { %5703 = vmatpush3.bf16.msra.mxu0 %v6493_v9  ;;  %v6510_v26 = vld [vmem:[%s8002_s5 + $0xf0] sm:$0xff]   ;;  %v6514_v30 = vld [vmem:[%s8002_s5 + $0xf8] sm:$0xff]   ;;  %v719_v35 = vpack.c.bf16 %v713_v34, %v713_v34  ;;  %v6516_v36 = vld [vmem:[%s8002_s5 + $0x140] sm:$0xff]  }
  0x1e   : > { %5704 = vmatprep.subr.bf16.mxu0 %v6496_v12  ;;  %v6511_v27 = vld [vmem:[%s8002_s5 + $0xb0] sm:$0xff]   ;;  %v6515_v33 = vld [vmem:[%s8002_s5 + $0xb8] sm:$0xff]   ;;  %1142 = vmatprep.mubr.bf16.mxu0 %v720_v32  ;;  %v6517_v39 = vld [vmem:[%s8002_s5 + $0x100] sm:$0xff]  }
  0x1f   : > { %5725 = vmatpush3.bf16.msra.mxu1 %v6495_v11  ;;  %v716_v37 = vld [vmem:[%s6945_s26 + $0x18] sm:$0xff]  ;;  %v715_v40 = vld [vmem:[%s6945_s26 + $0x10] sm:$0xff]  ;;  %v6518_v42 = vld [vmem:[%s8002_s5 + $0x148] sm:$0xff]  }
  0x20   : > { %5726 = vmatprep.subr.bf16.mxu1 %v6498_v14  ;;  %v722_v38 = vpack.c.bf16 %v716_v37, %v716_v37  ;;  %v721_v41 = vpack.c.bf16 %v715_v40, %v715_v40  ;;  %v6519_v43 = vld [vmem:[%s8002_s5 + $0x108] sm:$0xff]   ;;  %v6520_v44 = vld [vmem:[%s8002_s5 + $0x150] sm:$0xff]   ;;  %v6522_v46 = vld [vmem:[%s8002_s5 + $0x158] sm:$0xff]  }
  0x21   : > { %5705 = vmatpush3.bf16.msra.mxu0 %v6497_v13  ;;  %v6521_v45 = vld [vmem:[%s8002_s5 + $0x110] sm:$0xff]   ;;  %v6523_v47 = vld [vmem:[%s8002_s5 + $0x118] sm:$0xff]   ;;  %v6524_v48 = vld [vmem:[%s8002_s5 + $0x160] sm:$0xff]  }
  0x22   : > { %5706 = vmatprep.subr.bf16.mxu0 %v6500_v16  ;;  %1182 = vmatprep.mubr.bf16.mxu1 %v722_v38  ;;  %v6525_v49 = vld [vmem:[%s8002_s5 + $0x120] sm:$0xff]   ;;  %v6526_v50 = vld [vmem:[%s8002_s5 + $0x168] sm:$0xff]   ;;  %v6528_v54 = vld [vmem:[%s8002_s5 + $0x170] sm:$0xff]  }
  0x23   : > { %5727 = vmatpush3.bf16.msra.mxu1 %v6499_v15  ;;  %v718_v51 = vld [vmem:[%s6945_s26 + $0x28] sm:$0xff]  ;;  %v6529_v55 = vld [vmem:[%s8002_s5 + $0x130] sm:$0xff]   ;;  %v6530_v56 = vld [vmem:[%s8002_s5 + $0x178] sm:$0xff]  }
  0x24   : > { %5728 = vmatprep.subr.bf16.mxu1 %v6502_v18  ;;  %v6527_v52 = vld [vmem:[%s8002_s5 + $0x128] sm:$0xff]   ;;  %v724_v53 = vpack.c.bf16 %v718_v51, %v718_v51  ;;  %v6531_v57 = vld [vmem:[%s8002_s5 + $0x138] sm:$0xff]   ;;  %v717_v58 = vld [vmem:[%s6945_s26 + $0x20] sm:$0xff] }
  0x25   : > { %5707 = vmatpush3.bf16.msra.mxu0 %v6501_v17  ;;  %v723_v59 = vpack.c.bf16 %v717_v58, %v717_v58  ;;  %v821_v61 = vld [vmem:[%s8004_s3] sm:$0xff]  ;;  %s8007_s3 = sld [smem:[#allocation6_spill]]  ;;  %v6551_v51 = vld [vmem:[%s7971_s9 + $0x38] sm:$0xff]  }
  0x26   : > { %5708 = vmatprep.subr.bf16.mxu0 %v6504_v20  ;;  %v5238_v34 = vld [vmem:[%s8006_s1] ss:$0 sm:$0xff] }
  0x27   : > { %5729 = vmatpush3.bf16.msra.mxu1 %v6503_v19  ;;  %v6541_v40 = vld [vmem:[%s8005_s24 + $0x20] sm:$0xff]  }
  0x28   : > { %5730 = vmatprep.subr.bf16.mxu1 %v6506_v22  ;;  %v6533_v22 = vld [vmem:[%s7971_s9] sm:$0xff]  }
  0x29   : > { %5709 = vmatpush3.bf16.msra.mxu0 %v6505_v21  ;;  %v6532_v21 = vld [vmem:[%s8005_s24] sm:$0xff]  }
  0x2a   : > { %5710 = vmatprep.subr.bf16.mxu0 %v6508_v24  ;;  %v6534_v24 = vld [vmem:[%s8005_s24 + $0x8] sm:$0xff]  }
  0x2b   : > { %5731 = vmatpush3.bf16.msra.mxu1 %v6507_v23  ;;  %v6718_v23 = vmov 0.0  }
  0x2c   : > { %5732 = vmatprep.subr.bf16.mxu1 %v6510_v26  ;;  %v6536_v26 = vld [vmem:[%s8005_s24 + $0x10] sm:$0xff]  }
  0x2d   : > { %5711 = vmatpush3.bf16.msra.mxu0 %v6509_v25  ;;  %v6535_v25 = vld [vmem:[%s7971_s9 + $0x8] sm:$0xff]  }
  0x2e   : > { %5712 = vmatprep.subr.bf16.mxu0 %v6512_v28  ;;  %v6538_v28 = vld [vmem:[%s8005_s24 + $0x18] sm:$0xff]  }
  0x2f   : > { %5733 = vmatpush3.bf16.msra.mxu1 %v6511_v27  ;;  %v6537_v27 = vld [vmem:[%s7971_s9 + $0x10] sm:$0xff]  }
  0x30   : > { %5734 = vmatprep.subr.bf16.mxu1 %v6514_v30 }
  0x31   : > { %5713 = vmatpush3.bf16.msra.mxu0 %v6513_v29  ;;  %v6539_v29 = vld [vmem:[%s7971_s9 + $0x18] sm:$0xff]  }
  0x32   : > { %5742 = vmatprep.subr.bf16.mxu0 %v6516_v36  ;;  %v5239_v36 = vld [vmem:[%s8007_s3] ss:$0 sm:$0xff] }
  0x33   : > { %5735 = vmatpush3.bf16.msra.mxu1 %v6515_v33 }
  0x34   : > { %1143 = vmatmul.mubr.bf16.vlgmr.msra.gmra.mrb[0].mxu0 %v719_v35  ;;  %5965 = vmatprep.subr.bf16.mxu1 %v6718_v23 }
  0x35   : > { %5743 = vmatpush3.bf16.msra.mxu0 %v6517_v39  ;;  %1222 = vmatprep.mubr.bf16.mxu0 %v724_v53  ;;  %v6540_v39 = vld [vmem:[%s8008_s25] sm:$0xff]  }
  0x36   : > { %1183 = vmatmul.mubr.bf16.vlgmr.msra.gmra.mrb[0].mxu1 %v721_v41  ;;  %5744 = vmatprep.subr.bf16.mxu0 %v6518_v42  ;;  %v6542_v42 = vld [vmem:[%s8008_s25 + $0x8] sm:$0xff]  }
  0x37   : > { %5966 = vmatpush3.bf16.msra.mxu1 %v6532_v21  ;;  %5973 = vmatprep.mubr.msk.bf16.mxu1 %vm6719_vm1, %v6718_v23 }
  0x38   : > { %5967 = vmatprep.subr.bf16.mxu1 %v6718_v23 }
  0x39   : > { %5745 = vmatpush3.bf16.msra.mxu0 %v6519_v43  ;;  %v6543_v43 = vld [vmem:[%s8005_s24 + $0x28] sm:$0xff]  }
  0x3a   : > { %5746 = vmatprep.subr.bf16.mxu0 %v6520_v44  ;;  %v6544_v44 = vld [vmem:[%s8008_s25 + $0x10] sm:$0xff]  }
  0x3b   : > { %5968 = vmatpush3.bf16.msra.mxu1 %v6534_v24 }
  0x3c   : > { %5969 = vmatprep.subr.bf16.mxu1 %v6718_v23 }
  0x3d   : > { %5747 = vmatpush3.bf16.msra.mxu0 %v6521_v45  ;;  %v6545_v45 = vld [vmem:[%s8005_s24 + $0x30] sm:$0xff]  }
  0x3e   : > { %5748 = vmatprep.subr.bf16.mxu0 %v6522_v46  ;;  %v6546_v46 = vld [vmem:[%s8008_s25 + $0x18] sm:$0xff]  }
  0x3f   : > { %5970 = vmatpush3.bf16.msra.mxu1 %v6536_v26 }
  0x40   : > { %5971 = vmatprep.subr.bf16.mxu1 %v6718_v23 }
  0x41   : > { %5749 = vmatpush3.bf16.msra.mxu0 %v6523_v47  ;;  %v6547_v47 = vld [vmem:[%s8005_s24 + $0x38] sm:$0xff]  }
  0x42   : > { %5750 = vmatprep.subr.bf16.mxu0 %v6524_v48  ;;  %v6548_v48 = vld [vmem:[%s7971_s9 + $0x20] sm:$0xff]  }
  0x43   : > { %5972 = vmatpush3.bf16.msra.mxu1 %v6538_v28 }
  0x44   : > { %5977 = vmatprep.subr.bf16.mxu1 %v6718_v23 }
  0x45   : > { %5751 = vmatpush3.bf16.msra.mxu0 %v6525_v49  ;;  %v6549_v49 = vld [vmem:[%s7971_s9 + $0x28] sm:$0xff]  }
  0x46   : > { %5752 = vmatprep.subr.bf16.mxu0 %v6526_v50  ;;  %v6550_v50 = vld [vmem:[%s7971_s9 + $0x30] sm:$0xff]  }
  0x49   : > { %5753 = vmatpush3.bf16.msra.mxu0 %v6527_v52 }
  0x4a   : > { %5754 = vmatprep.subr.bf16.mxu0 %v6528_v54 }
  0x4d   : > { %5755 = vmatpush3.bf16.msra.mxu0 %v6529_v55 }
  0x4e   : > { %5756 = vmatprep.subr.bf16.mxu0 %v6530_v56 }
  0x51   : > { %5757 = vmatpush3.bf16.msra.mxu0 %v6531_v57 }
  0x52   : > { %5989 = vmatprep.subr.bf16.mxu0 %v6718_v23 }
  0x54   : > { %1223 = vmatmul.mubr.bf16.vlgmr.msra.gmra.mrb[4].mxu0 %v723_v59 }
  0x55   : > { %5990 = vmatpush3.bf16.msra.mxu0 %v6533_v22  ;;  %5997 = vmatprep.mubr.msk.bf16.mxu0 %vm6719_vm1, %v6718_v23 }
  0x56   : > { %5991 = vmatprep.subr.bf16.mxu0 %v6718_v23 }
  0x59   : > { %5992 = vmatpush3.bf16.msra.mxu0 %v6535_v25 }
  0x5a   : > { %5993 = vmatprep.subr.bf16.mxu0 %v6718_v23 }
  0x5d   : > { %5994 = vmatpush3.bf16.msra.mxu0 %v6537_v27 }
  0x5e   : > { %5995 = vmatprep.subr.bf16.mxu0 %v6718_v23 }
  0x61   : > { %5996 = vmatpush3.bf16.msra.mxu0 %v6539_v29 }
  0x62   : > { %6013 = vmatprep.subr.bf16.mxu0 %v6718_v23 }
 0x107   : > { %v5714_v60 = vpop.f32.mrb[0].mxu0 }
 0x108   : > { %v5715_v62 = vpop.f32.mrb[1].mxu0 }
 0x109   : > { %v5716_v63 = vadd.f32 %v5715_v62, %v5714_v60  ;;  %v5717_v0 = vpop.f32.mrb[2].mxu0  ;;  %v5736_v1 = vpop.f32.mrb[0].mxu1  ;;  %v5246_v60 = vld [vmem:[%s7970_s8] ss:$0 sm:$0xff] }
 0x10a   : > { %v5718_v2 = vpop.f32.mrb[3].mxu0  ;;  %v5737_v4 = vpop.f32.mrb[1].mxu1 }
 0x10b   : > { %v1145_v3 = vadd.f32 %v5716_v63, %v821_v61  ;;  %v5738_v5 = vadd.f32 %v5737_v4, %v5736_v1  ;;  %v5739_v6 = vpop.f32.mrb[2].mxu1  ;;  %v5252_v2 = vld [vmem:[%s7972_s10] ss:$0 sm:$0xff] }
 0x10c   : > { %v5740_v7 = vpop.f32.mrb[3].mxu1 }
 0x10d   : > { %v1185_v8 = vadd.f32 %v5738_v5, %v1145_v3 }
 0x127   : > { %v5758_v9 = vpop.f32.mrb[4].mxu0 }
 0x128   : > { %v5759_v10 = vpop.f32.mrb[5].mxu0 }
 0x129   : > { %v5760_v11 = vadd.f32 %v5759_v10, %v5758_v9  ;;  %v5761_v12 = vpop.f32.mrb[6].mxu0 }
 0x12a   : > { %v5762_v13 = vpop.f32.mrb[7].mxu0 }
 0x12b   : > { %v7013_v14 = vadd.f32 %v5760_v11, %v1185_v8  ;;  %v5240_v8 = vld [vmem:[%s8009_s28] ss:$0 sm:$0xff] }
 0x12d   : > { %v1233_v15 = vsel %vm1232_vm0, %v7013_v14, 0.0 }
 0x12e   : > { %1234 = vadd.xlane.f32.xlu0 %v1233_v15 }
 0x1bb   : > { %v1235_v16 = vpop.xlane.xlu0 %1234 }
 0x1bc   : > { %v1237_v17 = vmul.f32 0.015625, %v1235_v16 }
 0x1be   : > { %v1238_v18 = vsub.f32 %v7013_v14, %v1237_v17 }
 0x1c0   : > { %v1239_v19 = vmul.f32 %v1238_v18, %v1238_v18 }
 0x1c2   : > { %v1240_v20 = vsel %vm1232_vm0, %v1239_v19, 0.0 }
 0x1c3   : > { %1241 = vadd.xlane.f32.xlu0 %v1240_v20  ;;  %v710_v20 = vlaneseq }
 0x1c5   : > { %v7151_v21 = vand.u32 127, %v710_v20  ;;  %v6560_v20 = vld [vmem:[%s8008_s25 + $0x58] sm:$0xff]  }
 0x1c7   : > { %vm712_vm4 = vcmp.lt.s32.totalorder %v7151_v21, 5 }
 0x250   : > { %v1242_v30 = vpop.xlane.xlu0 %1241 }
 0x251   : > { %v1243_v31 = vmul.f32 0.015625, %v1242_v30 }
 0x253   : > { %v1244_v32 = vadd.f32 1e-06, %v1243_v31 }
 0x255   : > { %6664 = vrsqrt.f32 %v1244_v32 }
 0x25f   : > { %v6665_v33 = vpop.eup %6664 }
 0x260   : > { %v1246_v35 = vmul.f32 %v6665_v33, %v1238_v18 }
 0x262   : > { %v1253_v37 = vmul.f32 %v5238_v34, %v1246_v35 }
 0x264   : > { %v1260_v38 = vadd.f32 %v5239_v36, %v1253_v37  ;;  %v6552_v37 = vld [vmem:[%s8008_s25 + $0x20] sm:$0xff]  }
 0x266   : > { %v7069_v41 = vpack.c.bf16 %v1260_v38, %v1260_v38 }
 0x268   : > { %5974 = vmatmul.mubr.msk.bf16.vlgmr.msra.gmra.mrb[4].mxu1 %vm1232_vm0, %v7069_v41  ;;  %5998 = vmatmul.mubr.msk.bf16.vlgmr.msra.gmra.mrb[8].mxu0 %vm1232_vm0, %v7069_v41 }
 0x269   : > { %5978 = vmatpush3.bf16.msra.mxu1 %v6540_v39  ;;  %6014 = vmatpush3.bf16.msra.mxu0 %v6541_v40  ;;  %v6553_v39 = vld [vmem:[%s8008_s25 + $0x28] sm:$0xff]   ;;  %v6554_v40 = vld [vmem:[%s8008_s25 + $0x30] sm:$0xff]  }
 0x26a   : > { %5979 = vmatprep.subr.bf16.mxu1 %v6718_v23  ;;  %6015 = vmatprep.subr.bf16.mxu0 %v6718_v23 }
 0x26b   : > { %5985 = vmatprep.mubr.msk.bf16.mxu1 %vm6719_vm1, %v6718_v23  ;;  %6021 = vmatprep.mubr.msk.bf16.mxu0 %vm6719_vm1, %v6718_v23 }
 0x26d   : > { %5980 = vmatpush3.bf16.msra.mxu1 %v6542_v42  ;;  %6016 = vmatpush3.bf16.msra.mxu0 %v6543_v43  ;;  %v6555_v42 = vld [vmem:[%s8008_s25 + $0x38] sm:$0xff]  }
 0x26e   : > { %5981 = vmatprep.subr.bf16.mxu1 %v6718_v23  ;;  %6017 = vmatprep.subr.bf16.mxu0 %v6718_v23 }
 0x271   : > { %5982 = vmatpush3.bf16.msra.mxu1 %v6544_v44  ;;  %6018 = vmatpush3.bf16.msra.mxu0 %v6545_v45 }
 0x272   : > { %5983 = vmatprep.subr.bf16.mxu1 %v6718_v23  ;;  %6019 = vmatprep.subr.bf16.mxu0 %v6718_v23 }
 0x275   : > { %5984 = vmatpush3.bf16.msra.mxu1 %v6546_v46  ;;  %6020 = vmatpush3.bf16.msra.mxu0 %v6547_v47  ;;  %v5284_v47 = vld [vmem:[%s7970_s8 + $0x1] ss:$0 sm:$0xff] }
 0x276   : > { %6037 = vmatprep.subr.bf16.mxu0 %v6718_v23  ;;  %6001 = vmatprep.subr.bf16.mxu1 %v6718_v23 }
 0x278   : > { %5986 = vmatmul.mubr.msk.bf16.vlgmr.msra.gmra.mrb[8].mxu1 %vm1232_vm0, %v7069_v41  ;;  %6022 = vmatmul.mubr.msk.bf16.vlgmr.msra.gmra.mrb[12].mxu0 %vm1232_vm0, %v7069_v41 }
 0x279   : > { %6038 = vmatpush3.bf16.msra.mxu0 %v6548_v48  ;;  %6045 = vmatprep.mubr.msk.bf16.mxu0 %vm6719_vm1, %v6718_v23 }
 0x27a   : > { %6039 = vmatprep.subr.bf16.mxu0 %v6718_v23  ;;  %6003 = vmatprep.mubr.msk.bf16.mxu1 %vm6719_vm1, %v6718_v23 }
 0x27d   : > { %6040 = vmatpush3.bf16.msra.mxu0 %v6549_v49 }
 0x27e   : > { %6041 = vmatprep.subr.bf16.mxu0 %v6718_v23 }
 0x281   : > { %6042 = vmatpush3.bf16.msra.mxu0 %v6550_v50 }
 0x282   : > { %6043 = vmatprep.subr.bf16.mxu0 %v6718_v23 }
 0x285   : > { %6044 = vmatpush3.bf16.msra.mxu0 %v6551_v51  ;;  %v5299_v51 = vld [vmem:[%s7972_s10 + $0x1] ss:$0 sm:$0xff] }
 0x286   : > { %6061 = vmatprep.subr.bf16.mxu0 %v6718_v23 }
 0x288   : > { %6046 = vmatmul.mubr.msk.bf16.vlgmr.msra.gmra.mrb[16].mxu0 %vm1232_vm0, %v7069_v41 }
 0x289   : > { %6063 = vmatprep.mubr.msk.bf16.mxu0 %vm6719_vm1, %v6718_v23 }
 0x33b   : > { %v1338_v52 = vpop.f32.mrb[4].mxu1  ;;  %v1496_v53 = vpop.f32.mrb[8].mxu0 }
 0x33c   : > { %v5975_v54 = vpop.f32.mrb[5].mxu1  ;;  %v5999_v55 = vpop.f32.mrb[9].mxu0  ;;  %v1497_v9 = vadd.f32 %v5252_v2, %v1496_v53  ;;  %v1339_v11 = vadd.f32 %v5240_v8, %v1338_v52 }
 0x33d   : > { %v1341_v56 = vpop.f32.mrb[6].mxu1  ;;  %v1499_v57 = vpop.f32.mrb[10].mxu0  ;;  %v5269_v55 = vld [vmem:[%s8009_s28 + $0x1] ss:$0 sm:$0xff] }
 0x33e   : > { %v5976_v58 = vpop.f32.mrb[7].mxu1  ;;  %v6000_v59 = vpop.f32.mrb[11].mxu0  ;;  %v1565_v12 = vpack.c.bf16 %v1497_v9, %v1497_v9  ;;  %v1502_v13 = vpack.c.bf16 %v1339_v11, %v1339_v11  ;;  %v6561_v9 = vld [vmem:[%s7973_s11 + $0x8] sm:$0xff]  }
 0x33f   : > { %6062 = vmatpush3.bf16.msra.mxu0 %v6561_v9 }
 0x340   : > { %v1571_v15 = vsel %vm1569_vm3, %v1565_v12, 0  ;;  %6073 = vmatprep.subr.bf16.mxu0 %v6718_v23 }
 0x34b   : > { %v1417_v61 = vpop.f32.mrb[8].mxu1  ;;  %v7136_v62 = vpop.f32.mrb[12].mxu0 }
 0x34c   : > { %v1418_v63 = vadd.f32 %v5246_v60, %v1417_v61  ;;  %v5987_v0 = vpop.f32.mrb[9].mxu1  ;;  %v6023_v1 = vpop.f32.mrb[13].mxu0  ;;  %v1692_v58 = vadd.f32 %v5269_v55, %v7136_v62 }
 0x34d   : > { %v1420_v3 = vpop.f32.mrb[10].mxu1  ;;  %v1694_v4 = vpop.f32.mrb[14].mxu0 }
 0x34e   : > { %v1503_v5 = vpack.c.bf16 %v1418_v63, %v1418_v63  ;;  %v5988_v6 = vpop.f32.mrb[11].mxu1  ;;  %v6024_v7 = vpop.f32.mrb[15].mxu0  ;;  %v1859_v60 = vpack.c.bf16 %v1692_v58, %v1692_v58 }
 0x350   : > { %v1509_v10 = vsel %vm1504_vm2, %v1503_v5, 0 }
 0x351   : > { %6002 = vmatpush3.bf16.xpose.msra.mxu1 %v1509_v10 }
 0x352   : > { %6007 = vmatprep.subr.bf16.mxu1 %v6718_v23 }
 0x358   : > { %6004 = vmatmul.mubr.msk.bf16.vlgmr.msra.gmra.mrb[12].mxu1 %vm1504_vm2, %v1502_v13  ;;  %v6556_v13 = vld [vmem:[%s7973_s11] sm:$0xff]  }
 0x359   : > { %6008 = vmatpush3.bf16.msra.mxu1 %v1571_v15  ;;  %6009 = vmatprep.mubr.msk.bf16.mxu1 %vm6719_vm1, %v6718_v23 }
 0x35a   : > { %6025 = vmatprep.subr.bf16.mxu1 %v6718_v23 }
 0x35b   : > { %v1853_v16 = vpop.f32.mrb[16].mxu0 }
 0x35c   : > { %v6047_v17 = vpop.f32.mrb[17].mxu0  ;;  %v1854_v56 = vadd.f32 %v5299_v51, %v1853_v16  ;;  %v6557_v16 = vld [vmem:[%s8008_s25 + $0x40] sm:$0xff]  }
 0x35d   : > { %v1856_v18 = vpop.f32.mrb[18].mxu0 }
 0x35e   : > { %v6048_v19 = vpop.f32.mrb[19].mxu0  ;;  %v1920_v59 = vpack.c.bf16 %v1854_v56, %v1854_v56  ;;  %v6558_v18 = vld [vmem:[%s8008_s25 + $0x48] sm:$0xff]  }
 0x35f   : > { %v6559_v19 = vld [vmem:[%s8008_s25 + $0x50] sm:$0xff]  }
 0x360   : > { %v1925_v61 = vsel %vm1569_vm3, %v1920_v59, 0 }
 0x42b   : > { %v1545_v22 = vpop.f32.mrb[12].mxu1 }
 0x42c   : > { %v1551_v24 = vsel %vm712_vm4, %v1545_v22, -1e+30  ;;  %v6005_v25 = vpop.f32.mrb[13].mxu1 }
 0x42d   : > { %v1548_v26 = vpop.f32.mrb[14].mxu1  ;;  %v1553_v27 = vsel %vm1552_vm5, %v1551_v24, -inf }
 0x42e   : > { %1554 = vmax.xlane.f32.xlu1 %v1553_v27  ;;  %v6006_v28 = vpop.f32.mrb[15].mxu1 }
 0x4bb   : > { %v1555_v29 = vpop.xlane.xlu1 %1554 }
 0x4bc   : > { %v1556_v30 = vsub.f32 %v1551_v24, %v1555_v29  ;;  %v6562_v24 = vld [vmem:[%s8005_s24 + $0x40] sm:$0xff]   ;;  %v6563_v29 = vld [vmem:[%s8005_s24 + $0x48] sm:$0xff]  }
 0x4be   : > { %v1557_v31 = vmul.f32 1.442695, %v1556_v30 }
 0x4c0   : > { %6666 = vpow2.f32 %v1557_v31  ;;  %v6564_v31 = vld [vmem:[%s8005_s24 + $0x50] sm:$0xff]  }
 0x4ca   : > { %v6667_v32 = vpop.eup %6666 }
 0x4cb   : > { %v1559_v33 = vsel %vm1552_vm5, %v6667_v32, 0.0 }
 0x4cc   : > { %1560 = vadd.xlane.f32.xlu1 %v1559_v33 }
 0x559   : > { %v1561_v34 = vpop.xlane.xlu1 %1560 }
 0x55a   : > { %6668 = vrcp.f32 %v1561_v34 }
 0x564   : > { %v6669_v35 = vpop.eup %6668 }
 0x565   : > { %v1563_v36 = vmul.f32 %v6669_v35, %v6667_v32  ;;  %v6565_v35 = vld [vmem:[%s8005_s24 + $0x58] sm:$0xff]  }
 0x567   : > { %v1564_v38 = vpack.c.bf16 %v1563_v36, %v1563_v36  ;;  %v6566_v36 = vld [vmem:[%s7971_s9 + $0x40] sm:$0xff]  }
 0x569   : > { %6010 = vmatmul.mubr.msk.bf16.vlgmr.msra.gmra.mrb[16].mxu1 %vm1552_vm5, %v1564_v38  ;;  %v5337_v38 = vld [vmem:[%s7970_s8 + $0x2] ss:$0 sm:$0xff] }
 0x56a   : > { %6026 = vmatpush3.bf16.msra.mxu1 %v6552_v37  ;;  %6033 = vmatprep.mubr.msk.bf16.mxu1 %vm6719_vm1, %v6718_v23  ;;  %v6567_v37 = vld [vmem:[%s7971_s9 + $0x48] sm:$0xff]  }
 0x56b   : > { %6027 = vmatprep.subr.bf16.mxu1 %v6718_v23 }
 0x56e   : > { %6028 = vmatpush3.bf16.msra.mxu1 %v6553_v39 }
 0x56f   : > { %6029 = vmatprep.subr.bf16.mxu1 %v6718_v23 }
 0x572   : > { %6030 = vmatpush3.bf16.msra.mxu1 %v6554_v40  ;;  %v6568_v40 = vld [vmem:[%s7971_s9 + $0x50] sm:$0xff]  }
 0x573   : > { %6031 = vmatprep.subr.bf16.mxu1 %v6718_v23 }
 0x576   : > { %6032 = vmatpush3.bf16.msra.mxu1 %v6555_v42 }
 0x577   : > { %6049 = vmatprep.subr.bf16.mxu1 %v6718_v23 }
 0x579   : > { %6034 = vmatmul.mubr.msk.bf16.vlgmr.msra.gmra.mrb[20].mxu1 %vm1232_vm0, %v7069_v41 }
 0x57a   : > { %6051 = vmatprep.mubr.msk.bf16.mxu1 %vm6719_vm1, %v6718_v23 }
 0x63c   : > { %v1607_v43 = vpop.f32.mrb[16].mxu1 }
 0x63d   : > { %v6011_v44 = vpop.f32.mrb[17].mxu1  ;;  %v1613_v17 = vpack.c.bf16 %v1607_v43, %v1607_v43 }
 0x63e   : > { %v1610_v45 = vpop.f32.mrb[18].mxu1 }
 0x63f   : > { %v6012_v46 = vpop.f32.mrb[19].mxu1 }
 0x64c   : > { %v1772_v48 = vpop.f32.mrb[20].mxu1 }
 0x64d   : > { %v1773_v49 = vadd.f32 %v5284_v47, %v1772_v48  ;;  %v6035_v50 = vpop.f32.mrb[21].mxu1  ;;  %v6569_v47 = vld [vmem:[%s7971_s9 + $0x58] sm:$0xff]  }
 0x64e   : > { %v1775_v52 = vpop.f32.mrb[22].mxu1 }
 0x64f   : > { %v1860_v53 = vpack.c.bf16 %v1773_v49, %v1773_v49  ;;  %v6036_v54 = vpop.f32.mrb[23].mxu1 }
 0x650   : > { %v5322_v54 = vld [vmem:[%s8009_s28 + $0x2] ss:$0 sm:$0xff] }
 0x651   : > { %v1865_v57 = vsel %vm1504_vm2, %v1860_v53, 0 }
 0x652   : > { %6050 = vmatpush3.bf16.xpose.msra.mxu1 %v1865_v57 }
 0x653   : > { %6055 = vmatprep.subr.bf16.mxu1 %v6718_v23 }
 0x659   : > { %6052 = vmatmul.mubr.msk.bf16.vlgmr.msra.gmra.mrb[24].mxu1 %vm1504_vm2, %v1859_v60 }
 0x65a   : > { %6056 = vmatpush3.bf16.msra.mxu1 %v1925_v61  ;;  %6057 = vmatprep.mubr.msk.bf16.mxu1 %vm6719_vm1, %v6718_v23  ;;  %v5352_v61 = vld [vmem:[%s7972_s10 + $0x2] ss:$0 sm:$0xff] }
 0x65b   : > { %6067 = vmatprep.subr.bf16.mxu1 %v6718_v23 }
 0x72c   : > { %v1901_v63 = vpop.f32.mrb[24].mxu1 }
 0x72d   : > { %v1907_v0 = vsel %vm712_vm4, %v1901_v63, -1e+30  ;;  %v6053_v1 = vpop.f32.mrb[25].mxu1 }
 0x72e   : > { %v1904_v62 = vpop.f32.mrb[26].mxu1  ;;  %v1908_v2 = vsel %vm1552_vm5, %v1907_v0, -inf }
 0x72f   : > { %1909 = vmax.xlane.f32.xlu0 %v1908_v2  ;;  %v6054_v3 = vpop.f32.mrb[27].mxu1 }
 0x7bc   : > { %v1910_v4 = vpop.xlane.xlu0 %1909 }
 0x7bd   : > { %v1911_v5 = vsub.f32 %v1907_v0, %v1910_v4 }
 0x7bf   : > { %v1912_v6 = vmul.f32 1.442695, %v1911_v5 }
 0x7c1   : > { %6670 = vpow2.f32 %v1912_v6 }
 0x7cb   : > { %v6671_v7 = vpop.eup %6670 }
 0x7cc   : > { %v1914_v8 = vsel %vm1552_vm5, %v6671_v7, 0.0 }
 0x7cd   : > { %1915 = vadd.xlane.f32.xlu1 %v1914_v8 }
 0x85a   : > { %v1916_v10 = vpop.xlane.xlu1 %1915 }
 0x85b   : > { %6672 = vrcp.f32 %v1916_v10 }
 0x865   : > { %v6673_v11 = vpop.eup %6672 }
 0x866   : > { %v1918_v12 = vmul.f32 %v6673_v11, %v6671_v7 }
 0x868   : > { %v1919_v15 = vpack.c.bf16 %v1918_v12, %v1918_v12 }
 0x86a   : > { %6058 = vmatmul.mubr.msk.bf16.vlgmr.msra.gmra.mrb[28].mxu1 %vm1552_vm5, %v1919_v15 }
 0x86b   : > { %6068 = vmatpush3.bf16.msra.mxu1 %v6556_v13  ;;  %6069 = vmatprep.mubr.msk.bf16.mxu1 %vm6719_vm1, %v6718_v23 }
 0x86c   : > { %6085 = vmatprep.subr.bf16.mxu1 %v6718_v23 }
 0x872   : > { %6070 = vmatmul.mubr.msk.bf16.vlgmr.msra.gmra.mrb[32].mxu1 %vm1504_vm2, %v1613_v17  ;;  %v6578_v17 = vld [vmem:[%s7973_s11 + $0x10] sm:$0xff]  }
 0x873   : > { %6086 = vmatpush3.bf16.msra.mxu1 %v6557_v16  ;;  %6093 = vmatprep.mubr.msk.bf16.mxu1 %vm6719_vm1, %v6718_v23 }
 0x874   : > { %6087 = vmatprep.subr.bf16.mxu1 %v6718_v23 }
 0x877   : > { %6088 = vmatpush3.bf16.msra.mxu1 %v6558_v18 }
 0x878   : > { %6089 = vmatprep.subr.bf16.mxu1 %v6718_v23 }
 0x87b   : > { %6090 = vmatpush3.bf16.msra.mxu1 %v6559_v19 }
 0x87c   : > { %6091 = vmatprep.subr.bf16.mxu1 %v6718_v23 }
 0x87f   : > { %6092 = vmatpush3.bf16.msra.mxu1 %v6560_v20 }
 0x880   : > { %6109 = vmatprep.subr.bf16.mxu1 %v6718_v23 }
 0x882   : > { %6094 = vmatmul.mubr.msk.bf16.vlgmr.msra.gmra.mrb[36].mxu1 %vm1232_vm0, %v7069_v41 }
 0x883   : > { %6111 = vmatprep.mubr.msk.bf16.mxu1 %vm6719_vm1, %v6718_v23 }
 0x93d   : > { %v1961_v22 = vpop.f32.mrb[28].mxu1 }
 0x93e   : > { %v1967_v25 = vpack.c.bf16 %v1961_v22, %v1961_v22  ;;  %v6059_v26 = vpop.f32.mrb[29].mxu1  ;;  %v6570_v22 = vld [vmem:[%s8005_s24 + $0x60] sm:$0xff]  }
 0x93f   : > { %v1964_v27 = vpop.f32.mrb[30].mxu1  ;;  %v6572_v26 = vld [vmem:[%s8005_s24 + $0x70] sm:$0xff]  }
 0x940   : > { %v6060_v28 = vpop.f32.mrb[31].mxu1  ;;  %6064 = vmatmul.mubr.msk.bf16.vlgmr.msra.gmra.mrb[20].mxu0 %vm1504_vm2, %v1967_v25  ;;  %v6571_v25 = vld [vmem:[%s8005_s24 + $0x68] sm:$0xff]   ;;  %v6573_v27 = vld [vmem:[%s8005_s24 + $0x78] sm:$0xff]  }
 0x941   : > { %6074 = vmatpush3.bf16.msra.mxu0 %v6562_v24  ;;  %6081 = vmatprep.mubr.msk.bf16.mxu0 %vm6719_vm1, %v6718_v23  ;;  %v6574_v28 = vld [vmem:[%s7971_s9 + $0x60] sm:$0xff]  }
 0x942   : > { %6075 = vmatprep.subr.bf16.mxu0 %v6718_v23 }
 0x945   : > { %6076 = vmatpush3.bf16.msra.mxu0 %v6563_v29  ;;  %v2063_v30 = vpop.f32.mrb[32].mxu1  ;;  %v6575_v29 = vld [vmem:[%s7971_s9 + $0x68] sm:$0xff]  }
 0x946   : > { %v6071_v32 = vpop.f32.mrb[33].mxu1  ;;  %6077 = vmatprep.subr.bf16.mxu0 %v6718_v23 }
 0x947   : > { %v2066_v33 = vpop.f32.mrb[34].mxu1 }
 0x948   : > { %v6072_v34 = vpop.f32.mrb[35].mxu1  ;;  %v6579_v33 = vld [vmem:[%s8008_s25 + $0x60] sm:$0xff]  }
 0x949   : > { %6078 = vmatpush3.bf16.msra.mxu0 %v6564_v31  ;;  %v6577_v31 = vld [vmem:[%s7971_s9 + $0x78] sm:$0xff]  }
 0x94a   : > { %6079 = vmatprep.subr.bf16.mxu0 %v6718_v23 }
 0x94d   : > { %6080 = vmatpush3.bf16.msra.mxu0 %v6565_v35 }
 0x94e   : > { %6097 = vmatprep.subr.bf16.mxu0 %v6718_v23 }
 0x950   : > { %6082 = vmatmul.mubr.msk.bf16.vlgmr.msra.gmra.mrb[24].mxu0 %vm1232_vm0, %v7069_v41 }
 0x951   : > { %6098 = vmatpush3.bf16.msra.mxu0 %v6566_v36  ;;  %6105 = vmatprep.mubr.msk.bf16.mxu0 %vm6719_vm1, %v6718_v23 }
 0x952   : > { %6099 = vmatprep.subr.bf16.mxu0 %v6718_v23 }
 0x955   : > { %v2225_v39 = vpop.f32.mrb[36].mxu1  ;;  %6100 = vmatpush3.bf16.msra.mxu0 %v6567_v37 }
 0x956   : > { %v2226_v42 = vadd.f32 %v5337_v38, %v2225_v39  ;;  %v6095_v43 = vpop.f32.mrb[37].mxu1  ;;  %6101 = vmatprep.subr.bf16.mxu0 %v6718_v23  ;;  %v6580_v38 = vld [vmem:[%s8008_s25 + $0x68] sm:$0xff]   ;;  %v6581_v39 = vld [vmem:[%s8008_s25 + $0x70] sm:$0xff]  }
 0x957   : > { %v2228_v44 = vpop.f32.mrb[38].mxu1 }
 0x958   : > { %v2313_v45 = vpack.c.bf16 %v2226_v42, %v2226_v42  ;;  %v6096_v46 = vpop.f32.mrb[39].mxu1 }
 0x959   : > { %6102 = vmatpush3.bf16.msra.mxu0 %v6568_v40  ;;  %v6582_v40 = vld [vmem:[%s8008_s25 + $0x78] sm:$0xff]  }
 0x95a   : > { %v2318_v48 = vsel %vm1504_vm2, %v2313_v45, 0  ;;  %6103 = vmatprep.subr.bf16.mxu0 %v6718_v23 }
 0x95b   : > { %6110 = vmatpush3.bf16.xpose.msra.mxu1 %v2318_v48 }
 0x95c   : > { %6115 = vmatprep.subr.bf16.mxu1 %v6718_v23 }
 0x95d   : > { %6104 = vmatpush3.bf16.msra.mxu0 %v6569_v47 }
 0x95e   : > { %6121 = vmatprep.subr.bf16.mxu0 %v6718_v23 }
 0x960   : > { %6106 = vmatmul.mubr.msk.bf16.vlgmr.msra.gmra.mrb[28].mxu0 %vm1232_vm0, %v7069_v41 }
 0x961   : > { %6123 = vmatprep.mubr.msk.bf16.mxu0 %vm6719_vm1, %v6718_v23  ;;  %6122 = vmatpush3.bf16.msra.mxu0 %v6578_v17  ;;  %v6583_v17 = vld [vmem:[%s7973_s11 + $0x18] sm:$0xff]  }
 0x962   : > { %6139 = vmatprep.subr.bf16.mxu0 %v6718_v23 }
 0xa13   : > { %v2014_v49 = vpop.f32.mrb[20].mxu0 }
 0xa14   : > { %v7284_v50 = vadd.f32 %v2063_v30, %v2014_v49  ;;  %v6065_v51 = vpop.f32.mrb[21].mxu0  ;;  %v6576_v30 = vld [vmem:[%s7971_s9 + $0x70] sm:$0xff]  }
 0xa15   : > { %v2017_v52 = vpop.f32.mrb[22].mxu0 }
 0xa16   : > { %v6066_v53 = vpop.f32.mrb[23].mxu0 }
 0xa23   : > { %v2144_v55 = vpop.f32.mrb[24].mxu0 }
 0xa24   : > { %v2145_v56 = vadd.f32 %v5322_v54, %v2144_v55  ;;  %v6083_v57 = vpop.f32.mrb[25].mxu0 }
 0xa25   : > { %v2147_v58 = vpop.f32.mrb[26].mxu0 }
 0xa26   : > { %v2312_v59 = vpack.c.bf16 %v2145_v56, %v2145_v56  ;;  %v6084_v60 = vpop.f32.mrb[27].mxu0  ;;  %v5388_v56 = vld [vmem:[%s7970_s8 + $0x3] ss:$0 sm:$0xff] }
 0xa28   : > { %6112 = vmatmul.mubr.msk.bf16.vlgmr.msra.gmra.mrb[40].mxu1 %vm1504_vm2, %v2312_v59  ;;  %v5403_v59 = vld [vmem:[%s7972_s10 + $0x3] ss:$0 sm:$0xff] }
 0xa29   : > { %6117 = vmatprep.mubr.msk.bf16.mxu1 %vm6719_vm1, %v6718_v23 }
 0xa33   : > { %v2306_v63 = vpop.f32.mrb[28].mxu0 }
 0xa34   : > { %v2307_v0 = vadd.f32 %v5352_v61, %v2306_v63  ;;  %v6107_v1 = vpop.f32.mrb[29].mxu0 }
 0xa35   : > { %v2309_v62 = vpop.f32.mrb[30].mxu0 }
 0xa36   : > { %v2373_v2 = vpack.c.bf16 %v2307_v0, %v2307_v0  ;;  %v6108_v3 = vpop.f32.mrb[31].mxu0 }
 0xa38   : > { %v2378_v4 = vsel %vm1569_vm3, %v2373_v2, 0 }
 0xa39   : > { %6116 = vmatpush3.bf16.msra.mxu1 %v2378_v4 }
 0xa3a   : > { %6127 = vmatprep.subr.bf16.mxu1 %v6718_v23 }
 0xafb   : > { %v2354_v5 = vpop.f32.mrb[40].mxu1 }
 0xafc   : > { %v2360_v6 = vsel %vm712_vm4, %v2354_v5, -1e+30  ;;  %v6113_v7 = vpop.f32.mrb[41].mxu1 }
 0xafd   : > { %v2357_v8 = vpop.f32.mrb[42].mxu1  ;;  %v2361_v9 = vsel %vm1552_vm5, %v2360_v6, -inf }
 0xafe   : > { %2362 = vmax.xlane.f32.xlu0 %v2361_v9  ;;  %v6114_v10 = vpop.f32.mrb[43].mxu1 }
 0xb8b   : > { %v2363_v11 = vpop.xlane.xlu0 %2362 }
 0xb8c   : > { %v2364_v12 = vsub.f32 %v2360_v6, %v2363_v11 }
 0xb8e   : > { %v2365_v13 = vmul.f32 1.442695, %v2364_v12 }
 0xb90   : > { %6674 = vpow2.f32 %v2365_v13 }
 0xb9a   : > { %v6675_v15 = vpop.eup %6674 }
 0xb9b   : > { %v2367_v16 = vsel %vm1552_vm5, %v6675_v15, 0.0 }
 0xb9c   : > { %2368 = vadd.xlane.f32.xlu1 %v2367_v16 }
 0xc29   : > { %v2369_v18 = vpop.xlane.xlu1 %2368 }
 0xc2a   : > { %6676 = vrcp.f32 %v2369_v18 }
 0xc34   : > { %v6677_v19 = vpop.eup %6676 }
 0xc35   : > { %v2371_v20 = vmul.f32 %v6677_v19, %v6675_v15 }
 0xc37   : > { %v2372_v24 = vpack.c.bf16 %v2371_v20, %v2371_v20 }
 0xc39   : > { %6118 = vmatmul.mubr.msk.bf16.vlgmr.msra.gmra.mrb[44].mxu1 %vm1552_vm5, %v2372_v24 }
 0xc3a   : > { %6128 = vmatpush3.bf16.msra.mxu1 %v6570_v22  ;;  %6135 = vmatprep.mubr.msk.bf16.mxu1 %vm6719_vm1, %v6718_v23 }
 0xc3b   : > { %6129 = vmatprep.subr.bf16.mxu1 %v6718_v23 }
 0xc3e   : > { %6130 = vmatpush3.bf16.msra.mxu1 %v6571_v25 }
 0xc3f   : > { %6131 = vmatprep.subr.bf16.mxu1 %v6718_v23 }
 0xc42   : > { %6132 = vmatpush3.bf16.msra.mxu1 %v6572_v26 }
 0xc43   : > { %6133 = vmatprep.subr.bf16.mxu1 %v6718_v23 }
 0xc46   : > { %6134 = vmatpush3.bf16.msra.mxu1 %v6573_v27 }
 0xc47   : > { %6151 = vmatprep.subr.bf16.mxu1 %v6718_v23 }
 0xc49   : > { %6136 = vmatmul.mubr.msk.bf16.vlgmr.msra.gmra.mrb[48].mxu1 %vm1232_vm0, %v7069_v41 }
 0xc4a   : > { %6152 = vmatpush3.bf16.msra.mxu1 %v6574_v28  ;;  %6159 = vmatprep.mubr.msk.bf16.mxu1 %vm6719_vm1, %v6718_v23 }
 0xc4b   : > { %6153 = vmatprep.subr.bf16.mxu1 %v6718_v23 }
 0xc4e   : > { %6154 = vmatpush3.bf16.msra.mxu1 %v6575_v29 }
 0xc4f   : > { %6155 = vmatprep.subr.bf16.mxu1 %v6718_v23 }
 0xc52   : > { %6156 = vmatpush3.bf16.msra.mxu1 %v6576_v30 }
 0xc53   : > { %6157 = vmatprep.subr.bf16.mxu1 %v6718_v23 }
 0xc56   : > { %6158 = vmatpush3.bf16.msra.mxu1 %v6577_v31 }
 0xc57   : > { %6175 = vmatprep.subr.bf16.mxu1 %v6718_v23 }
 0xc59   : > { %6160 = vmatmul.mubr.msk.bf16.vlgmr.msra.gmra.mrb[52].mxu1 %vm1232_vm0, %v7069_v41 }
 0xc5a   : > { %6177 = vmatprep.mubr.msk.bf16.mxu1 %vm6719_vm1, %v6718_v23  ;;  %6176 = vmatpush3.bf16.msra.mxu1 %v6583_v17 }
 0xc5b   : > { %6193 = vmatprep.subr.bf16.mxu1 %v6718_v23 }
 0xd0c   : > { %v2414_v32 = vpop.f32.mrb[44].mxu1 }
 0xd0d   : > { %v2420_v34 = vpack.c.bf16 %v2414_v32, %v2414_v32  ;;  %v6119_v35 = vpop.f32.mrb[45].mxu1  ;;  %v5415_v32 = vld [vmem:[%s7974_s12] ss:$0 sm:$0xff] }
 0xd0e   : > { %v2417_v36 = vpop.f32.mrb[46].mxu1 }
 0xd0f   : > { %v6120_v37 = vpop.f32.mrb[47].mxu1  ;;  %6124 = vmatmul.mubr.msk.bf16.vlgmr.msra.gmra.mrb[32].mxu0 %vm1504_vm2, %v2420_v34 }
 0xd10   : > { %6140 = vmatpush3.bf16.msra.mxu0 %v6579_v33  ;;  %6147 = vmatprep.mubr.msk.bf16.mxu0 %vm6719_vm1, %v6718_v23 }
 0xd11   : > { %6141 = vmatprep.subr.bf16.mxu0 %v6718_v23 }
 0xd14   : > { %6142 = vmatpush3.bf16.msra.mxu0 %v6580_v38 }
 0xd15   : > { %6143 = vmatprep.subr.bf16.mxu0 %v6718_v23 }
 0xd18   : > { %6144 = vmatpush3.bf16.msra.mxu0 %v6581_v39 }
 0xd19   : > { %6145 = vmatprep.subr.bf16.mxu0 %v6718_v23 }
 0xd1c   : > { %v2549_v42 = vpop.f32.mrb[48].mxu1  ;;  %6146 = vmatpush3.bf16.msra.mxu0 %v6582_v40 }
 0xd1d   : > { %v6137_v43 = vpop.f32.mrb[49].mxu1  ;;  %6163 = vmatprep.subr.bf16.mxu0 %v6718_v23 }
 0xd1e   : > { %v2552_v44 = vpop.f32.mrb[50].mxu1 }
 0xd1f   : > { %v6138_v45 = vpop.f32.mrb[51].mxu1  ;;  %6148 = vmatmul.mubr.msk.bf16.vlgmr.msra.gmra.mrb[36].mxu0 %vm1232_vm0, %v7069_v41  ;;  %v6584_v44 = vld [vmem:[%s7977_s15] sm:$0xff]  }
 0xd20   : > { %6165 = vmatprep.mubr.msk.bf16.mxu0 %vm6719_vm1, %v6718_v23  ;;  %v6586_v45 = vld [vmem:[%s7977_s15 + $0x10] sm:$0xff]  }
 0xd2c   : > { %v2711_v46 = vpop.f32.mrb[52].mxu1 }
 0xd2d   : > { %v6161_v47 = vpop.f32.mrb[53].mxu1  ;;  %v2712_v0 = vadd.f32 %v5403_v59, %v2711_v46  ;;  %v6587_v46 = vld [vmem:[%s7977_s15 + $0x18] sm:$0xff]  }
 0xd2e   : > { %v2714_v48 = vpop.f32.mrb[54].mxu1  ;;  %v6588_v47 = vld [vmem:[%s7979_s17] sm:$0xff]  }
 0xd2f   : > { %v6162_v49 = vpop.f32.mrb[55].mxu1  ;;  %v2778_v2 = vpack.c.bf16 %v2712_v0, %v2712_v0  ;;  %v6589_v48 = vld [vmem:[%s7979_s17 + $0x8] sm:$0xff]   ;;  %v6595_v0 = vld [vmem:[%s7979_s17 + $0x38] sm:$0xff]  }
 0xd30   : > { %v6590_v49 = vld [vmem:[%s7979_s17 + $0x10] sm:$0xff]  }
 0xd31   : > { %v2783_v4 = vsel %vm1569_vm3, %v2778_v2, 0 }
 0xde2   : > { %v2467_v51 = vpop.f32.mrb[32].mxu0 }
 0xde3   : > { %v2473_v52 = vadd.f32 %v2467_v51, %v7284_v50  ;;  %v6125_v53 = vpop.f32.mrb[33].mxu0  ;;  %v5373_v50 = vld [vmem:[%s8009_s28 + $0x3] ss:$0 sm:$0xff] }
 0xde4   : > { %v2470_v54 = vpop.f32.mrb[34].mxu0  ;;  %v2550_v62 = vadd.f32 %v5373_v50, %v2549_v42  ;;  %v6594_v50 = vld [vmem:[%s7979_s17 + $0x30] sm:$0xff]  }
 0xde5   : > { %v6126_v55 = vpop.f32.mrb[35].mxu0 }
 0xde6   : > { %v2717_v3 = vpack.c.bf16 %v2550_v62, %v2550_v62  ;;  %v5416_v55 = vld [vmem:[%s7975_s13] ss:$0 sm:$0xff] }
 0xdf2   : > { %v2630_v57 = vpop.f32.mrb[36].mxu0 }
 0xdf3   : > { %v2631_v58 = vadd.f32 %v5388_v56, %v2630_v57  ;;  %v6149_v41 = vpop.f32.mrb[37].mxu0  ;;  %v5417_v57 = vld [vmem:[%s7976_s14] ss:$0 sm:$0xff] }
 0xdf4   : > { %v2633_v60 = vpop.f32.mrb[38].mxu0 }
 0xdf5   : > { %v2718_v61 = vpack.c.bf16 %v2631_v58, %v2631_v58  ;;  %v6150_v63 = vpop.f32.mrb[39].mxu0  ;;  %v6591_v60 = vld [vmem:[%s7979_s17 + $0x18] sm:$0xff]  }
 0xdf6   : > { %v6593_v63 = vld [vmem:[%s7979_s17 + $0x28] sm:$0xff]  }
 0xdf7   : > { %v2723_v1 = vsel %vm1504_vm2, %v2718_v61, 0  ;;  %v6592_v61 = vld [vmem:[%s7979_s17 + $0x20] sm:$0xff]  }
 0xdf8   : > { %6164 = vmatpush3.bf16.xpose.msra.mxu0 %v2723_v1  ;;  %v5418_v1 = vld [vmem:[%s7978_s16] ss:$0 sm:$0xff] }
 0xdf9   : > { %6169 = vmatprep.subr.bf16.mxu0 %v6718_v23 }
 0xdff   : > { %6166 = vmatmul.mubr.msk.bf16.vlgmr.msra.gmra.mrb[40].mxu0 %vm1504_vm2, %v2717_v3 }
 0xe00   : > { %6170 = vmatpush3.bf16.msra.mxu0 %v2783_v4  ;;  %6171 = vmatprep.mubr.msk.bf16.mxu0 %vm6719_vm1, %v6718_v23 }
 0xe01   : > { %6181 = vmatprep.subr.bf16.mxu0 %v6718_v23 }
 0xed2   : > { %v2759_v5 = vpop.f32.mrb[40].mxu0 }
 0xed3   : > { %v2765_v6 = vsel %vm712_vm4, %v2759_v5, -1e+30  ;;  %v6167_v7 = vpop.f32.mrb[41].mxu0 }
 0xed4   : > { %v2762_v8 = vpop.f32.mrb[42].mxu0  ;;  %v2766_v9 = vsel %vm1552_vm5, %v2765_v6, -inf }
 0xed5   : > { %2767 = vmax.xlane.f32.xlu0 %v2766_v9  ;;  %v6168_v10 = vpop.f32.mrb[43].mxu0 }
 0xf62   : > { %v2768_v11 = vpop.xlane.xlu0 %2767 }
 0xf63   : > { %v2769_v12 = vsub.f32 %v2765_v6, %v2768_v11 }
 0xf65   : > { %v2770_v13 = vmul.f32 1.442695, %v2769_v12  ;;  %v5424_v12 = vld [vmem:[%s7980_s18] ss:$0 sm:$0xff] }
 0xf67   : > { %6678 = vpow2.f32 %v2770_v13 }
 0xf71   : > { %v6679_v15 = vpop.eup %6678 }
 0xf72   : > { %v2772_v16 = vsel %vm1552_vm5, %v6679_v15, 0.0 }
 0xf73   : > { %2773 = vadd.xlane.f32.xlu1 %v2772_v16 }
0x1000   : > { %v2774_v18 = vpop.xlane.xlu1 %2773 }
0x1001   : > { %6680 = vrcp.f32 %v2774_v18 }
0x100b   : > { %v6681_v19 = vpop.eup %6680 }
0x100c   : > { %v2776_v20 = vmul.f32 %v6681_v19, %v6679_v15 }
0x100e   : > { %v2777_v22 = vpack.c.bf16 %v2776_v20, %v2776_v20 }
0x1010   : > { %6172 = vmatmul.mubr.msk.bf16.vlgmr.msra.gmra.mrb[44].mxu0 %vm1552_vm5, %v2777_v22 }
0x1011   : > { %6189 = vmatprep.mubr.msk.bf16.mxu0 %vm6719_vm1, %v6718_v23  ;;  %6182 = vmatpush3.bf16.msra.mxu0 %v6584_v44 }
0x1012   : > { %6183 = vmatprep.subr.bf16.mxu0 %v6718_v23 }
0x10e3   : > { %v2819_v24 = vpop.f32.mrb[44].mxu0 }
0x10e4   : > { %v2825_v25 = vpack.c.bf16 %v2819_v24, %v2819_v24  ;;  %v6173_v26 = vpop.f32.mrb[45].mxu0 }
0x10e5   : > { %v2822_v27 = vpop.f32.mrb[46].mxu0 }
0x10e6   : > { %v6174_v28 = vpop.f32.mrb[47].mxu0  ;;  %6178 = vmatmul.mubr.msk.bf16.vlgmr.msra.gmra.mrb[56].mxu1 %vm1504_vm2, %v2825_v25 }
0x10e7   : > { %6209 = vmatprep.mubr.msk.bf16.mxu1 %vm6719_vm1, %v6718_v23  ;;  %6194 = vmatpush3.bf16.msra.mxu1 %v6588_v47  ;;  %v6596_v28 = vld [vmem:[%s8005_s24 + $0x80] sm:$0xff]   ;;  %v6605_v47 = vld [vmem:[%s8008_s25 + $0x88] sm:$0xff]  }
0x10e8   : > { %6195 = vmatprep.subr.bf16.mxu1 %v6718_v23 }
0x10eb   : > { %6196 = vmatpush3.bf16.msra.mxu1 %v6589_v48  ;;  %v6606_v48 = vld [vmem:[%s8008_s25 + $0x90] sm:$0xff]  }
0x10ec   : > { %6197 = vmatprep.subr.bf16.mxu1 %v6718_v23 }
0x10ef   : > { %6198 = vmatpush3.bf16.msra.mxu1 %v6590_v49  ;;  %v6607_v49 = vld [vmem:[%s8008_s25 + $0x98] sm:$0xff]  }
0x10f0   : > { %6199 = vmatprep.subr.bf16.mxu1 %v6718_v23 }
0x10f3   : > { %6200 = vmatpush3.bf16.msra.mxu1 %v6591_v60 }
0x10f4   : > { %6201 = vmatprep.subr.bf16.mxu1 %v6718_v23 }
0x10f7   : > { %6202 = vmatpush3.bf16.msra.mxu1 %v6592_v61 }
0x10f8   : > { %6203 = vmatprep.subr.bf16.mxu1 %v6718_v23 }
0x10fb   : > { %6204 = vmatpush3.bf16.msra.mxu1 %v6593_v63  ;;  %v5461_v63 = vld [vmem:[%s7970_s8 + $0x4] ss:$0 sm:$0xff] }
0x10fc   : > { %6205 = vmatprep.subr.bf16.mxu1 %v6718_v23 }
0x10ff   : > { %6206 = vmatpush3.bf16.msra.mxu1 %v6594_v50 }
0x1100   : > { %6207 = vmatprep.subr.bf16.mxu1 %v6718_v23 }
0x1103   : > { %6208 = vmatpush3.bf16.msra.mxu1 %v6595_v0 }
0x1104   : > { %6237 = vmatprep.subr.bf16.mxu1 %v6718_v23 }
0x11b9   : > { %v2872_v29 = vpop.f32.mrb[56].mxu1 }
0x11ba   : > { %v2878_v30 = vadd.f32 %v2872_v29, %v2473_v52  ;;  %v6179_v31 = vpop.f32.mrb[57].mxu1  ;;  %v6597_v29 = vld [vmem:[%s7971_s9 + $0x80] sm:$0xff]  }
0x11bb   : > { %v2875_v33 = vpop.f32.mrb[58].mxu1  ;;  %v6599_v31 = vld [vmem:[%s7971_s9 + $0x88] sm:$0xff]  }
0x11bc   : > { %v2879_v34 = vadd.f32 %v2878_v30, %v7013_v14  ;;  %v6180_v35 = vpop.f32.mrb[59].mxu1  ;;  %v6585_v14 = vld [vmem:[%s7977_s15 + $0x8] sm:$0xff]   ;;  %v6601_v33 = vld [vmem:[%s7971_s9 + $0x90] sm:$0xff]  }
0x11bd   : > { %6184 = vmatpush3.bf16.msra.mxu0 %v6585_v14  ;;  %v6598_v30 = vld [vmem:[%s8005_s24 + $0x88] sm:$0xff]   ;;  %v6603_v35 = vld [vmem:[%s7971_s9 + $0x98] sm:$0xff]  }
0x11be   : > { %v7406_v36 = vadd.f32 %v5415_v32, %v2879_v34  ;;  %6185 = vmatprep.subr.bf16.mxu0 %v6718_v23  ;;  %v6600_v32 = vld [vmem:[%s8005_s24 + $0x90] sm:$0xff]   ;;  %v6602_v34 = vld [vmem:[%s8005_s24 + $0x98] sm:$0xff]  }
0x11c0   : > { %v2890_v37 = vsel %vm1232_vm0, %v7406_v36, 0.0 }
0x11c1   : > { %2891 = vadd.xlane.f32.xlu0 %v2890_v37  ;;  %6186 = vmatpush3.bf16.msra.mxu0 %v6586_v45  ;;  %v6604_v45 = vld [vmem:[%s8008_s25 + $0x80] sm:$0xff]  }
0x11c2   : > { %6187 = vmatprep.subr.bf16.mxu0 %v6718_v23 }
0x11c5   : > { %6188 = vmatpush3.bf16.msra.mxu0 %v6587_v46 }
0x11c6   : > { %6213 = vmatprep.subr.bf16.mxu0 %v6718_v23 }
0x124e   : > { %v2892_v38 = vpop.xlane.xlu0 %2891 }
0x124f   : > { %v2893_v39 = vmul.f32 0.015625, %v2892_v38 }
0x1251   : > { %v2894_v40 = vsub.f32 %v7406_v36, %v2893_v39 }
0x1253   : > { %v2895_v42 = vmul.f32 %v2894_v40, %v2894_v40 }
0x1255   : > { %v2896_v43 = vsel %vm1232_vm0, %v2895_v42, 0.0 }
0x1256   : > { %2897 = vadd.xlane.f32.xlu1 %v2896_v43  ;;  %v5436_v43 = vld [vmem:[%s8007_s3 + $0x1] ss:$0 sm:$0xff] }
0x12e3   : > { %v2898_v51 = vpop.xlane.xlu1 %2897 }
0x12e4   : > { %v2899_v52 = vmul.f32 0.015625, %v2898_v51  ;;  %v5476_v51 = vld [vmem:[%s7972_s10 + $0x4] ss:$0 sm:$0xff] }
0x12e6   : > { %v2900_v53 = vadd.f32 1e-06, %v2899_v52 }
0x12e8   : > { %6682 = vrsqrt.f32 %v2900_v53 }
0x12f2   : > { %v6683_v54 = vpop.eup %6682 }
0x12f3   : > { %v2902_v56 = vmul.f32 %v6683_v54, %v2894_v40  ;;  %v5435_v40 = vld [vmem:[%s8006_s1 + $0x1] ss:$0 sm:$0xff] }
0x12f5   : > { %v2909_v58 = vmul.f32 %v5416_v55, %v2902_v56 }
0x12f7   : > { %v2916_v41 = vadd.f32 %v5417_v57, %v2909_v58 }
0x12f9   : > { %v2917_v59 = vpack.c.bf16 %v2916_v41, %v2916_v41 }
0x12fb   : > { %6190 = vmatmul.mubr.msk.bf16.vlgmr.msra.gmra.mrb[48].mxu0 %vm1232_vm0, %v2917_v59 }
0x12fc   : > { %6221 = vmatprep.mubr.msk.bf16.mxu0 %vm6719_vm1, %v6718_v23  ;;  %6214 = vmatpush3.bf16.msra.mxu0 %v6596_v28 }
0x12fd   : > { %6215 = vmatprep.subr.bf16.mxu0 %v6718_v23 }
0x1300   : > { %6216 = vmatpush3.bf16.msra.mxu0 %v6598_v30 }
0x1301   : > { %6217 = vmatprep.subr.bf16.mxu0 %v6718_v23 }
0x1304   : > { %6218 = vmatpush3.bf16.msra.mxu0 %v6600_v32 }
0x1305   : > { %6219 = vmatprep.subr.bf16.mxu0 %v6718_v23 }
0x1308   : > { %6220 = vmatpush3.bf16.msra.mxu0 %v6602_v34 }
0x1309   : > { %6225 = vmatprep.subr.bf16.mxu0 %v6718_v23 }
0x13ce   : > { %v2994_v62 = vpop.f32.mrb[48].mxu0 }
0x13cf   : > { %v2995_v2 = vadd.f32 %v5418_v1, %v2994_v62  ;;  %v6191_v3 = vpop.f32.mrb[49].mxu0 }
0x13d0   : > { %v2997_v4 = vpop.f32.mrb[50].mxu0 }
0x13d1   : > { %v3001_v5 = vmul.f32 0.70710677, %v2995_v2  ;;  %v6192_v6 = vpop.f32.mrb[51].mxu0  ;;  %v3000_v8 = vmul.f32 0.5, %v2995_v2  ;;  %v5446_v4 = vld [vmem:[%s8009_s28 + $0x4] ss:$0 sm:$0xff] }
0x13d3   : > { %6684 = verf.f32 %v3001_v5 }
0x13dd   : > { %v6685_v7 = vpop.eup %6684 }
0x13de   : > { %v3003_v9 = vadd.f32 1.0, %v6685_v7  ;;  %v6608_v7 = vld [vmem:[%s8005_s24 + $0xa0] sm:$0xff]  }
0x13e0   : > { %v3004_v10 = vmul.f32 %v3003_v9, %v3000_v8  ;;  %v6609_v9 = vld [vmem:[%s8005_s24 + $0xa8] sm:$0xff]  }
0x13e2   : > { %v3005_v11 = vpack.c.bf16 %v3004_v10, %v3004_v10  ;;  %v6610_v10 = vld [vmem:[%s8005_s24 + $0xb0] sm:$0xff]  }
0x13e4   : > { %6210 = vmatmul.mubr.bf16.vlgmr.msra.gmra.mrb[60].mxu1 %v3005_v11  ;;  %v6611_v11 = vld [vmem:[%s8005_s24 + $0xb8] sm:$0xff]  }
0x13e5   : > { %6245 = vmatprep.mubr.msk.bf16.mxu1 %vm6719_vm1, %v6718_v23  ;;  %6238 = vmatpush3.bf16.msra.mxu1 %v6597_v29 }
0x13e6   : > { %6239 = vmatprep.subr.bf16.mxu1 %v6718_v23 }
0x13e9   : > { %6240 = vmatpush3.bf16.msra.mxu1 %v6599_v31 }
0x13ea   : > { %6241 = vmatprep.subr.bf16.mxu1 %v6718_v23 }
0x13ed   : > { %6242 = vmatpush3.bf16.msra.mxu1 %v6601_v33 }
0x13ee   : > { %6243 = vmatprep.subr.bf16.mxu1 %v6718_v23 }
0x13f1   : > { %6244 = vmatpush3.bf16.msra.mxu1 %v6603_v35 }
0x13f2   : > { %6255 = vmatprep.subr.bf16.mxu1 %v6718_v23 }
0x14b7   : > { %v3111_v13 = vpop.f32.mrb[60].mxu1 }
0x14b8   : > { %v3112_v15 = vadd.f32 %v5424_v12, %v3111_v13  ;;  %v6211_v16 = vpop.f32.mrb[61].mxu1  ;;  %v6612_v12 = vld [vmem:[%s7971_s9 + $0xa0] sm:$0xff]   ;;  %v6613_v13 = vld [vmem:[%s7971_s9 + $0xa8] sm:$0xff]  }
0x14b9   : > { %v3114_v17 = vpop.f32.mrb[62].mxu1  ;;  %v6615_v16 = vld [vmem:[%s7971_s9 + $0xb8] sm:$0xff]  }
0x14ba   : > { %v7478_v18 = vadd.f32 %v3112_v15, %v7406_v36  ;;  %v6212_v19 = vpop.f32.mrb[63].mxu1  ;;  %v6614_v15 = vld [vmem:[%s7971_s9 + $0xb0] sm:$0xff]  }
0x14bc   : > { %v3122_v20 = vsel %vm1232_vm0, %v7478_v18, 0.0 }
0x14bd   : > { %3123 = vadd.xlane.f32.xlu0 %v3122_v20 }
0x154a   : > { %v3124_v22 = vpop.xlane.xlu0 %3123 }
0x154b   : > { %v3125_v24 = vmul.f32 0.015625, %v3124_v22 }
0x154d   : > { %v3126_v25 = vsub.f32 %v7478_v18, %v3125_v24 }
0x154f   : > { %v3127_v26 = vmul.f32 %v3126_v25, %v3126_v25 }
0x1551   : > { %v3128_v27 = vsel %vm1232_vm0, %v3127_v26, 0.0 }
0x1552   : > { %3129 = vadd.xlane.f32.xlu1 %v3128_v27 }
0x15df   : > { %v3130_v36 = vpop.xlane.xlu1 %3129 }
0x15e0   : > { %v3131_v37 = vmul.f32 0.015625, %v3130_v36 }
0x15e2   : > { %v3132_v38 = vadd.f32 1e-06, %v3131_v37 }
0x15e4   : > { %6686 = vrsqrt.f32 %v3132_v38 }
0x15ee   : > { %v6687_v39 = vpop.eup %6686 }
0x15ef   : > { %v3134_v42 = vmul.f32 %v6687_v39, %v3126_v25 }
0x15f1   : > { %v3141_v44 = vmul.f32 %v5435_v40, %v3134_v42 }
0x15f3   : > { %v3148_v14 = vadd.f32 %v5436_v43, %v3141_v44  ;;  %v6616_v43 = vld [vmem:[%s8008_s25 + $0xa0] sm:$0xff]  }
0x15f5   : > { %v7525_v46 = vpack.c.bf16 %v3148_v14, %v3148_v14  ;;  %v6617_v14 = vld [vmem:[%s8008_s25 + $0xa8] sm:$0xff]  }
0x15f7   : > { %6222 = vmatmul.mubr.msk.bf16.vlgmr.msra.gmra.mrb[52].mxu0 %vm1232_vm0, %v7525_v46  ;;  %6246 = vmatmul.mubr.msk.bf16.vlgmr.msra.gmra.mrb[64].mxu1 %vm1232_vm0, %v7525_v46 }
0x15f8   : > { %6226 = vmatpush3.bf16.msra.mxu0 %v6604_v45  ;;  %6233 = vmatprep.mubr.msk.bf16.mxu0 %vm6719_vm1, %v6718_v23  ;;  %v6618_v45 = vld [vmem:[%s8008_s25 + $0xb0] sm:$0xff]  }
0x15f9   : > { %6227 = vmatprep.subr.bf16.mxu0 %v6718_v23  ;;  %6257 = vmatprep.mubr.msk.bf16.mxu1 %vm6719_vm1, %v6718_v23 }
0x15fc   : > { %6228 = vmatpush3.bf16.msra.mxu0 %v6605_v47  ;;  %v6619_v47 = vld [vmem:[%s8008_s25 + $0xb8] sm:$0xff]  }
0x15fd   : > { %6229 = vmatprep.subr.bf16.mxu0 %v6718_v23 }
0x1600   : > { %6230 = vmatpush3.bf16.msra.mxu0 %v6606_v48 }
0x1601   : > { %6231 = vmatprep.subr.bf16.mxu0 %v6718_v23 }
0x1604   : > { %6232 = vmatpush3.bf16.msra.mxu0 %v6607_v49 }
0x1605   : > { %6249 = vmatprep.subr.bf16.mxu0 %v6718_v23 }
0x1607   : > { %6234 = vmatmul.mubr.msk.bf16.vlgmr.msra.gmra.mrb[56].mxu0 %vm1232_vm0, %v7525_v46 }
0x1608   : > { %6251 = vmatprep.mubr.msk.bf16.mxu0 %vm6719_vm1, %v6718_v23 }
0x16ca   : > { %v3228_v52 = vpop.f32.mrb[52].mxu0  ;;  %v3390_v53 = vpop.f32.mrb[64].mxu1 }
0x16cb   : > { %v3391_v54 = vadd.f32 %v5476_v51, %v3390_v53  ;;  %v6223_v55 = vpop.f32.mrb[53].mxu0  ;;  %v6247_v56 = vpop.f32.mrb[65].mxu1  ;;  %v3229_v6 = vadd.f32 %v5446_v4, %v3228_v52  ;;  %v5510_v53 = vld [vmem:[%s7970_s8 + $0x5] ss:$0 sm:$0xff] }
0x16cc   : > { %v3231_v57 = vpop.f32.mrb[54].mxu0  ;;  %v3393_v58 = vpop.f32.mrb[66].mxu1 }
0x16cd   : > { %v3457_v41 = vpack.c.bf16 %v3391_v54, %v3391_v54  ;;  %v6224_v59 = vpop.f32.mrb[55].mxu0  ;;  %v6248_v60 = vpop.f32.mrb[67].mxu1  ;;  %v3396_v8 = vpack.c.bf16 %v3229_v6, %v3229_v6  ;;  %v5525_v57 = vld [vmem:[%s7972_s10 + $0x5] ss:$0 sm:$0xff] }
0x16ce   : > { %v5495_v60 = vld [vmem:[%s8009_s28 + $0x5] ss:$0 sm:$0xff] }
0x16cf   : > { %v3462_v61 = vsel %vm1569_vm3, %v3457_v41, 0 }
0x16d0   : > { %6256 = vmatpush3.bf16.msra.mxu1 %v3462_v61 }
0x16d1   : > { %6273 = vmatprep.subr.bf16.mxu1 %v6718_v23 }
0x16da   : > { %v3309_v50 = vpop.f32.mrb[56].mxu0 }
0x16db   : > { %v3310_v0 = vadd.f32 %v5461_v63, %v3309_v50  ;;  %v6235_v1 = vpop.f32.mrb[57].mxu0 }
0x16dc   : > { %v3312_v62 = vpop.f32.mrb[58].mxu0 }
0x16dd   : > { %v3397_v2 = vpack.c.bf16 %v3310_v0, %v3310_v0  ;;  %v6236_v3 = vpop.f32.mrb[59].mxu0 }
0x16df   : > { %v3402_v5 = vsel %vm1504_vm2, %v3397_v2, 0 }
0x16e0   : > { %6250 = vmatpush3.bf16.xpose.msra.mxu0 %v3402_v5 }
0x16e1   : > { %6261 = vmatprep.subr.bf16.mxu0 %v6718_v23 }
0x16e7   : > { %6252 = vmatmul.mubr.msk.bf16.vlgmr.msra.gmra.mrb[60].mxu0 %vm1504_vm2, %v3396_v8 }
0x16e8   : > { %6262 = vmatpush3.bf16.msra.mxu0 %v6608_v7  ;;  %6269 = vmatprep.mubr.msk.bf16.mxu0 %vm6719_vm1, %v6718_v23 }
0x16e9   : > { %6263 = vmatprep.subr.bf16.mxu0 %v6718_v23 }
0x16ec   : > { %6264 = vmatpush3.bf16.msra.mxu0 %v6609_v9 }
0x16ed   : > { %6265 = vmatprep.subr.bf16.mxu0 %v6718_v23 }
0x16f0   : > { %6266 = vmatpush3.bf16.msra.mxu0 %v6610_v10 }
0x16f1   : > { %6267 = vmatprep.subr.bf16.mxu0 %v6718_v23 }
0x16f4   : > { %6268 = vmatpush3.bf16.msra.mxu0 %v6611_v11 }
0x16f5   : > { %6285 = vmatprep.subr.bf16.mxu0 %v6718_v23 }
0x16f7   : > { %6270 = vmatmul.mubr.msk.bf16.vlgmr.msra.gmra.mrb[64].mxu0 %vm1232_vm0, %v7525_v46 }
0x16f8   : > { %6286 = vmatpush3.bf16.msra.mxu0 %v6612_v12  ;;  %6293 = vmatprep.mubr.msk.bf16.mxu0 %vm6719_vm1, %v6718_v23 }
0x16f9   : > { %6287 = vmatprep.subr.bf16.mxu0 %v6718_v23 }
0x16fc   : > { %6288 = vmatpush3.bf16.msra.mxu0 %v6613_v13  ;;  %v6625_v13 = vld [vmem:[%s7973_s11 + $0x28] sm:$0xff]  }
0x16fd   : > { %6289 = vmatprep.subr.bf16.mxu0 %v6718_v23 }
0x1700   : > { %6290 = vmatpush3.bf16.msra.mxu0 %v6614_v15 }
0x1701   : > { %6291 = vmatprep.subr.bf16.mxu0 %v6718_v23 }
0x1704   : > { %6292 = vmatpush3.bf16.msra.mxu0 %v6615_v16 }
0x1705   : > { %6309 = vmatprep.subr.bf16.mxu0 %v6718_v23 }
0x1707   : > { %6294 = vmatmul.mubr.msk.bf16.vlgmr.msra.gmra.mrb[68].mxu0 %vm1232_vm0, %v7525_v46 }
0x1708   : > { %6311 = vmatprep.mubr.msk.bf16.mxu0 %vm6719_vm1, %v6718_v23  ;;  %6310 = vmatpush3.bf16.msra.mxu0 %v6625_v13 }
0x1709   : > { %6321 = vmatprep.subr.bf16.mxu0 %v6718_v23 }
0x17ba   : > { %v3438_v17 = vpop.f32.mrb[60].mxu0 }
0x17bb   : > { %v3444_v19 = vsel %vm712_vm4, %v3438_v17, -1e+30  ;;  %v6253_v20 = vpop.f32.mrb[61].mxu0 }
0x17bc   : > { %v3441_v22 = vpop.f32.mrb[62].mxu0  ;;  %v3445_v24 = vsel %vm1552_vm5, %v3444_v19, -inf }
0x17bd   : > { %3446 = vmax.xlane.f32.xlu0 %v3445_v24  ;;  %v6254_v25 = vpop.f32.mrb[63].mxu0  ;;  %v6621_v22 = vld [vmem:[%s8008_s25 + $0xc0] sm:$0xff]  }
0x17be   : > { %v6622_v25 = vld [vmem:[%s8008_s25 + $0xc8] sm:$0xff]  }
0x17ca   : > { %v3583_v26 = vpop.f32.mrb[64].mxu0 }
0x17cb   : > { %v6271_v27 = vpop.f32.mrb[65].mxu0  ;;  %v3584_v50 = vadd.f32 %v5495_v60, %v3583_v26  ;;  %v6623_v26 = vld [vmem:[%s8008_s25 + $0xd0] sm:$0xff]  }
0x17cc   : > { %v3586_v28 = vpop.f32.mrb[66].mxu0  ;;  %v6624_v27 = vld [vmem:[%s8008_s25 + $0xd8] sm:$0xff]  }
0x17cd   : > { %v6272_v29 = vpop.f32.mrb[67].mxu0  ;;  %v3751_v1 = vpack.c.bf16 %v3584_v50, %v3584_v50 }
0x17ce   : > { %v6626_v29 = vld [vmem:[%s8005_s24 + $0xc0] sm:$0xff]  }
0x17da   : > { %v3745_v30 = vpop.f32.mrb[68].mxu0 }
0x17db   : > { %v6295_v31 = vpop.f32.mrb[69].mxu0  ;;  %v3746_v61 = vadd.f32 %v5525_v57, %v3745_v30 }
0x17dc   : > { %v3748_v32 = vpop.f32.mrb[70].mxu0 }
0x17dd   : > { %v6296_v33 = vpop.f32.mrb[71].mxu0  ;;  %v3812_v0 = vpack.c.bf16 %v3746_v61, %v3746_v61 }
0x17df   : > { %v3817_v62 = vsel %vm1569_vm3, %v3812_v0, 0 }
0x184a   : > { %v3447_v34 = vpop.xlane.xlu0 %3446 }
0x184b   : > { %v3448_v35 = vsub.f32 %v3444_v19, %v3447_v34  ;;  %v6620_v19 = vld [vmem:[%s7973_s11 + $0x20] sm:$0xff]   ;;  %v6627_v34 = vld [vmem:[%s8005_s24 + $0xc8] sm:$0xff]  }
0x184d   : > { %v3449_v36 = vmul.f32 1.442695, %v3448_v35 }
0x184f   : > { %6688 = vpow2.f32 %v3449_v36  ;;  %v6628_v36 = vld [vmem:[%s8005_s24 + $0xd0] sm:$0xff]  }
0x1859   : > { %v6689_v37 = vpop.eup %6688 }
0x185a   : > { %v3451_v38 = vsel %vm1552_vm5, %v6689_v37, 0.0 }
0x185b   : > { %3452 = vadd.xlane.f32.xlu1 %v3451_v38 }
0x18e8   : > { %v3453_v39 = vpop.xlane.xlu1 %3452 }
0x18e9   : > { %6690 = vrcp.f32 %v3453_v39 }
0x18f3   : > { %v6691_v40 = vpop.eup %6690 }
0x18f4   : > { %v3455_v42 = vmul.f32 %v6691_v40, %v6689_v37  ;;  %v6629_v40 = vld [vmem:[%s8005_s24 + $0xd8] sm:$0xff]  }
0x18f6   : > { %v3456_v44 = vpack.c.bf16 %v3455_v42, %v3455_v42  ;;  %v6630_v42 = vld [vmem:[%s7971_s9 + $0xc0] sm:$0xff]  }
0x18f8   : > { %6258 = vmatmul.mubr.msk.bf16.vlgmr.msra.gmra.mrb[68].mxu1 %vm1552_vm5, %v3456_v44  ;;  %v5563_v44 = vld [vmem:[%s7970_s8 + $0x6] ss:$0 sm:$0xff] }
0x18f9   : > { %6274 = vmatpush3.bf16.msra.mxu1 %v6616_v43  ;;  %6281 = vmatprep.mubr.msk.bf16.mxu1 %vm6719_vm1, %v6718_v23  ;;  %v6631_v43 = vld [vmem:[%s7971_s9 + $0xc8] sm:$0xff]  }
0x18fa   : > { %6275 = vmatprep.subr.bf16.mxu1 %v6718_v23 }
0x18fd   : > { %6276 = vmatpush3.bf16.msra.mxu1 %v6617_v14 }
0x18fe   : > { %6277 = vmatprep.subr.bf16.mxu1 %v6718_v23 }
0x1901   : > { %6278 = vmatpush3.bf16.msra.mxu1 %v6618_v45  ;;  %v6632_v45 = vld [vmem:[%s7971_s9 + $0xd0] sm:$0xff]  }
0x1902   : > { %6279 = vmatprep.subr.bf16.mxu1 %v6718_v23 }
0x1905   : > { %6280 = vmatpush3.bf16.msra.mxu1 %v6619_v47 }
0x1906   : > { %6297 = vmatprep.subr.bf16.mxu1 %v6718_v23 }
0x1908   : > { %6282 = vmatmul.mubr.msk.bf16.vlgmr.msra.gmra.mrb[72].mxu1 %vm1232_vm0, %v7525_v46 }
0x1909   : > { %6299 = vmatprep.mubr.msk.bf16.mxu1 %vm6719_vm1, %v6718_v23 }
0x19cb   : > { %v3498_v48 = vpop.f32.mrb[68].mxu1 }
0x19cc   : > { %v6259_v49 = vpop.f32.mrb[69].mxu1  ;;  %v3504_v24 = vpack.c.bf16 %v3498_v48, %v3498_v48 }
0x19cd   : > { %v3501_v51 = vpop.f32.mrb[70].mxu1 }
0x19ce   : > { %v6260_v52 = vpop.f32.mrb[71].mxu1 }
0x19db   : > { %v3664_v54 = vpop.f32.mrb[72].mxu1 }
0x19dc   : > { %v3665_v55 = vadd.f32 %v5510_v53, %v3664_v54  ;;  %v6283_v56 = vpop.f32.mrb[73].mxu1  ;;  %v6633_v53 = vld [vmem:[%s7971_s9 + $0xd8] sm:$0xff]  }
0x19dd   : > { %v3667_v58 = vpop.f32.mrb[74].mxu1 }
0x19de   : > { %v3752_v41 = vpack.c.bf16 %v3665_v55, %v3665_v55  ;;  %v6284_v59 = vpop.f32.mrb[75].mxu1 }
0x19df   : > { %v5548_v59 = vld [vmem:[%s8009_s28 + $0x6] ss:$0 sm:$0xff] }
0x19e0   : > { %v3757_v63 = vsel %vm1504_vm2, %v3752_v41, 0 }
0x19e1   : > { %6298 = vmatpush3.bf16.xpose.msra.mxu1 %v3757_v63 }
0x19e2   : > { %6303 = vmatprep.subr.bf16.mxu1 %v6718_v23 }
0x19e8   : > { %6300 = vmatmul.mubr.msk.bf16.vlgmr.msra.gmra.mrb[76].mxu1 %vm1504_vm2, %v3751_v1 }
0x19e9   : > { %6304 = vmatpush3.bf16.msra.mxu1 %v3817_v62  ;;  %6305 = vmatprep.mubr.msk.bf16.mxu1 %vm6719_vm1, %v6718_v23  ;;  %v5578_v62 = vld [vmem:[%s7972_s10 + $0x6] ss:$0 sm:$0xff] }
0x19ea   : > { %6315 = vmatprep.subr.bf16.mxu1 %v6718_v23 }
0x1abb   : > { %v3793_v2 = vpop.f32.mrb[76].mxu1 }
0x1abc   : > { %v3799_v3 = vsel %vm712_vm4, %v3793_v2, -1e+30  ;;  %v6301_v4 = vpop.f32.mrb[77].mxu1 }
0x1abd   : > { %v3796_v5 = vpop.f32.mrb[78].mxu1  ;;  %v3800_v6 = vsel %vm1552_vm5, %v3799_v3, -inf }
0x1abe   : > { %3801 = vmax.xlane.f32.xlu0 %v3800_v6  ;;  %v6302_v7 = vpop.f32.mrb[79].mxu1 }
0x1b4b   : > { %v3802_v8 = vpop.xlane.xlu0 %3801 }
0x1b4c   : > { %v3803_v9 = vsub.f32 %v3799_v3, %v3802_v8 }
0x1b4e   : > { %v3804_v10 = vmul.f32 1.442695, %v3803_v9 }
0x1b50   : > { %6692 = vpow2.f32 %v3804_v10 }
0x1b5a   : > { %v6693_v11 = vpop.eup %6692 }
0x1b5b   : > { %v3806_v12 = vsel %vm1552_vm5, %v6693_v11, 0.0 }
0x1b5c   : > { %3807 = vadd.xlane.f32.xlu1 %v3806_v12 }
0x1be9   : > { %v3808_v15 = vpop.xlane.xlu1 %3807 }
0x1bea   : > { %6694 = vrcp.f32 %v3808_v15 }
0x1bf4   : > { %v6695_v16 = vpop.eup %6694 }
0x1bf5   : > { %v3810_v17 = vmul.f32 %v6695_v16, %v6693_v11 }
0x1bf7   : > { %v3811_v20 = vpack.c.bf16 %v3810_v17, %v3810_v17 }
0x1bf9   : > { %6306 = vmatmul.mubr.msk.bf16.vlgmr.msra.gmra.mrb[80].mxu1 %vm1552_vm5, %v3811_v20 }
0x1bfa   : > { %6316 = vmatpush3.bf16.msra.mxu1 %v6620_v19  ;;  %6317 = vmatprep.mubr.msk.bf16.mxu1 %vm6719_vm1, %v6718_v23 }
0x1bfb   : > { %6333 = vmatprep.subr.bf16.mxu1 %v6718_v23 }
0x1c01   : > { %6318 = vmatmul.mubr.msk.bf16.vlgmr.msra.gmra.mrb[84].mxu1 %vm1504_vm2, %v3504_v24  ;;  %v6642_v24 = vld [vmem:[%s7973_s11 + $0x30] sm:$0xff]  }
0x1c02   : > { %6334 = vmatpush3.bf16.msra.mxu1 %v6621_v22  ;;  %6341 = vmatprep.mubr.msk.bf16.mxu1 %vm6719_vm1, %v6718_v23 }
0x1c03   : > { %6335 = vmatprep.subr.bf16.mxu1 %v6718_v23 }
0x1c06   : > { %6336 = vmatpush3.bf16.msra.mxu1 %v6622_v25 }
0x1c07   : > { %6337 = vmatprep.subr.bf16.mxu1 %v6718_v23 }
0x1c0a   : > { %6338 = vmatpush3.bf16.msra.mxu1 %v6623_v26 }
0x1c0b   : > { %6339 = vmatprep.subr.bf16.mxu1 %v6718_v23 }
0x1c0e   : > { %6340 = vmatpush3.bf16.msra.mxu1 %v6624_v27 }
0x1c0f   : > { %6357 = vmatprep.subr.bf16.mxu1 %v6718_v23 }
0x1c11   : > { %6342 = vmatmul.mubr.msk.bf16.vlgmr.msra.gmra.mrb[88].mxu1 %vm1232_vm0, %v7525_v46 }
0x1c12   : > { %6359 = vmatprep.mubr.msk.bf16.mxu1 %vm6719_vm1, %v6718_v23 }
0x1ccc   : > { %v3853_v28 = vpop.f32.mrb[80].mxu1 }
0x1ccd   : > { %v3859_v30 = vpack.c.bf16 %v3853_v28, %v3853_v28  ;;  %v6307_v31 = vpop.f32.mrb[81].mxu1  ;;  %v6634_v28 = vld [vmem:[%s8005_s24 + $0xe0] sm:$0xff]  }
0x1cce   : > { %v3856_v32 = vpop.f32.mrb[82].mxu1  ;;  %v6636_v31 = vld [vmem:[%s8005_s24 + $0xf0] sm:$0xff]  }
0x1ccf   : > { %v6308_v33 = vpop.f32.mrb[83].mxu1  ;;  %6312 = vmatmul.mubr.msk.bf16.vlgmr.msra.gmra.mrb[72].mxu0 %vm1504_vm2, %v3859_v30  ;;  %v6635_v30 = vld [vmem:[%s8005_s24 + $0xe8] sm:$0xff]   ;;  %v6637_v32 = vld [vmem:[%s8005_s24 + $0xf8] sm:$0xff]  }
0x1cd0   : > { %6322 = vmatpush3.bf16.msra.mxu0 %v6626_v29  ;;  %6329 = vmatprep.mubr.msk.bf16.mxu0 %vm6719_vm1, %v6718_v23  ;;  %v6638_v33 = vld [vmem:[%s7971_s9 + $0xe0] sm:$0xff]  }
0x1cd1   : > { %6323 = vmatprep.subr.bf16.mxu0 %v6718_v23 }
0x1cd4   : > { %6324 = vmatpush3.bf16.msra.mxu0 %v6627_v34  ;;  %v3955_v35 = vpop.f32.mrb[84].mxu1  ;;  %v6639_v34 = vld [vmem:[%s7971_s9 + $0xe8] sm:$0xff]  }
0x1cd5   : > { %v6319_v37 = vpop.f32.mrb[85].mxu1  ;;  %6325 = vmatprep.subr.bf16.mxu0 %v6718_v23 }
0x1cd6   : > { %v3958_v38 = vpop.f32.mrb[86].mxu1 }
0x1cd7   : > { %v6320_v39 = vpop.f32.mrb[87].mxu1  ;;  %v6643_v38 = vld [vmem:[%s8008_s25 + $0xe0] sm:$0xff]  }
0x1cd8   : > { %6326 = vmatpush3.bf16.msra.mxu0 %v6628_v36  ;;  %v6641_v36 = vld [vmem:[%s7971_s9 + $0xf8] sm:$0xff]  }
0x1cd9   : > { %6327 = vmatprep.subr.bf16.mxu0 %v6718_v23 }
0x1cdc   : > { %6328 = vmatpush3.bf16.msra.mxu0 %v6629_v40 }
0x1cdd   : > { %6345 = vmatprep.subr.bf16.mxu0 %v6718_v23 }
0x1cdf   : > { %6330 = vmatmul.mubr.msk.bf16.vlgmr.msra.gmra.mrb[76].mxu0 %vm1232_vm0, %v7525_v46 }
0x1ce0   : > { %6346 = vmatpush3.bf16.msra.mxu0 %v6630_v42  ;;  %6353 = vmatprep.mubr.msk.bf16.mxu0 %vm6719_vm1, %v6718_v23 }
0x1ce1   : > { %6347 = vmatprep.subr.bf16.mxu0 %v6718_v23 }
0x1ce4   : > { %v4117_v14 = vpop.f32.mrb[88].mxu1  ;;  %6348 = vmatpush3.bf16.msra.mxu0 %v6631_v43 }
0x1ce5   : > { %v4118_v47 = vadd.f32 %v5563_v44, %v4117_v14  ;;  %v6343_v48 = vpop.f32.mrb[89].mxu1  ;;  %6349 = vmatprep.subr.bf16.mxu0 %v6718_v23  ;;  %v6644_v44 = vld [vmem:[%s8008_s25 + $0xe8] sm:$0xff]   ;;  %v6645_v14 = vld [vmem:[%s8008_s25 + $0xf0] sm:$0xff]  }
0x1ce6   : > { %v4120_v49 = vpop.f32.mrb[90].mxu1 }
0x1ce7   : > { %v4205_v51 = vpack.c.bf16 %v4118_v47, %v4118_v47  ;;  %v6344_v52 = vpop.f32.mrb[91].mxu1 }
0x1ce8   : > { %6350 = vmatpush3.bf16.msra.mxu0 %v6632_v45  ;;  %v6646_v45 = vld [vmem:[%s8008_s25 + $0xf8] sm:$0xff]  }
0x1ce9   : > { %v4210_v54 = vsel %vm1504_vm2, %v4205_v51, 0  ;;  %6351 = vmatprep.subr.bf16.mxu0 %v6718_v23 }
0x1cea   : > { %6358 = vmatpush3.bf16.xpose.msra.mxu1 %v4210_v54 }
0x1ceb   : > { %6363 = vmatprep.subr.bf16.mxu1 %v6718_v23 }
0x1cec   : > { %6352 = vmatpush3.bf16.msra.mxu0 %v6633_v53 }
0x1ced   : > { %6369 = vmatprep.subr.bf16.mxu0 %v6718_v23 }
0x1cef   : > { %6354 = vmatmul.mubr.msk.bf16.vlgmr.msra.gmra.mrb[80].mxu0 %vm1232_vm0, %v7525_v46 }
0x1cf0   : > { %6371 = vmatprep.mubr.msk.bf16.mxu0 %vm6719_vm1, %v6718_v23  ;;  %6370 = vmatpush3.bf16.msra.mxu0 %v6642_v24  ;;  %v6647_v24 = vld [vmem:[%s7973_s11 + $0x38] sm:$0xff]  }
0x1cf1   : > { %6387 = vmatprep.subr.bf16.mxu0 %v6718_v23 }
0x1da2   : > { %v3906_v55 = vpop.f32.mrb[72].mxu0 }
0x1da3   : > { %v7737_v56 = vadd.f32 %v3955_v35, %v3906_v55  ;;  %v6313_v57 = vpop.f32.mrb[73].mxu0  ;;  %v6640_v35 = vld [vmem:[%s7971_s9 + $0xf0] sm:$0xff]  }
0x1da4   : > { %v3909_v58 = vpop.f32.mrb[74].mxu0 }
0x1da5   : > { %v6314_v41 = vpop.f32.mrb[75].mxu0 }
0x1db2   : > { %v4036_v60 = vpop.f32.mrb[76].mxu0 }
0x1db3   : > { %v4037_v61 = vadd.f32 %v5548_v59, %v4036_v60  ;;  %v6331_v63 = vpop.f32.mrb[77].mxu0 }
0x1db4   : > { %v4039_v50 = vpop.f32.mrb[78].mxu0 }
0x1db5   : > { %v4204_v0 = vpack.c.bf16 %v4037_v61, %v4037_v61  ;;  %v6332_v1 = vpop.f32.mrb[79].mxu0  ;;  %v5614_v61 = vld [vmem:[%s7970_s8 + $0x7] ss:$0 sm:$0xff] }
0x1db7   : > { %6360 = vmatmul.mubr.msk.bf16.vlgmr.msra.gmra.mrb[92].mxu1 %vm1504_vm2, %v4204_v0  ;;  %v5629_v0 = vld [vmem:[%s7972_s10 + $0x7] ss:$0 sm:$0xff] }
0x1db8   : > { %6365 = vmatprep.mubr.msk.bf16.mxu1 %vm6719_vm1, %v6718_v23 }
0x1dc2   : > { %v4198_v2 = vpop.f32.mrb[80].mxu0 }
0x1dc3   : > { %v4199_v3 = vadd.f32 %v5578_v62, %v4198_v2  ;;  %v6355_v4 = vpop.f32.mrb[81].mxu0 }
0x1dc4   : > { %v4201_v5 = vpop.f32.mrb[82].mxu0 }
0x1dc5   : > { %v4265_v6 = vpack.c.bf16 %v4199_v3, %v4199_v3  ;;  %v6356_v7 = vpop.f32.mrb[83].mxu0 }
0x1dc7   : > { %v4270_v8 = vsel %vm1569_vm3, %v4265_v6, 0 }
0x1dc8   : > { %6364 = vmatpush3.bf16.msra.mxu1 %v4270_v8 }
0x1dc9   : > { %6375 = vmatprep.subr.bf16.mxu1 %v6718_v23 }
0x1e8a   : > { %v4246_v9 = vpop.f32.mrb[92].mxu1 }
0x1e8b   : > { %v4252_v10 = vsel %vm712_vm4, %v4246_v9, -1e+30  ;;  %v6361_v11 = vpop.f32.mrb[93].mxu1 }
0x1e8c   : > { %v4249_v12 = vpop.f32.mrb[94].mxu1  ;;  %v4253_v13 = vsel %vm1552_vm5, %v4252_v10, -inf }
0x1e8d   : > { %4254 = vmax.xlane.f32.xlu0 %v4253_v13  ;;  %v6362_v15 = vpop.f32.mrb[95].mxu1 }
0x1f1a   : > { %v4255_v16 = vpop.xlane.xlu0 %4254 }
0x1f1b   : > { %v4256_v17 = vsub.f32 %v4252_v10, %v4255_v16 }
0x1f1d   : > { %v4257_v19 = vmul.f32 1.442695, %v4256_v17 }
0x1f1f   : > { %6696 = vpow2.f32 %v4257_v19 }
0x1f29   : > { %v6697_v20 = vpop.eup %6696 }
0x1f2a   : > { %v4259_v22 = vsel %vm1552_vm5, %v6697_v20, 0.0 }
0x1f2b   : > { %4260 = vadd.xlane.f32.xlu1 %v4259_v22 }
0x1fb8   : > { %v4261_v25 = vpop.xlane.xlu1 %4260 }
0x1fb9   : > { %6698 = vrcp.f32 %v4261_v25 }
0x1fc3   : > { %v6699_v26 = vpop.eup %6698 }
0x1fc4   : > { %v4263_v27 = vmul.f32 %v6699_v26, %v6697_v20 }
0x1fc6   : > { %v4264_v29 = vpack.c.bf16 %v4263_v27, %v4263_v27 }
0x1fc8   : > { %6366 = vmatmul.mubr.msk.bf16.vlgmr.msra.gmra.mrb[96].mxu1 %vm1552_vm5, %v4264_v29 }
0x1fc9   : > { %6376 = vmatpush3.bf16.msra.mxu1 %v6634_v28  ;;  %6383 = vmatprep.mubr.msk.bf16.mxu1 %vm6719_vm1, %v6718_v23 }
0x1fca   : > { %6377 = vmatprep.subr.bf16.mxu1 %v6718_v23 }
0x1fcd   : > { %6378 = vmatpush3.bf16.msra.mxu1 %v6635_v30 }
0x1fce   : > { %6379 = vmatprep.subr.bf16.mxu1 %v6718_v23 }
0x1fd1   : > { %6380 = vmatpush3.bf16.msra.mxu1 %v6636_v31 }
0x1fd2   : > { %6381 = vmatprep.subr.bf16.mxu1 %v6718_v23 }
0x1fd5   : > { %6382 = vmatpush3.bf16.msra.mxu1 %v6637_v32 }
0x1fd6   : > { %6399 = vmatprep.subr.bf16.mxu1 %v6718_v23 }
0x1fd8   : > { %6384 = vmatmul.mubr.msk.bf16.vlgmr.msra.gmra.mrb[100].mxu1 %vm1232_vm0, %v7525_v46 }
0x1fd9   : > { %6400 = vmatpush3.bf16.msra.mxu1 %v6638_v33  ;;  %6407 = vmatprep.mubr.msk.bf16.mxu1 %vm6719_vm1, %v6718_v23 }
0x1fda   : > { %6401 = vmatprep.subr.bf16.mxu1 %v6718_v23 }
0x1fdd   : > { %6402 = vmatpush3.bf16.msra.mxu1 %v6639_v34 }
0x1fde   : > { %6403 = vmatprep.subr.bf16.mxu1 %v6718_v23 }
0x1fe1   : > { %6404 = vmatpush3.bf16.msra.mxu1 %v6640_v35 }
0x1fe2   : > { %6405 = vmatprep.subr.bf16.mxu1 %v6718_v23 }
0x1fe5   : > { %6406 = vmatpush3.bf16.msra.mxu1 %v6641_v36  ;;  %v5642_v36 = vld [vmem:[%s7974_s12 + $0x1] ss:$0 sm:$0xff] }
0x1fe6   : > { %6423 = vmatprep.subr.bf16.mxu1 %v6718_v23 }
0x1fe8   : > { %6408 = vmatmul.mubr.msk.bf16.vlgmr.msra.gmra.mrb[104].mxu1 %vm1232_vm0, %v7525_v46 }
0x1fe9   : > { %6425 = vmatprep.mubr.msk.bf16.mxu1 %vm6719_vm1, %v6718_v23  ;;  %6424 = vmatpush3.bf16.msra.mxu1 %v6647_v24 }
0x1fea   : > { %6441 = vmatprep.subr.bf16.mxu1 %v6718_v23 }
0x209b   : > { %v4306_v37 = vpop.f32.mrb[96].mxu1 }
0x209c   : > { %v4312_v39 = vpack.c.bf16 %v4306_v37, %v4306_v37  ;;  %v6367_v40 = vpop.f32.mrb[97].mxu1 }
0x209d   : > { %v4309_v42 = vpop.f32.mrb[98].mxu1 }
0x209e   : > { %v6368_v43 = vpop.f32.mrb[99].mxu1  ;;  %6372 = vmatmul.mubr.msk.bf16.vlgmr.msra.gmra.mrb[84].mxu0 %vm1504_vm2, %v4312_v39 }
0x209f   : > { %6388 = vmatpush3.bf16.msra.mxu0 %v6643_v38  ;;  %6395 = vmatprep.mubr.msk.bf16.mxu0 %vm6719_vm1, %v6718_v23 }
0x20a0   : > { %6389 = vmatprep.subr.bf16.mxu0 %v6718_v23 }
0x20a3   : > { %6390 = vmatpush3.bf16.msra.mxu0 %v6644_v44 }
0x20a4   : > { %6391 = vmatprep.subr.bf16.mxu0 %v6718_v23 }
0x20a7   : > { %6392 = vmatpush3.bf16.msra.mxu0 %v6645_v14 }
0x20a8   : > { %6393 = vmatprep.subr.bf16.mxu0 %v6718_v23 }
0x20ab   : > { %v4441_v47 = vpop.f32.mrb[100].mxu1  ;;  %6394 = vmatpush3.bf16.msra.mxu0 %v6646_v45 }
0x20ac   : > { %v6385_v48 = vpop.f32.mrb[101].mxu1  ;;  %6411 = vmatprep.subr.bf16.mxu0 %v6718_v23 }
0x20ad   : > { %v4444_v49 = vpop.f32.mrb[102].mxu1  ;;  %v6648_v48 = vld [vmem:[%s7977_s15 + $0x20] sm:$0xff]  }
0x20ae   : > { %v6386_v51 = vpop.f32.mrb[103].mxu1  ;;  %6396 = vmatmul.mubr.msk.bf16.vlgmr.msra.gmra.mrb[88].mxu0 %vm1232_vm0, %v7525_v46  ;;  %v6650_v49 = vld [vmem:[%s7977_s15 + $0x30] sm:$0xff]  }
0x20af   : > { %6413 = vmatprep.mubr.msk.bf16.mxu0 %vm6719_vm1, %v6718_v23  ;;  %v6651_v51 = vld [vmem:[%s7977_s15 + $0x38] sm:$0xff]  }
0x20bb   : > { %v4603_v52 = vpop.f32.mrb[104].mxu1 }
0x20bc   : > { %v6409_v53 = vpop.f32.mrb[105].mxu1  ;;  %v4604_v3 = vadd.f32 %v5629_v0, %v4603_v52  ;;  %v6652_v52 = vld [vmem:[%s7979_s17 + $0x40] sm:$0xff]   ;;  %v6655_v0 = vld [vmem:[%s7979_s17 + $0x58] sm:$0xff]  }
0x20bd   : > { %v4606_v54 = vpop.f32.mrb[106].mxu1  ;;  %v6653_v53 = vld [vmem:[%s7979_s17 + $0x48] sm:$0xff]  }
0x20be   : > { %v6410_v55 = vpop.f32.mrb[107].mxu1  ;;  %v4670_v6 = vpack.c.bf16 %v4604_v3, %v4604_v3  ;;  %v6654_v54 = vld [vmem:[%s7979_s17 + $0x50] sm:$0xff]   ;;  %v5656_v3 = vld [vmem:[%s7978_s16 + $0x1] ss:$0 sm:$0xff] }
0x20c0   : > { %v4675_v8 = vsel %vm1569_vm3, %v4670_v6, 0 }
0x2171   : > { %v4359_v57 = vpop.f32.mrb[84].mxu0 }
0x2172   : > { %v4365_v58 = vadd.f32 %v4359_v57, %v7737_v56  ;;  %v6373_v41 = vpop.f32.mrb[85].mxu0  ;;  %v5599_v56 = vld [vmem:[%s8009_s28 + $0x7] ss:$0 sm:$0xff] }
0x2173   : > { %v4362_v59 = vpop.f32.mrb[86].mxu0  ;;  %v4442_v5 = vadd.f32 %v5599_v56, %v4441_v47  ;;  %v6659_v56 = vld [vmem:[%s7979_s17 + $0x78] sm:$0xff]  }
0x2174   : > { %v6374_v60 = vpop.f32.mrb[87].mxu0  ;;  %v5645_v59 = vld [vmem:[%s7975_s13 + $0x1] ss:$0 sm:$0xff] }
0x2175   : > { %v4609_v7 = vpack.c.bf16 %v4442_v5, %v4442_v5 }
0x2181   : > { %v4522_v63 = vpop.f32.mrb[88].mxu0 }
0x2182   : > { %v4523_v50 = vadd.f32 %v5614_v61, %v4522_v63  ;;  %v6397_v46 = vpop.f32.mrb[89].mxu0  ;;  %v5646_v61 = vld [vmem:[%s7976_s14 + $0x1] ss:$0 sm:$0xff] }
0x2183   : > { %v4525_v1 = vpop.f32.mrb[90].mxu0 }
0x2184   : > { %v4610_v62 = vpack.c.bf16 %v4523_v50, %v4523_v50  ;;  %v6398_v2 = vpop.f32.mrb[91].mxu0  ;;  %v6656_v1 = vld [vmem:[%s7979_s17 + $0x60] sm:$0xff]  }
0x2185   : > { %v6658_v2 = vld [vmem:[%s7979_s17 + $0x70] sm:$0xff]  }
0x2186   : > { %v4615_v4 = vsel %vm1504_vm2, %v4610_v62, 0  ;;  %v6657_v62 = vld [vmem:[%s7979_s17 + $0x68] sm:$0xff]  }
0x2187   : > { %6412 = vmatpush3.bf16.xpose.msra.mxu0 %v4615_v4 }
0x2188   : > { %6417 = vmatprep.subr.bf16.mxu0 %v6718_v23 }
0x218e   : > { %6414 = vmatmul.mubr.msk.bf16.vlgmr.msra.gmra.mrb[92].mxu0 %vm1504_vm2, %v4609_v7 }
0x218f   : > { %6418 = vmatpush3.bf16.msra.mxu0 %v4675_v8  ;;  %6419 = vmatprep.mubr.msk.bf16.mxu0 %vm6719_vm1, %v6718_v23 }
0x2190   : > { %6429 = vmatprep.subr.bf16.mxu0 %v6718_v23 }
0x2261   : > { %v4651_v9 = vpop.f32.mrb[92].mxu0 }
0x2262   : > { %v4657_v10 = vsel %vm712_vm4, %v4651_v9, -1e+30  ;;  %v6415_v11 = vpop.f32.mrb[93].mxu0 }
0x2263   : > { %v4654_v12 = vpop.f32.mrb[94].mxu0  ;;  %v4658_v13 = vsel %vm1552_vm5, %v4657_v10, -inf }
0x2264   : > { %4659 = vmax.xlane.f32.xlu0 %v4658_v13  ;;  %v6416_v15 = vpop.f32.mrb[95].mxu0 }
0x22f1   : > { %v4660_v16 = vpop.xlane.xlu0 %4659 }
0x22f2   : > { %v4661_v17 = vsub.f32 %v4657_v10, %v4660_v16  ;;  %v5679_v16 = vld [vmem:[%s7980_s18 + $0x1] ss:$0 sm:$0xff] }
0x22f4   : > { %v4662_v19 = vmul.f32 1.442695, %v4661_v17 }
0x22f6   : > { %6700 = vpow2.f32 %v4662_v19 }
0x2300   : > { %v6701_v20 = vpop.eup %6700 }
0x2301   : > { %v4664_v22 = vsel %vm1552_vm5, %v6701_v20, 0.0 }
0x2302   : > { %4665 = vadd.xlane.f32.xlu1 %v4664_v22 }
0x238f   : > { %v4666_v21 = vpop.xlane.xlu1 %4665 }
0x2390   : > { %6702 = vrcp.f32 %v4666_v21 }
0x239a   : > { %v6703_v25 = vpop.eup %6702 }
0x239b   : > { %v4668_v26 = vmul.f32 %v6703_v25, %v6701_v20 }
0x239d   : > { %v4669_v27 = vpack.c.bf16 %v4668_v26, %v4668_v26 }
0x239f   : > { %6420 = vmatmul.mubr.msk.bf16.vlgmr.msra.gmra.mrb[96].mxu0 %vm1552_vm5, %v4669_v27 }
0x23a0   : > { %6437 = vmatprep.mubr.msk.bf16.mxu0 %vm6719_vm1, %v6718_v23  ;;  %6430 = vmatpush3.bf16.msra.mxu0 %v6648_v48 }
0x23a1   : > { %6431 = vmatprep.subr.bf16.mxu0 %v6718_v23 }
0x2472   : > { %v4711_v28 = vpop.f32.mrb[96].mxu0 }
0x2473   : > { %v4717_v29 = vpack.c.bf16 %v4711_v28, %v4711_v28  ;;  %v6421_v30 = vpop.f32.mrb[97].mxu0 }
0x2474   : > { %v4714_v31 = vpop.f32.mrb[98].mxu0 }
0x2475   : > { %v6422_v32 = vpop.f32.mrb[99].mxu0  ;;  %6426 = vmatmul.mubr.msk.bf16.vlgmr.msra.gmra.mrb[108].mxu1 %vm1504_vm2, %v4717_v29  ;;  %v6660_v31 = vld [vmem:[%s7983_s21] sm:$0xff]  }
0x2476   : > { %6457 = vmatprep.mubr.msk.bf16.mxu1 %vm6719_vm1, %v6718_v23  ;;  %6442 = vmatpush3.bf16.msra.mxu1 %v6652_v52  ;;  %v6661_v32 = vld [vmem:[%s7983_s21 + $0x8] sm:$0xff]  }
0x2477   : > { %6443 = vmatprep.subr.bf16.mxu1 %v6718_v23 }
0x247a   : > { %6444 = vmatpush3.bf16.msra.mxu1 %v6653_v53 }
0x247b   : > { %6445 = vmatprep.subr.bf16.mxu1 %v6718_v23 }
0x247e   : > { %6446 = vmatpush3.bf16.msra.mxu1 %v6654_v54 }
0x247f   : > { %6447 = vmatprep.subr.bf16.mxu1 %v6718_v23 }
0x2482   : > { %6448 = vmatpush3.bf16.msra.mxu1 %v6655_v0 }
0x2483   : > { %6449 = vmatprep.subr.bf16.mxu1 %v6718_v23 }
0x2486   : > { %6450 = vmatpush3.bf16.msra.mxu1 %v6656_v1 }
0x2487   : > { %6451 = vmatprep.subr.bf16.mxu1 %v6718_v23 }
0x248a   : > { %6452 = vmatpush3.bf16.msra.mxu1 %v6657_v62 }
0x248b   : > { %6453 = vmatprep.subr.bf16.mxu1 %v6718_v23 }
0x248e   : > { %6454 = vmatpush3.bf16.msra.mxu1 %v6658_v2 }
0x248f   : > { %6455 = vmatprep.subr.bf16.mxu1 %v6718_v23 }
0x2492   : > { %6456 = vmatpush3.bf16.msra.mxu1 %v6659_v56 }
0x2548   : > { %v4764_v33 = vpop.f32.mrb[108].mxu1 }
0x2549   : > { %v4770_v34 = vadd.f32 %v4764_v33, %v4365_v58  ;;  %v6427_v35 = vpop.f32.mrb[109].mxu1  ;;  %v6662_v33 = vld [vmem:[%s7983_s21 + $0x10] sm:$0xff]  }
0x254a   : > { %v4767_v37 = vpop.f32.mrb[110].mxu1 }
0x254b   : > { %v4771_v38 = vadd.f32 %v4770_v34, %v7478_v18  ;;  %v6428_v39 = vpop.f32.mrb[111].mxu1  ;;  %v6649_v18 = vld [vmem:[%s7977_s15 + $0x28] sm:$0xff]   ;;  %v6663_v34 = vld [vmem:[%s7983_s21 + $0x18] sm:$0xff]  }
0x254c   : > { %6432 = vmatpush3.bf16.msra.mxu0 %v6649_v18  ;;  %v5688_v39 = vld [vmem:[%s7981_s19] ss:$0 sm:$0xff] }
0x254d   : > { %v7859_v40 = vadd.f32 %v5642_v36, %v4771_v38  ;;  %6433 = vmatprep.subr.bf16.mxu0 %v6718_v23 }
0x254f   : > { %v4785_v42 = vsel %vm1232_vm0, %v7859_v40, 0.0 }
0x2550   : > { %4786 = vadd.xlane.f32.xlu0 %v4785_v42  ;;  %6434 = vmatpush3.bf16.msra.mxu0 %v6650_v49  ;;  %v5689_v42 = vld [vmem:[%s7982_s20] ss:$0 sm:$0xff] }
0x2551   : > { %6435 = vmatprep.subr.bf16.mxu0 %v6718_v23 }
0x2554   : > { %6436 = vmatpush3.bf16.msra.mxu0 %v6651_v51 }
0x2555   : > { %6461 = vmatprep.subr.bf16.mxu0 %v6718_v23 }
0x25dd   : > { %v4787_v43 = vpop.xlane.xlu0 %4786 }
0x25de   : > { %v4788_v44 = vmul.f32 0.015625, %v4787_v43 }
0x25e0   : > { %v4789_v14 = vsub.f32 %v7859_v40, %v4788_v44 }
0x25e2   : > { %v4790_v45 = vmul.f32 %v4789_v14, %v4789_v14 }
0x25e4   : > { %v4791_v47 = vsel %vm1232_vm0, %v4790_v45, 0.0 }
0x25e5   : > { %4792 = vadd.xlane.f32.xlu1 %v4791_v47 }
0x2672   : > { %v4793_v55 = vpop.xlane.xlu1 %4792 }
0x2673   : > { %v4794_v57 = vmul.f32 0.015625, %v4793_v55 }
0x2675   : > { %v4795_v58 = vadd.f32 1e-06, %v4794_v57 }
0x2677   : > { %6704 = vrsqrt.f32 %v4795_v58 }
0x2681   : > { %v6705_v41 = vpop.eup %6704 }
0x2682   : > { %v4797_v60 = vmul.f32 %v6705_v41, %v4789_v14  ;;  %v5690_v14 = vld [vmem:[%s7984_s22] ss:$0 sm:$0xff] }
0x2684   : > { %v4804_v63 = vmul.f32 %v5645_v59, %v4797_v60 }
0x2686   : > { %v4811_v50 = vadd.f32 %v5646_v61, %v4804_v63 }
0x2688   : > { %v4812_v46 = vpack.c.bf16 %v4811_v50, %v4811_v50 }
0x268a   : > { %6438 = vmatmul.mubr.msk.bf16.vlgmr.msra.gmra.mrb[100].mxu0 %vm1232_vm0, %v4812_v46 }
0x268b   : > { %6469 = vmatprep.mubr.msk.bf16.mxu0 %vm6719_vm1, %v6718_v23  ;;  %6462 = vmatpush3.bf16.msra.mxu0 %v6660_v31 }
0x268c   : > { %6463 = vmatprep.subr.bf16.mxu0 %v6718_v23 }
0x268f   : > { %6464 = vmatpush3.bf16.msra.mxu0 %v6661_v32 }
0x2690   : > { %6465 = vmatprep.subr.bf16.mxu0 %v6718_v23 }
0x2693   : > { %6466 = vmatpush3.bf16.msra.mxu0 %v6662_v33 }
0x2694   : > { %6467 = vmatprep.subr.bf16.mxu0 %v6718_v23 }
0x2697   : > { %6468 = vmatpush3.bf16.msra.mxu0 %v6663_v34 }
0x275d   : > { %v4891_v4 = vpop.f32.mrb[100].mxu0 }
0x275e   : > { %v4892_v5 = vadd.f32 %v5656_v3, %v4891_v4  ;;  %v6439_v6 = vpop.f32.mrb[101].mxu0 }
0x275f   : > { %v4894_v7 = vpop.f32.mrb[102].mxu0 }
0x2760   : > { %v4898_v8 = vmul.f32 0.70710677, %v4892_v5  ;;  %v6440_v9 = vpop.f32.mrb[103].mxu0  ;;  %v4897_v11 = vmul.f32 0.5, %v4892_v5 }
0x2762   : > { %6706 = verf.f32 %v4898_v8 }
0x276c   : > { %v6707_v10 = vpop.eup %6706 }
0x276d   : > { %v4900_v12 = vadd.f32 1.0, %v6707_v10 }
0x276f   : > { %v4901_v13 = vmul.f32 %v4900_v12, %v4897_v11 }
0x2771   : > { %v4902_v15 = vpack.c.bf16 %v4901_v13, %v4901_v13 }
0x2773   : > { %6458 = vmatmul.mubr.bf16.vlgmr.msra.gmra.mrb[112].mxu1 %v4902_v15 }
0x2846   : > { %v5010_v17 = vpop.f32.mrb[112].mxu1 }
0x2847   : > { %v5011_v19 = vadd.f32 %v5679_v16, %v5010_v17  ;;  %v6459_v20 = vpop.f32.mrb[113].mxu1 }
0x2848   : > { %v5013_v22 = vpop.f32.mrb[114].mxu1 }
0x2849   : > { %v6460_v24 = vpop.f32.mrb[115].mxu1  ;;  %v5016_v21 = vadd.f32 %v5011_v19, %v7859_v40 }
0x284b   : > { %v5019_v25 = vsel %vm1232_vm0, %v5016_v21, 0.0 }
0x284c   : > { %5020 = vadd.xlane.f32.xlu0 %v5019_v25 }
0x28d9   : > { %v5021_v26 = vpop.xlane.xlu0 %5020 }
0x28da   : > { %v5022_v27 = vmul.f32 0.015625, %v5021_v26 }
0x28dc   : > { %v5023_v28 = vsub.f32 %v5016_v21, %v5022_v27 }
0x28de   : > { %v5024_v29 = vmul.f32 %v5023_v28, %v5023_v28 }
0x28e0   : > { %v5025_v30 = vsel %vm1232_vm0, %v5024_v29, 0.0 }
0x28e1   : > { %5026 = vadd.xlane.f32.xlu1 %v5025_v30 }
0x296e   : > { %v5027_v35 = vpop.xlane.xlu1 %5026 }
0x296f   : > { %v5028_v36 = vmul.f32 0.015625, %v5027_v35 }
0x2971   : > { %v5029_v37 = vadd.f32 1e-06, %v5028_v36 }
0x2973   : > { %6708 = vrsqrt.f32 %v5029_v37 }
0x297d   : > { %v6709_v38 = vpop.eup %6708 }
0x297e   : > { %v5031_v40 = vmul.f32 %v6709_v38, %v5023_v28 }
0x2980   : > { %v5038_v23 = vmul.f32 %v5688_v39, %v5031_v40 }
0x2982   : > { %v5045_v43 = vadd.f32 %v5689_v42, %v5038_v23 }
0x2984   : > { %v5046_v44 = vpack.c.bf16 %v5045_v43, %v5045_v43 }
0x2986   : > { %6470 = vmatmul.mubr.msk.bf16.vlgmr.msra.gmra.mrb[104].mxu0 %vm1232_vm0, %v5046_v44 }
0x2a59   : > { %v5123_v45 = vpop.f32.mrb[104].mxu0 }
0x2a5a   : > { %v5124_v47 = vadd.f32 %v5690_v14, %v5123_v45  ;;  %v6471_v48 = vpop.f32.mrb[105].mxu0 }
0x2a5b   : > { %v5126_v18 = vpop.f32.mrb[106].mxu0 }
0x2a5c   : > { %5129 = vst [vmem:[%s708_s27] sm:$0xff] %v5124_v47  ;;  %v6472_v49 = vpop.f32.mrb[107].mxu0 }
0x2a5d PF: > { %s33_s4 = sadd.s32 1, %s6716_s4  }
0x2a5e   : > { %p30_p4 = scmp.ge.s32.totalorder %s33_s4, 4  }
0x2a60   :  { %32 = sbr.rel (!%p30_p4) target bundleno = 9 (0x9), region = 200 }

</bundles_post_ra>
